<compile_context>
chip_gen: v6e
topology: v6e:2x2x1
jax: 0.10.0
libtpu: 0.0.40
codegen_flags: <defaults>
</compile_context>

<pallas_src>
import jax
import jax.numpy as jnp
from jax.experimental import pallas as pl
from jax.experimental.pallas import tpu as pltpu

# ---------------- problem sizes (module defaults: in_size=10, hidden=128) ----
N_LANES = 4       # batch of lanes
L_PTS   = 16      # points per lane
IN_SIZE = 10
HID     = 128
EPS     = 1e-5    # torch.nn.LayerNorm default
N_VEC   = 32      # 31 packed vectors + 1 zero pad row (sublane aligned)


# ------------------------------- kernel --------------------------------------
def lanenet_kernel(feats_ref, wsq_ref, wwide_ref, vec_ref, o_ref):
    """Fused forward for all lanes in a single step.

    feats_ref : (N*L, HID)       f32  input points, zero-padded IN_SIZE -> HID
    wsq_ref   : (7, HID, HID)    bf16 [Wp_pad, W1a/W1b/W2b of block1, block2]
    wwide_ref : (2, 2*HID, HID)  bf16 fc2 first linear (2H -> H) per block
    vec_ref   : (32, HID)        f32  biases / LN gammas / LN betas (+1 pad row)
    o_ref     : (N, HID)         f32  aggregated per-lane features
    """
    inv_h = 1.0 / HID

    def v(i):
        # (1, HID) slice: broadcasts cleanly over sublanes, stays 2-D.
        return vec_ref[i:i + 1, :]

    def layernorm(x, gi, bi):
        # E[x^2]-E[x]^2 form: two independent lane reductions (XLU overlap).
        s1 = jnp.sum(x, axis=-1, keepdims=True)
        s2 = jnp.sum(x * x, axis=-1, keepdims=True)
        mu = s1 * inv_h
        var = s2 * inv_h - mu * mu
        return (x - mu) * jax.lax.rsqrt(var + EPS) * v(gi) + v(bi)

    def mm(x, w):
        # bf16 operands, f32 accumulation on the MXU.
        return jnp.dot(x.astype(jnp.bfloat16), w,
                       preferred_element_type=jnp.float32)

    def lin_ln_relu(x, w, bi, gi, bei):
        return jnp.maximum(layernorm(mm(x, w) + v(bi), gi, bei), 0.0)

    def lane_max(h):
        # per-lane global max over the L points (static sublane-aligned slices)
        return [jnp.max(h[n * L_PTS:(n + 1) * L_PTS, :], axis=0, keepdims=True)
                for n in range(N_LANES)]

    # ---- proj: Linear(IN->HID, padded to K=128) + LN + ReLU
    x = lin_ln_relu(feats_ref[...], wsq_ref[0], 0, 1, 2)             # (N*L, HID)

    def aggre_block(x_inp, sq, wide, vb):
        # fc1: (Linear + LN + ReLU) x 2
        h = lin_ln_relu(x_inp, wsq_ref[sq + 0], vb + 0, vb + 1, vb + 2)
        h = lin_ln_relu(h,     wsq_ref[sq + 1], vb + 3, vb + 4, vb + 5)
        # global max-pool over points, broadcast back and concat -> K=2*HID matmul
        rows = lane_max(h)                                           # N x (1, HID)
        hmax_b = jnp.concatenate(
            [jnp.broadcast_to(r, (L_PTS, HID)) for r in rows], axis=0)   # (N*L, HID)
        cat = jnp.concatenate([h, hmax_b], axis=-1)                  # (N*L, 2*HID)
        y = mm(cat, wwide_ref[wide]) + v(vb + 6)
        y = jnp.maximum(layernorm(y, vb + 7, vb + 8), 0.0)
        # fc2 second layer
        y = lin_ln_relu(y, wsq_ref[sq + 2], vb + 9, vb + 10, vb + 11)
        # residual + LayerNorm
        return layernorm(x_inp + y, vb + 12, vb + 13)

    x = aggre_block(x, sq=1, wide=0, vb=3)     # aggre1 (aggre_out=False)
    x = aggre_block(x, sq=4, wide=1, vb=17)    # aggre2 body

    # aggre2 has aggre_out=True -> per-lane global max-pool, single lane-dense store
    o_ref[...] = jnp.concatenate(lane_max(x), axis=0)                # (N, HID)


def lanenet_pallas(feats, wsq, wwide, vec):
    N, L, C = feats.shape
    assert (N, L, C) == (N_LANES, L_PTS, IN_SIZE)
    x = feats.reshape(N * L, C)
    x = jnp.pad(x, ((0, 0), (0, HID - C)))                 # zero-pad to lane width 128

    flops = 2 * (N * L) * HID * HID * 7 + 2 * (N * L) * (2 * HID) * HID * 2
    bytes_accessed = (wsq.size * 2 + wwide.size * 2 + vec.size * 4
                      + (N * L) * HID * 4 + N * HID * 4)
    cost = pl.CostEstimate(flops=flops, transcendentals=11 * N * L,
                           bytes_accessed=bytes_accessed)

    return pl.pallas_call(
        lanenet_kernel,
        out_shape=jax.ShapeDtypeStruct((N, HID), jnp.float32),
        grid_spec=pltpu.PrefetchScalarGridSpec(
            num_scalar_prefetch=0,
            grid=(1,),
            in_specs=[
                pl.BlockSpec((N * L, HID), lambda i: (0, 0)),
                pl.BlockSpec((7, HID, HID), lambda i: (0, 0, 0)),
                pl.BlockSpec((2, 2 * HID, HID), lambda i: (0, 0, 0)),
                pl.BlockSpec((N_VEC, HID), lambda i: (0, 0)),
            ],
            out_specs=pl.BlockSpec((N, HID), lambda i: (0, 0)),
        ),
        compiler_params=pltpu.CompilerParams(
            dimension_semantics=("arbitrary",)),
        cost_estimate=cost,
    )(x, wsq, wwide, vec)


# ------------------------- deterministic parameter init ----------------------
def init_params(key):
    ks = iter(jax.random.split(key, 64))

    def w(shape, scale=0.05):
        return (scale * jax.random.normal(next(ks), shape)).astype(jnp.float32)

    def vec_bias():
        return w((HID,), 0.02)

    def vec_gamma():
        return (1.0 + 0.02 * jax.random.normal(next(ks), (HID,))).astype(jnp.float32)

    P = {}
    P["Wp"], P["bp"], P["gp"], P["bep"] = w((IN_SIZE, HID)), vec_bias(), vec_gamma(), vec_bias()

    def block_params():
        p = {}
        p["W1a"], p["b1a"], p["g1a"], p["be1a"] = w((HID, HID)), vec_bias(), vec_gamma(), vec_bias()
        p["W1b"], p["b1b"], p["g1b"], p["be1b"] = w((HID, HID)), vec_bias(), vec_gamma(), vec_bias()
        p["W2a"], p["b2a"], p["g2a"], p["be2a"] = w((2 * HID, HID)), vec_bias(), vec_gamma(), vec_bias()
        p["W2b"], p["b2b"], p["g2b"], p["be2b"] = w((HID, HID)), vec_bias(), vec_gamma(), vec_bias()
        p["gn"], p["bn"] = vec_gamma(), vec_bias()
        return p

    P["b1"] = block_params()
    P["b2"] = block_params()
    return P


def pack_params(P):
    wp_pad = jnp.zeros((HID, HID), jnp.float32).at[:IN_SIZE].set(P["Wp"])
    wsq = jnp.stack([wp_pad,
                     P["b1"]["W1a"], P["b1"]["W1b"], P["b1"]["W2b"],
                     P["b2"]["W1a"], P["b2"]["W1b"], P["b2"]["W2b"]],
                    axis=0).astype(jnp.bfloat16)                       # (7, H, H)
    wwide = jnp.stack([P["b1"]["W2a"], P["b2"]["W2a"]],
                      axis=0).astype(jnp.bfloat16)                     # (2, 2H, H)

    def block_vecs(p):
        return [p["b1a"], p["g1a"], p["be1a"],
                p["b1b"], p["g1b"], p["be1b"],
                p["b2a"], p["g2a"], p["be2a"],
                p["b2b"], p["g2b"], p["be2b"],
                p["gn"], p["bn"]]

    vec = jnp.stack([P["bp"], P["gp"], P["bep"]]
                    + block_vecs(P["b1"]) + block_vecs(P["b2"]), axis=0)   # (31, H) f32
    vec = jnp.pad(vec, ((0, N_VEC - vec.shape[0]), (0, 0)))               # -> (32, H)
    return wsq, wwide, vec


# ------------------------------ pure-JAX reference ---------------------------
def lanenet_ref(feats, P, bf16_matmul):
    cast = (lambda a: a.astype(jnp.bfloat16)) if bf16_matmul else (lambda a: a)

    def dot(x, W):
        return jnp.dot(cast(x), cast(W), preferred_element_type=jnp.float32)

    def ln(x, g, b):
        mu = x.mean(-1, keepdims=True)
        var = ((x - mu) ** 2).mean(-1, keepdims=True)
        return (x - mu) / jnp.sqrt(var + EPS) * g + b

    def llr(x, W, b, g, be):
        return jax.nn.relu(ln(dot(x, W) + b, g, be))

    x = llr(feats, P["Wp"], P["bp"], P["gp"], P["bep"])

    def block(x_inp, p, aggre_out):
        h = llr(x_inp, p["W1a"], p["b1a"], p["g1a"], p["be1a"])
        h = llr(h, p["W1b"], p["b1b"], p["g1b"], p["be1b"])
        hm = jnp.max(h, axis=1, keepdims=True)
        cat = jnp.concatenate([h, jnp.broadcast_to(hm, h.shape)], axis=-1)
        y = llr(cat, p["W2a"], p["b2a"], p["g2a"], p["be2a"])
        y = llr(y, p["W2b"], p["b2b"], p["g2b"], p["be2b"])
        out = ln(x_inp + y, p["gn"], p["bn"])
        return jnp.max(out, axis=1) if aggre_out else out

    x = block(x, P["b1"], aggre_out=False)
    x = block(x, P["b2"], aggre_out=True)   # torch .squeeze() on [N,1,H] -> [N,H]
    return x


# ----------------------------------- main -------------------------------------
if __name__ == "__main__":
    key = jax.random.PRNGKey(0)
    k_feat, k_par = jax.random.split(key)

    feats = jax.random.normal(k_feat, (N_LANES, L_PTS, IN_SIZE), dtype=jnp.float32)
    P = init_params(k_par)
    wsq, wwide, vec = pack_params(P)

    out = lanenet_pallas(feats, wsq, wwide, vec)
    out = jax.block_until_ready(out)
    assert out.shape == (N_LANES, HID)

    # Structural check: same math (bf16 matmul operands, f32 accum) in pure JAX.
    ref16 = jax.block_until_ready(lanenet_ref(feats, P, bf16_matmul=True))
    assert jnp.allclose(out, ref16, atol=5e-3, rtol=5e-3), \
        f"bf16-matched max abs err {float(jnp.max(jnp.abs(out - ref16)))}"

    # Module-semantics check: full-f32 reference; generous envelope for the
    # bf16 weight/activation quantization used on the MXU path.
    ref32 = jax.block_until_ready(lanenet_ref(feats, P, bf16_matmul=False))
    assert jnp.allclose(out, ref32, atol=1e-1, rtol=1e-1), \
        f"f32-reference max abs err {float(jnp.max(jnp.abs(out - ref32)))}"

    print("KERNEL_OK")
</pallas_src>

<mosaic_0001>
module attributes {stable_mosaic.version = 11 : i64} {
  func.func @lanenet_kernel(%arg0: i32, %arg1: memref<64x128xf32, #tpu.memory_space<vmem>>, %arg2: memref<7x128x128xbf16, #tpu.memory_space<vmem>>, %arg3: memref<2x256x128xbf16, #tpu.memory_space<vmem>>, %arg4: memref<32x128xf32, #tpu.memory_space<vmem>>, %arg5: memref<4x128xf32, #tpu.memory_space<vmem>>) attributes {dimension_semantics = [#tpu.dimension_semantics<arbitrary>], iteration_bounds = array<i64: 1>, scalar_prefetch = 0 : i64, scratch_operands = 0 : i64, tpu.core_type = #tpu.core_type<tc>, window_params = [{pipeline_mode = #tpu.pipeline_mode<synchronous>, transform_indices = @transform_0, window_bounds = array<i64: 64, 128>}, {pipeline_mode = #tpu.pipeline_mode<synchronous>, transform_indices = @transform_1, window_bounds = array<i64: 7, 128, 128>}, {pipeline_mode = #tpu.pipeline_mode<synchronous>, transform_indices = @transform_2, window_bounds = array<i64: 2, 256, 128>}, {pipeline_mode = #tpu.pipeline_mode<synchronous>, transform_indices = @transform_3, window_bounds = array<i64: 32, 128>}, {pipeline_mode = #tpu.pipeline_mode<synchronous>, transform_indices = @transform_4, window_bounds = array<i64: 4, 128>}]} {
    %c0 = arith.constant 0 : index
    %c0_0 = arith.constant 0 : index
    %0 = vector.load %arg1[%c0, %c0_0] : memref<64x128xf32, #tpu.memory_space<vmem>>, vector<64x128xf32>
    %c0_1 = arith.constant 0 : index
    %c0_2 = arith.constant 0 : index
    %c0_3 = arith.constant 0 : index
    %1 = vector.load %arg2[%c0_1, %c0_2, %c0_3] : memref<7x128x128xbf16, #tpu.memory_space<vmem>>, vector<1x128x128xbf16>
    %2 = vector.shape_cast %1 : vector<1x128x128xbf16> to vector<128x128xbf16>
    %3 = arith.truncf %0 : vector<64x128xf32> to vector<64x128xbf16>
    %cst = arith.constant dense<0.000000e+00> : vector<64x128xf32>
    %4 = tpu.matmul %3, %2, %cst {dimension_numbers = #tpu.dot_dimension_numbers<[1], [0], [0], [1], [0, 0, 1, 1], [], []>} : vector<64x128xbf16>, vector<128x128xbf16>, vector<64x128xf32> -> vector<64x128xf32>
    %c0_4 = arith.constant 0 : index
    %c0_5 = arith.constant 0 : index
    %5 = vector.load %arg4[%c0_4, %c0_5] : memref<32x128xf32, #tpu.memory_space<vmem>>, vector<1x128xf32>
    %6 = vector.broadcast %5 : vector<1x128xf32> to vector<64x128xf32>
    %7 = arith.addf %4, %6 : vector<64x128xf32>
    %cst_6 = arith.constant dense<0.000000e+00> : vector<64xf32>
    %8 = vector.multi_reduction <add>, %7, %cst_6 [1] : vector<64x128xf32> to vector<64xf32>
    %9 = vector.shape_cast %8 : vector<64xf32> to vector<64x1xf32>
    %10 = arith.mulf %7, %7 : vector<64x128xf32>
    %cst_7 = arith.constant dense<0.000000e+00> : vector<64xf32>
    %11 = vector.multi_reduction <add>, %10, %cst_7 [1] : vector<64x128xf32> to vector<64xf32>
    %12 = vector.shape_cast %11 : vector<64xf32> to vector<64x1xf32>
    %cst_8 = arith.constant 7.812500e-03 : f32
    %13 = vector.broadcast %cst_8 : f32 to vector<64x1xf32>
    %14 = arith.mulf %9, %13 : vector<64x1xf32>
    %cst_9 = arith.constant 7.812500e-03 : f32
    %15 = vector.broadcast %cst_9 : f32 to vector<64x1xf32>
    %16 = arith.mulf %12, %15 : vector<64x1xf32>
    %17 = arith.mulf %14, %14 : vector<64x1xf32>
    %18 = arith.subf %16, %17 : vector<64x1xf32>
    %19 = vector.broadcast %14 : vector<64x1xf32> to vector<64x128xf32>
    %20 = arith.subf %7, %19 : vector<64x128xf32>
    %cst_10 = arith.constant 9.99999974E-6 : f32
    %21 = vector.broadcast %cst_10 : f32 to vector<64x1xf32>
    %22 = arith.addf %18, %21 : vector<64x1xf32>
    %23 = math.rsqrt %22 : vector<64x1xf32>
    %24 = vector.broadcast %23 : vector<64x1xf32> to vector<64x128xf32>
    %25 = arith.mulf %20, %24 : vector<64x128xf32>
    %c1 = arith.constant 1 : index
    %c0_11 = arith.constant 0 : index
    %26 = vector.load %arg4[%c1, %c0_11] : memref<32x128xf32, #tpu.memory_space<vmem>>, vector<1x128xf32>
    %27 = vector.broadcast %26 : vector<1x128xf32> to vector<64x128xf32>
    %28 = arith.mulf %25, %27 : vector<64x128xf32>
    %c2 = arith.constant 2 : index
    %c0_12 = arith.constant 0 : index
    %29 = vector.load %arg4[%c2, %c0_12] : memref<32x128xf32, #tpu.memory_space<vmem>>, vector<1x128xf32>
    %30 = vector.broadcast %29 : vector<1x128xf32> to vector<64x128xf32>
    %31 = arith.addf %28, %30 : vector<64x128xf32>
    %cst_13 = arith.constant 0.000000e+00 : f32
    %32 = vector.broadcast %cst_13 : f32 to vector<64x128xf32>
    %33 = arith.maximumf %31, %32 : vector<64x128xf32>
    %c1_14 = arith.constant 1 : index
    %c0_15 = arith.constant 0 : index
    %c0_16 = arith.constant 0 : index
    %34 = vector.load %arg2[%c1_14, %c0_15, %c0_16] : memref<7x128x128xbf16, #tpu.memory_space<vmem>>, vector<1x128x128xbf16>
    %35 = vector.shape_cast %34 : vector<1x128x128xbf16> to vector<128x128xbf16>
    %36 = arith.truncf %33 : vector<64x128xf32> to vector<64x128xbf16>
    %cst_17 = arith.constant dense<0.000000e+00> : vector<64x128xf32>
    %37 = tpu.matmul %36, %35, %cst_17 {dimension_numbers = #tpu.dot_dimension_numbers<[1], [0], [0], [1], [0, 0, 1, 1], [], []>} : vector<64x128xbf16>, vector<128x128xbf16>, vector<64x128xf32> -> vector<64x128xf32>
    %c3 = arith.constant 3 : index
    %c0_18 = arith.constant 0 : index
    %38 = vector.load %arg4[%c3, %c0_18] : memref<32x128xf32, #tpu.memory_space<vmem>>, vector<1x128xf32>
    %39 = vector.broadcast %38 : vector<1x128xf32> to vector<64x128xf32>
    %40 = arith.addf %37, %39 : vector<64x128xf32>
    %cst_19 = arith.constant dense<0.000000e+00> : vector<64xf32>
    %41 = vector.multi_reduction <add>, %40, %cst_19 [1] : vector<64x128xf32> to vector<64xf32>
    %42 = vector.shape_cast %41 : vector<64xf32> to vector<64x1xf32>
    %43 = arith.mulf %40, %40 : vector<64x128xf32>
    %cst_20 = arith.constant dense<0.000000e+00> : vector<64xf32>
    %44 = vector.multi_reduction <add>, %43, %cst_20 [1] : vector<64x128xf32> to vector<64xf32>
    %45 = vector.shape_cast %44 : vector<64xf32> to vector<64x1xf32>
    %cst_21 = arith.constant 7.812500e-03 : f32
    %46 = vector.broadcast %cst_21 : f32 to vector<64x1xf32>
    %47 = arith.mulf %42, %46 : vector<64x1xf32>
    %cst_22 = arith.constant 7.812500e-03 : f32
    %48 = vector.broadcast %cst_22 : f32 to vector<64x1xf32>
    %49 = arith.mulf %45, %48 : vector<64x1xf32>
    %50 = arith.mulf %47, %47 : vector<64x1xf32>
    %51 = arith.subf %49, %50 : vector<64x1xf32>
    %52 = vector.broadcast %47 : vector<64x1xf32> to vector<64x128xf32>
    %53 = arith.subf %40, %52 : vector<64x128xf32>
    %cst_23 = arith.constant 9.99999974E-6 : f32
    %54 = vector.broadcast %cst_23 : f32 to vector<64x1xf32>
    %55 = arith.addf %51, %54 : vector<64x1xf32>
    %56 = math.rsqrt %55 : vector<64x1xf32>
    %57 = vector.broadcast %56 : vector<64x1xf32> to vector<64x128xf32>
    %58 = arith.mulf %53, %57 : vector<64x128xf32>
    %c4 = arith.constant 4 : index
    %c0_24 = arith.constant 0 : index
    %59 = vector.load %arg4[%c4, %c0_24] : memref<32x128xf32, #tpu.memory_space<vmem>>, vector<1x128xf32>
    %60 = vector.broadcast %59 : vector<1x128xf32> to vector<64x128xf32>
    %61 = arith.mulf %58, %60 : vector<64x128xf32>
    %c5 = arith.constant 5 : index
    %c0_25 = arith.constant 0 : index
    %62 = vector.load %arg4[%c5, %c0_25] : memref<32x128xf32, #tpu.memory_space<vmem>>, vector<1x128xf32>
    %63 = vector.broadcast %62 : vector<1x128xf32> to vector<64x128xf32>
    %64 = arith.addf %61, %63 : vector<64x128xf32>
    %cst_26 = arith.constant 0.000000e+00 : f32
    %65 = vector.broadcast %cst_26 : f32 to vector<64x128xf32>
    %66 = arith.maximumf %64, %65 : vector<64x128xf32>
    %c2_27 = arith.constant 2 : index
    %c0_28 = arith.constant 0 : index
    %c0_29 = arith.constant 0 : index
    %67 = vector.load %arg2[%c2_27, %c0_28, %c0_29] : memref<7x128x128xbf16, #tpu.memory_space<vmem>>, vector<1x128x128xbf16>
    %68 = vector.shape_cast %67 : vector<1x128x128xbf16> to vector<128x128xbf16>
    %69 = arith.truncf %66 : vector<64x128xf32> to vector<64x128xbf16>
    %cst_30 = arith.constant dense<0.000000e+00> : vector<64x128xf32>
    %70 = tpu.matmul %69, %68, %cst_30 {dimension_numbers = #tpu.dot_dimension_numbers<[1], [0], [0], [1], [0, 0, 1, 1], [], []>} : vector<64x128xbf16>, vector<128x128xbf16>, vector<64x128xf32> -> vector<64x128xf32>
    %c6 = arith.constant 6 : index
    %c0_31 = arith.constant 0 : index
    %71 = vector.load %arg4[%c6, %c0_31] : memref<32x128xf32, #tpu.memory_space<vmem>>, vector<1x128xf32>
    %72 = vector.broadcast %71 : vector<1x128xf32> to vector<64x128xf32>
    %73 = arith.addf %70, %72 : vector<64x128xf32>
    %cst_32 = arith.constant dense<0.000000e+00> : vector<64xf32>
    %74 = vector.multi_reduction <add>, %73, %cst_32 [1] : vector<64x128xf32> to vector<64xf32>
    %75 = vector.shape_cast %74 : vector<64xf32> to vector<64x1xf32>
    %76 = arith.mulf %73, %73 : vector<64x128xf32>
    %cst_33 = arith.constant dense<0.000000e+00> : vector<64xf32>
    %77 = vector.multi_reduction <add>, %76, %cst_33 [1] : vector<64x128xf32> to vector<64xf32>
    %78 = vector.shape_cast %77 : vector<64xf32> to vector<64x1xf32>
    %cst_34 = arith.constant 7.812500e-03 : f32
    %79 = vector.broadcast %cst_34 : f32 to vector<64x1xf32>
    %80 = arith.mulf %75, %79 : vector<64x1xf32>
    %cst_35 = arith.constant 7.812500e-03 : f32
    %81 = vector.broadcast %cst_35 : f32 to vector<64x1xf32>
    %82 = arith.mulf %78, %81 : vector<64x1xf32>
    %83 = arith.mulf %80, %80 : vector<64x1xf32>
    %84 = arith.subf %82, %83 : vector<64x1xf32>
    %85 = vector.broadcast %80 : vector<64x1xf32> to vector<64x128xf32>
    %86 = arith.subf %73, %85 : vector<64x128xf32>
    %cst_36 = arith.constant 9.99999974E-6 : f32
    %87 = vector.broadcast %cst_36 : f32 to vector<64x1xf32>
    %88 = arith.addf %84, %87 : vector<64x1xf32>
    %89 = math.rsqrt %88 : vector<64x1xf32>
    %90 = vector.broadcast %89 : vector<64x1xf32> to vector<64x128xf32>
    %91 = arith.mulf %86, %90 : vector<64x128xf32>
    %c7 = arith.constant 7 : index
    %c0_37 = arith.constant 0 : index
    %92 = vector.load %arg4[%c7, %c0_37] : memref<32x128xf32, #tpu.memory_space<vmem>>, vector<1x128xf32>
    %93 = vector.broadcast %92 : vector<1x128xf32> to vector<64x128xf32>
    %94 = arith.mulf %91, %93 : vector<64x128xf32>
    %c8 = arith.constant 8 : index
    %c0_38 = arith.constant 0 : index
    %95 = vector.load %arg4[%c8, %c0_38] : memref<32x128xf32, #tpu.memory_space<vmem>>, vector<1x128xf32>
    %96 = vector.broadcast %95 : vector<1x128xf32> to vector<64x128xf32>
    %97 = arith.addf %94, %96 : vector<64x128xf32>
    %cst_39 = arith.constant 0.000000e+00 : f32
    %98 = vector.broadcast %cst_39 : f32 to vector<64x128xf32>
    %99 = arith.maximumf %97, %98 : vector<64x128xf32>
    %100 = vector.extract_strided_slice %99 {offsets = [0, 0], sizes = [16, 128], strides = [1, 1]} : vector<64x128xf32> to vector<16x128xf32>
    %cst_40 = arith.constant dense<0xFF800000> : vector<128xf32>
    %101 = vector.multi_reduction <maximumf>, %100, %cst_40 [0] : vector<16x128xf32> to vector<128xf32>
    %102 = vector.shape_cast %101 : vector<128xf32> to vector<1x128xf32>
    %103 = vector.extract_strided_slice %99 {offsets = [16, 0], sizes = [16, 128], strides = [1, 1]} : vector<64x128xf32> to vector<16x128xf32>
    %cst_41 = arith.constant dense<0xFF800000> : vector<128xf32>
    %104 = vector.multi_reduction <maximumf>, %103, %cst_41 [0] : vector<16x128xf32> to vector<128xf32>
    %105 = vector.shape_cast %104 : vector<128xf32> to vector<1x128xf32>
    %106 = vector.extract_strided_slice %99 {offsets = [32, 0], sizes = [16, 128], strides = [1, 1]} : vector<64x128xf32> to vector<16x128xf32>
    %cst_42 = arith.constant dense<0xFF800000> : vector<128xf32>
    %107 = vector.multi_reduction <maximumf>, %106, %cst_42 [0] : vector<16x128xf32> to vector<128xf32>
    %108 = vector.shape_cast %107 : vector<128xf32> to vector<1x128xf32>
    %109 = vector.extract_strided_slice %99 {offsets = [48, 0], sizes = [16, 128], strides = [1, 1]} : vector<64x128xf32> to vector<16x128xf32>
    %cst_43 = arith.constant dense<0xFF800000> : vector<128xf32>
    %110 = vector.multi_reduction <maximumf>, %109, %cst_43 [0] : vector<16x128xf32> to vector<128xf32>
    %111 = vector.shape_cast %110 : vector<128xf32> to vector<1x128xf32>
    %112 = vector.shape_cast %102 : vector<1x128xf32> to vector<1x128xf32>
    %113 = vector.broadcast %112 : vector<1x128xf32> to vector<16x128xf32>
    %114 = vector.shape_cast %105 : vector<1x128xf32> to vector<1x128xf32>
    %115 = vector.broadcast %114 : vector<1x128xf32> to vector<16x128xf32>
    %116 = vector.shape_cast %108 : vector<1x128xf32> to vector<1x128xf32>
    %117 = vector.broadcast %116 : vector<1x128xf32> to vector<16x128xf32>
    %118 = vector.shape_cast %111 : vector<1x128xf32> to vector<1x128xf32>
    %119 = vector.broadcast %118 : vector<1x128xf32> to vector<16x128xf32>
    %120 = tpu.concatenate %113, %115, %117, %119 in 0 : vector<16x128xf32>, vector<16x128xf32>, vector<16x128xf32>, vector<16x128xf32> -> vector<64x128xf32>
    %121 = tpu.concatenate %99, %120 in 1 : vector<64x128xf32>, vector<64x128xf32> -> vector<64x256xf32>
    %c0_44 = arith.constant 0 : index
    %c0_45 = arith.constant 0 : index
    %c0_46 = arith.constant 0 : index
    %122 = vector.load %arg3[%c0_44, %c0_45, %c0_46] : memref<2x256x128xbf16, #tpu.memory_space<vmem>>, vector<1x256x128xbf16>
    %123 = vector.shape_cast %122 : vector<1x256x128xbf16> to vector<256x128xbf16>
    %124 = arith.truncf %121 : vector<64x256xf32> to vector<64x256xbf16>
    %cst_47 = arith.constant dense<0.000000e+00> : vector<64x128xf32>
    %125 = tpu.matmul %124, %123, %cst_47 {dimension_numbers = #tpu.dot_dimension_numbers<[1], [0], [0], [1], [0, 0, 1, 1], [], []>} : vector<64x256xbf16>, vector<256x128xbf16>, vector<64x128xf32> -> vector<64x128xf32>
    %c9 = arith.constant 9 : index
    %c0_48 = arith.constant 0 : index
    %126 = vector.load %arg4[%c9, %c0_48] : memref<32x128xf32, #tpu.memory_space<vmem>>, vector<1x128xf32>
    %127 = vector.broadcast %126 : vector<1x128xf32> to vector<64x128xf32>
    %128 = arith.addf %125, %127 : vector<64x128xf32>
    %cst_49 = arith.constant dense<0.000000e+00> : vector<64xf32>
    %129 = vector.multi_reduction <add>, %128, %cst_49 [1] : vector<64x128xf32> to vector<64xf32>
    %130 = vector.shape_cast %129 : vector<64xf32> to vector<64x1xf32>
    %131 = arith.mulf %128, %128 : vector<64x128xf32>
    %cst_50 = arith.constant dense<0.000000e+00> : vector<64xf32>
    %132 = vector.multi_reduction <add>, %131, %cst_50 [1] : vector<64x128xf32> to vector<64xf32>
    %133 = vector.shape_cast %132 : vector<64xf32> to vector<64x1xf32>
    %cst_51 = arith.constant 7.812500e-03 : f32
    %134 = vector.broadcast %cst_51 : f32 to vector<64x1xf32>
    %135 = arith.mulf %130, %134 : vector<64x1xf32>
    %cst_52 = arith.constant 7.812500e-03 : f32
    %136 = vector.broadcast %cst_52 : f32 to vector<64x1xf32>
    %137 = arith.mulf %133, %136 : vector<64x1xf32>
    %138 = arith.mulf %135, %135 : vector<64x1xf32>
    %139 = arith.subf %137, %138 : vector<64x1xf32>
    %140 = vector.broadcast %135 : vector<64x1xf32> to vector<64x128xf32>
    %141 = arith.subf %128, %140 : vector<64x128xf32>
    %cst_53 = arith.constant 9.99999974E-6 : f32
    %142 = vector.broadcast %cst_53 : f32 to vector<64x1xf32>
    %143 = arith.addf %139, %142 : vector<64x1xf32>
    %144 = math.rsqrt %143 : vector<64x1xf32>
    %145 = vector.broadcast %144 : vector<64x1xf32> to vector<64x128xf32>
    %146 = arith.mulf %141, %145 : vector<64x128xf32>
    %c10 = arith.constant 10 : index
    %c0_54 = arith.constant 0 : index
    %147 = vector.load %arg4[%c10, %c0_54] : memref<32x128xf32, #tpu.memory_space<vmem>>, vector<1x128xf32>
    %148 = vector.broadcast %147 : vector<1x128xf32> to vector<64x128xf32>
    %149 = arith.mulf %146, %148 : vector<64x128xf32>
    %c11 = arith.constant 11 : index
    %c0_55 = arith.constant 0 : index
    %150 = vector.load %arg4[%c11, %c0_55] : memref<32x128xf32, #tpu.memory_space<vmem>>, vector<1x128xf32>
    %151 = vector.broadcast %150 : vector<1x128xf32> to vector<64x128xf32>
    %152 = arith.addf %149, %151 : vector<64x128xf32>
    %cst_56 = arith.constant 0.000000e+00 : f32
    %153 = vector.broadcast %cst_56 : f32 to vector<64x128xf32>
    %154 = arith.maximumf %152, %153 : vector<64x128xf32>
    %c3_57 = arith.constant 3 : index
    %c0_58 = arith.constant 0 : index
    %c0_59 = arith.constant 0 : index
    %155 = vector.load %arg2[%c3_57, %c0_58, %c0_59] : memref<7x128x128xbf16, #tpu.memory_space<vmem>>, vector<1x128x128xbf16>
    %156 = vector.shape_cast %155 : vector<1x128x128xbf16> to vector<128x128xbf16>
    %157 = arith.truncf %154 : vector<64x128xf32> to vector<64x128xbf16>
    %cst_60 = arith.constant dense<0.000000e+00> : vector<64x128xf32>
    %158 = tpu.matmul %157, %156, %cst_60 {dimension_numbers = #tpu.dot_dimension_numbers<[1], [0], [0], [1], [0, 0, 1, 1], [], []>} : vector<64x128xbf16>, vector<128x128xbf16>, vector<64x128xf32> -> vector<64x128xf32>
    %c12 = arith.constant 12 : index
    %c0_61 = arith.constant 0 : index
    %159 = vector.load %arg4[%c12, %c0_61] : memref<32x128xf32, #tpu.memory_space<vmem>>, vector<1x128xf32>
    %160 = vector.broadcast %159 : vector<1x128xf32> to vector<64x128xf32>
    %161 = arith.addf %158, %160 : vector<64x128xf32>
    %cst_62 = arith.constant dense<0.000000e+00> : vector<64xf32>
    %162 = vector.multi_reduction <add>, %161, %cst_62 [1] : vector<64x128xf32> to vector<64xf32>
    %163 = vector.shape_cast %162 : vector<64xf32> to vector<64x1xf32>
    %164 = arith.mulf %161, %161 : vector<64x128xf32>
    %cst_63 = arith.constant dense<0.000000e+00> : vector<64xf32>
    %165 = vector.multi_reduction <add>, %164, %cst_63 [1] : vector<64x128xf32> to vector<64xf32>
    %166 = vector.shape_cast %165 : vector<64xf32> to vector<64x1xf32>
    %cst_64 = arith.constant 7.812500e-03 : f32
    %167 = vector.broadcast %cst_64 : f32 to vector<64x1xf32>
    %168 = arith.mulf %163, %167 : vector<64x1xf32>
    %cst_65 = arith.constant 7.812500e-03 : f32
    %169 = vector.broadcast %cst_65 : f32 to vector<64x1xf32>
    %170 = arith.mulf %166, %169 : vector<64x1xf32>
    %171 = arith.mulf %168, %168 : vector<64x1xf32>
    %172 = arith.subf %170, %171 : vector<64x1xf32>
    %173 = vector.broadcast %168 : vector<64x1xf32> to vector<64x128xf32>
    %174 = arith.subf %161, %173 : vector<64x128xf32>
    %cst_66 = arith.constant 9.99999974E-6 : f32
    %175 = vector.broadcast %cst_66 : f32 to vector<64x1xf32>
    %176 = arith.addf %172, %175 : vector<64x1xf32>
    %177 = math.rsqrt %176 : vector<64x1xf32>
    %178 = vector.broadcast %177 : vector<64x1xf32> to vector<64x128xf32>
    %179 = arith.mulf %174, %178 : vector<64x128xf32>
    %c13 = arith.constant 13 : index
    %c0_67 = arith.constant 0 : index
    %180 = vector.load %arg4[%c13, %c0_67] : memref<32x128xf32, #tpu.memory_space<vmem>>, vector<1x128xf32>
    %181 = vector.broadcast %180 : vector<1x128xf32> to vector<64x128xf32>
    %182 = arith.mulf %179, %181 : vector<64x128xf32>
    %c14 = arith.constant 14 : index
    %c0_68 = arith.constant 0 : index
    %183 = vector.load %arg4[%c14, %c0_68] : memref<32x128xf32, #tpu.memory_space<vmem>>, vector<1x128xf32>
    %184 = vector.broadcast %183 : vector<1x128xf32> to vector<64x128xf32>
    %185 = arith.addf %182, %184 : vector<64x128xf32>
    %cst_69 = arith.constant 0.000000e+00 : f32
    %186 = vector.broadcast %cst_69 : f32 to vector<64x128xf32>
    %187 = arith.maximumf %185, %186 : vector<64x128xf32>
    %188 = arith.addf %33, %187 : vector<64x128xf32>
    %cst_70 = arith.constant dense<0.000000e+00> : vector<64xf32>
    %189 = vector.multi_reduction <add>, %188, %cst_70 [1] : vector<64x128xf32> to vector<64xf32>
    %190 = vector.shape_cast %189 : vector<64xf32> to vector<64x1xf32>
    %191 = arith.mulf %188, %188 : vector<64x128xf32>
    %cst_71 = arith.constant dense<0.000000e+00> : vector<64xf32>
    %192 = vector.multi_reduction <add>, %191, %cst_71 [1] : vector<64x128xf32> to vector<64xf32>
    %193 = vector.shape_cast %192 : vector<64xf32> to vector<64x1xf32>
    %cst_72 = arith.constant 7.812500e-03 : f32
    %194 = vector.broadcast %cst_72 : f32 to vector<64x1xf32>
    %195 = arith.mulf %190, %194 : vector<64x1xf32>
    %cst_73 = arith.constant 7.812500e-03 : f32
    %196 = vector.broadcast %cst_73 : f32 to vector<64x1xf32>
    %197 = arith.mulf %193, %196 : vector<64x1xf32>
    %198 = arith.mulf %195, %195 : vector<64x1xf32>
    %199 = arith.subf %197, %198 : vector<64x1xf32>
    %200 = vector.broadcast %195 : vector<64x1xf32> to vector<64x128xf32>
    %201 = arith.subf %188, %200 : vector<64x128xf32>
    %cst_74 = arith.constant 9.99999974E-6 : f32
    %202 = vector.broadcast %cst_74 : f32 to vector<64x1xf32>
    %203 = arith.addf %199, %202 : vector<64x1xf32>
    %204 = math.rsqrt %203 : vector<64x1xf32>
    %205 = vector.broadcast %204 : vector<64x1xf32> to vector<64x128xf32>
    %206 = arith.mulf %201, %205 : vector<64x128xf32>
    %c15 = arith.constant 15 : index
    %c0_75 = arith.constant 0 : index
    %207 = vector.load %arg4[%c15, %c0_75] : memref<32x128xf32, #tpu.memory_space<vmem>>, vector<1x128xf32>
    %208 = vector.broadcast %207 : vector<1x128xf32> to vector<64x128xf32>
    %209 = arith.mulf %206, %208 : vector<64x128xf32>
    %c16 = arith.constant 16 : index
    %c0_76 = arith.constant 0 : index
    %210 = vector.load %arg4[%c16, %c0_76] : memref<32x128xf32, #tpu.memory_space<vmem>>, vector<1x128xf32>
    %211 = vector.broadcast %210 : vector<1x128xf32> to vector<64x128xf32>
    %212 = arith.addf %209, %211 : vector<64x128xf32>
    %c4_77 = arith.constant 4 : index
    %c0_78 = arith.constant 0 : index
    %c0_79 = arith.constant 0 : index
    %213 = vector.load %arg2[%c4_77, %c0_78, %c0_79] : memref<7x128x128xbf16, #tpu.memory_space<vmem>>, vector<1x128x128xbf16>
    %214 = vector.shape_cast %213 : vector<1x128x128xbf16> to vector<128x128xbf16>
    %215 = arith.truncf %212 : vector<64x128xf32> to vector<64x128xbf16>
    %cst_80 = arith.constant dense<0.000000e+00> : vector<64x128xf32>
    %216 = tpu.matmul %215, %214, %cst_80 {dimension_numbers = #tpu.dot_dimension_numbers<[1], [0], [0], [1], [0, 0, 1, 1], [], []>} : vector<64x128xbf16>, vector<128x128xbf16>, vector<64x128xf32> -> vector<64x128xf32>
    %c17 = arith.constant 17 : index
    %c0_81 = arith.constant 0 : index
    %217 = vector.load %arg4[%c17, %c0_81] : memref<32x128xf32, #tpu.memory_space<vmem>>, vector<1x128xf32>
    %218 = vector.broadcast %217 : vector<1x128xf32> to vector<64x128xf32>
    %219 = arith.addf %216, %218 : vector<64x128xf32>
    %cst_82 = arith.constant dense<0.000000e+00> : vector<64xf32>
    %220 = vector.multi_reduction <add>, %219, %cst_82 [1] : vector<64x128xf32> to vector<64xf32>
    %221 = vector.shape_cast %220 : vector<64xf32> to vector<64x1xf32>
    %222 = arith.mulf %219, %219 : vector<64x128xf32>
    %cst_83 = arith.constant dense<0.000000e+00> : vector<64xf32>
    %223 = vector.multi_reduction <add>, %222, %cst_83 [1] : vector<64x128xf32> to vector<64xf32>
    %224 = vector.shape_cast %223 : vector<64xf32> to vector<64x1xf32>
    %cst_84 = arith.constant 7.812500e-03 : f32
    %225 = vector.broadcast %cst_84 : f32 to vector<64x1xf32>
    %226 = arith.mulf %221, %225 : vector<64x1xf32>
    %cst_85 = arith.constant 7.812500e-03 : f32
    %227 = vector.broadcast %cst_85 : f32 to vector<64x1xf32>
    %228 = arith.mulf %224, %227 : vector<64x1xf32>
    %229 = arith.mulf %226, %226 : vector<64x1xf32>
    %230 = arith.subf %228, %229 : vector<64x1xf32>
    %231 = vector.broadcast %226 : vector<64x1xf32> to vector<64x128xf32>
    %232 = arith.subf %219, %231 : vector<64x128xf32>
    %cst_86 = arith.constant 9.99999974E-6 : f32
    %233 = vector.broadcast %cst_86 : f32 to vector<64x1xf32>
    %234 = arith.addf %230, %233 : vector<64x1xf32>
    %235 = math.rsqrt %234 : vector<64x1xf32>
    %236 = vector.broadcast %235 : vector<64x1xf32> to vector<64x128xf32>
    %237 = arith.mulf %232, %236 : vector<64x128xf32>
    %c18 = arith.constant 18 : index
    %c0_87 = arith.constant 0 : index
    %238 = vector.load %arg4[%c18, %c0_87] : memref<32x128xf32, #tpu.memory_space<vmem>>, vector<1x128xf32>
    %239 = vector.broadcast %238 : vector<1x128xf32> to vector<64x128xf32>
    %240 = arith.mulf %237, %239 : vector<64x128xf32>
    %c19 = arith.constant 19 : index
    %c0_88 = arith.constant 0 : index
    %241 = vector.load %arg4[%c19, %c0_88] : memref<32x128xf32, #tpu.memory_space<vmem>>, vector<1x128xf32>
    %242 = vector.broadcast %241 : vector<1x128xf32> to vector<64x128xf32>
    %243 = arith.addf %240, %242 : vector<64x128xf32>
    %cst_89 = arith.constant 0.000000e+00 : f32
    %244 = vector.broadcast %cst_89 : f32 to vector<64x128xf32>
    %245 = arith.maximumf %243, %244 : vector<64x128xf32>
    %c5_90 = arith.constant 5 : index
    %c0_91 = arith.constant 0 : index
    %c0_92 = arith.constant 0 : index
    %246 = vector.load %arg2[%c5_90, %c0_91, %c0_92] : memref<7x128x128xbf16, #tpu.memory_space<vmem>>, vector<1x128x128xbf16>
    %247 = vector.shape_cast %246 : vector<1x128x128xbf16> to vector<128x128xbf16>
    %248 = arith.truncf %245 : vector<64x128xf32> to vector<64x128xbf16>
    %cst_93 = arith.constant dense<0.000000e+00> : vector<64x128xf32>
    %249 = tpu.matmul %248, %247, %cst_93 {dimension_numbers = #tpu.dot_dimension_numbers<[1], [0], [0], [1], [0, 0, 1, 1], [], []>} : vector<64x128xbf16>, vector<128x128xbf16>, vector<64x128xf32> -> vector<64x128xf32>
    %c20 = arith.constant 20 : index
    %c0_94 = arith.constant 0 : index
    %250 = vector.load %arg4[%c20, %c0_94] : memref<32x128xf32, #tpu.memory_space<vmem>>, vector<1x128xf32>
    %251 = vector.broadcast %250 : vector<1x128xf32> to vector<64x128xf32>
    %252 = arith.addf %249, %251 : vector<64x128xf32>
    %cst_95 = arith.constant dense<0.000000e+00> : vector<64xf32>
    %253 = vector.multi_reduction <add>, %252, %cst_95 [1] : vector<64x128xf32> to vector<64xf32>
    %254 = vector.shape_cast %253 : vector<64xf32> to vector<64x1xf32>
    %255 = arith.mulf %252, %252 : vector<64x128xf32>
    %cst_96 = arith.constant dense<0.000000e+00> : vector<64xf32>
    %256 = vector.multi_reduction <add>, %255, %cst_96 [1] : vector<64x128xf32> to vector<64xf32>
    %257 = vector.shape_cast %256 : vector<64xf32> to vector<64x1xf32>
    %cst_97 = arith.constant 7.812500e-03 : f32
    %258 = vector.broadcast %cst_97 : f32 to vector<64x1xf32>
    %259 = arith.mulf %254, %258 : vector<64x1xf32>
    %cst_98 = arith.constant 7.812500e-03 : f32
    %260 = vector.broadcast %cst_98 : f32 to vector<64x1xf32>
    %261 = arith.mulf %257, %260 : vector<64x1xf32>
    %262 = arith.mulf %259, %259 : vector<64x1xf32>
    %263 = arith.subf %261, %262 : vector<64x1xf32>
    %264 = vector.broadcast %259 : vector<64x1xf32> to vector<64x128xf32>
    %265 = arith.subf %252, %264 : vector<64x128xf32>
    %cst_99 = arith.constant 9.99999974E-6 : f32
    %266 = vector.broadcast %cst_99 : f32 to vector<64x1xf32>
    %267 = arith.addf %263, %266 : vector<64x1xf32>
    %268 = math.rsqrt %267 : vector<64x1xf32>
    %269 = vector.broadcast %268 : vector<64x1xf32> to vector<64x128xf32>
    %270 = arith.mulf %265, %269 : vector<64x128xf32>
    %c21 = arith.constant 21 : index
    %c0_100 = arith.constant 0 : index
    %271 = vector.load %arg4[%c21, %c0_100] : memref<32x128xf32, #tpu.memory_space<vmem>>, vector<1x128xf32>
    %272 = vector.broadcast %271 : vector<1x128xf32> to vector<64x128xf32>
    %273 = arith.mulf %270, %272 : vector<64x128xf32>
    %c22 = arith.constant 22 : index
    %c0_101 = arith.constant 0 : index
    %274 = vector.load %arg4[%c22, %c0_101] : memref<32x128xf32, #tpu.memory_space<vmem>>, vector<1x128xf32>
    %275 = vector.broadcast %274 : vector<1x128xf32> to vector<64x128xf32>
    %276 = arith.addf %273, %275 : vector<64x128xf32>
    %cst_102 = arith.constant 0.000000e+00 : f32
    %277 = vector.broadcast %cst_102 : f32 to vector<64x128xf32>
    %278 = arith.maximumf %276, %277 : vector<64x128xf32>
    %279 = vector.extract_strided_slice %278 {offsets = [0, 0], sizes = [16, 128], strides = [1, 1]} : vector<64x128xf32> to vector<16x128xf32>
    %cst_103 = arith.constant dense<0xFF800000> : vector<128xf32>
    %280 = vector.multi_reduction <maximumf>, %279, %cst_103 [0] : vector<16x128xf32> to vector<128xf32>
    %281 = vector.shape_cast %280 : vector<128xf32> to vector<1x128xf32>
    %282 = vector.extract_strided_slice %278 {offsets = [16, 0], sizes = [16, 128], strides = [1, 1]} : vector<64x128xf32> to vector<16x128xf32>
    %cst_104 = arith.constant dense<0xFF800000> : vector<128xf32>
    %283 = vector.multi_reduction <maximumf>, %282, %cst_104 [0] : vector<16x128xf32> to vector<128xf32>
    %284 = vector.shape_cast %283 : vector<128xf32> to vector<1x128xf32>
    %285 = vector.extract_strided_slice %278 {offsets = [32, 0], sizes = [16, 128], strides = [1, 1]} : vector<64x128xf32> to vector<16x128xf32>
    %cst_105 = arith.constant dense<0xFF800000> : vector<128xf32>
    %286 = vector.multi_reduction <maximumf>, %285, %cst_105 [0] : vector<16x128xf32> to vector<128xf32>
    %287 = vector.shape_cast %286 : vector<128xf32> to vector<1x128xf32>
    %288 = vector.extract_strided_slice %278 {offsets = [48, 0], sizes = [16, 128], strides = [1, 1]} : vector<64x128xf32> to vector<16x128xf32>
    %cst_106 = arith.constant dense<0xFF800000> : vector<128xf32>
    %289 = vector.multi_reduction <maximumf>, %288, %cst_106 [0] : vector<16x128xf32> to vector<128xf32>
    %290 = vector.shape_cast %289 : vector<128xf32> to vector<1x128xf32>
    %291 = vector.shape_cast %281 : vector<1x128xf32> to vector<1x128xf32>
    %292 = vector.broadcast %291 : vector<1x128xf32> to vector<16x128xf32>
    %293 = vector.shape_cast %284 : vector<1x128xf32> to vector<1x128xf32>
    %294 = vector.broadcast %293 : vector<1x128xf32> to vector<16x128xf32>
    %295 = vector.shape_cast %287 : vector<1x128xf32> to vector<1x128xf32>
    %296 = vector.broadcast %295 : vector<1x128xf32> to vector<16x128xf32>
    %297 = vector.shape_cast %290 : vector<1x128xf32> to vector<1x128xf32>
    %298 = vector.broadcast %297 : vector<1x128xf32> to vector<16x128xf32>
    %299 = tpu.concatenate %292, %294, %296, %298 in 0 : vector<16x128xf32>, vector<16x128xf32>, vector<16x128xf32>, vector<16x128xf32> -> vector<64x128xf32>
    %300 = tpu.concatenate %278, %299 in 1 : vector<64x128xf32>, vector<64x128xf32> -> vector<64x256xf32>
    %c1_107 = arith.constant 1 : index
    %c0_108 = arith.constant 0 : index
    %c0_109 = arith.constant 0 : index
    %301 = vector.load %arg3[%c1_107, %c0_108, %c0_109] : memref<2x256x128xbf16, #tpu.memory_space<vmem>>, vector<1x256x128xbf16>
    %302 = vector.shape_cast %301 : vector<1x256x128xbf16> to vector<256x128xbf16>
    %303 = arith.truncf %300 : vector<64x256xf32> to vector<64x256xbf16>
    %cst_110 = arith.constant dense<0.000000e+00> : vector<64x128xf32>
    %304 = tpu.matmul %303, %302, %cst_110 {dimension_numbers = #tpu.dot_dimension_numbers<[1], [0], [0], [1], [0, 0, 1, 1], [], []>} : vector<64x256xbf16>, vector<256x128xbf16>, vector<64x128xf32> -> vector<64x128xf32>
    %c23 = arith.constant 23 : index
    %c0_111 = arith.constant 0 : index
    %305 = vector.load %arg4[%c23, %c0_111] : memref<32x128xf32, #tpu.memory_space<vmem>>, vector<1x128xf32>
    %306 = vector.broadcast %305 : vector<1x128xf32> to vector<64x128xf32>
    %307 = arith.addf %304, %306 : vector<64x128xf32>
    %cst_112 = arith.constant dense<0.000000e+00> : vector<64xf32>
    %308 = vector.multi_reduction <add>, %307, %cst_112 [1] : vector<64x128xf32> to vector<64xf32>
    %309 = vector.shape_cast %308 : vector<64xf32> to vector<64x1xf32>
    %310 = arith.mulf %307, %307 : vector<64x128xf32>
    %cst_113 = arith.constant dense<0.000000e+00> : vector<64xf32>
    %311 = vector.multi_reduction <add>, %310, %cst_113 [1] : vector<64x128xf32> to vector<64xf32>
    %312 = vector.shape_cast %311 : vector<64xf32> to vector<64x1xf32>
    %cst_114 = arith.constant 7.812500e-03 : f32
    %313 = vector.broadcast %cst_114 : f32 to vector<64x1xf32>
    %314 = arith.mulf %309, %313 : vector<64x1xf32>
    %cst_115 = arith.constant 7.812500e-03 : f32
    %315 = vector.broadcast %cst_115 : f32 to vector<64x1xf32>
    %316 = arith.mulf %312, %315 : vector<64x1xf32>
    %317 = arith.mulf %314, %314 : vector<64x1xf32>
    %318 = arith.subf %316, %317 : vector<64x1xf32>
    %319 = vector.broadcast %314 : vector<64x1xf32> to vector<64x128xf32>
    %320 = arith.subf %307, %319 : vector<64x128xf32>
    %cst_116 = arith.constant 9.99999974E-6 : f32
    %321 = vector.broadcast %cst_116 : f32 to vector<64x1xf32>
    %322 = arith.addf %318, %321 : vector<64x1xf32>
    %323 = math.rsqrt %322 : vector<64x1xf32>
    %324 = vector.broadcast %323 : vector<64x1xf32> to vector<64x128xf32>
    %325 = arith.mulf %320, %324 : vector<64x128xf32>
    %c24 = arith.constant 24 : index
    %c0_117 = arith.constant 0 : index
    %326 = vector.load %arg4[%c24, %c0_117] : memref<32x128xf32, #tpu.memory_space<vmem>>, vector<1x128xf32>
    %327 = vector.broadcast %326 : vector<1x128xf32> to vector<64x128xf32>
    %328 = arith.mulf %325, %327 : vector<64x128xf32>
    %c25 = arith.constant 25 : index
    %c0_118 = arith.constant 0 : index
    %329 = vector.load %arg4[%c25, %c0_118] : memref<32x128xf32, #tpu.memory_space<vmem>>, vector<1x128xf32>
    %330 = vector.broadcast %329 : vector<1x128xf32> to vector<64x128xf32>
    %331 = arith.addf %328, %330 : vector<64x128xf32>
    %cst_119 = arith.constant 0.000000e+00 : f32
    %332 = vector.broadcast %cst_119 : f32 to vector<64x128xf32>
    %333 = arith.maximumf %331, %332 : vector<64x128xf32>
    %c6_120 = arith.constant 6 : index
    %c0_121 = arith.constant 0 : index
    %c0_122 = arith.constant 0 : index
    %334 = vector.load %arg2[%c6_120, %c0_121, %c0_122] : memref<7x128x128xbf16, #tpu.memory_space<vmem>>, vector<1x128x128xbf16>
    %335 = vector.shape_cast %334 : vector<1x128x128xbf16> to vector<128x128xbf16>
    %336 = arith.truncf %333 : vector<64x128xf32> to vector<64x128xbf16>
    %cst_123 = arith.constant dense<0.000000e+00> : vector<64x128xf32>
    %337 = tpu.matmul %336, %335, %cst_123 {dimension_numbers = #tpu.dot_dimension_numbers<[1], [0], [0], [1], [0, 0, 1, 1], [], []>} : vector<64x128xbf16>, vector<128x128xbf16>, vector<64x128xf32> -> vector<64x128xf32>
    %c26 = arith.constant 26 : index
    %c0_124 = arith.constant 0 : index
    %338 = vector.load %arg4[%c26, %c0_124] : memref<32x128xf32, #tpu.memory_space<vmem>>, vector<1x128xf32>
    %339 = vector.broadcast %338 : vector<1x128xf32> to vector<64x128xf32>
    %340 = arith.addf %337, %339 : vector<64x128xf32>
    %cst_125 = arith.constant dense<0.000000e+00> : vector<64xf32>
    %341 = vector.multi_reduction <add>, %340, %cst_125 [1] : vector<64x128xf32> to vector<64xf32>
    %342 = vector.shape_cast %341 : vector<64xf32> to vector<64x1xf32>
    %343 = arith.mulf %340, %340 : vector<64x128xf32>
    %cst_126 = arith.constant dense<0.000000e+00> : vector<64xf32>
    %344 = vector.multi_reduction <add>, %343, %cst_126 [1] : vector<64x128xf32> to vector<64xf32>
    %345 = vector.shape_cast %344 : vector<64xf32> to vector<64x1xf32>
    %cst_127 = arith.constant 7.812500e-03 : f32
    %346 = vector.broadcast %cst_127 : f32 to vector<64x1xf32>
    %347 = arith.mulf %342, %346 : vector<64x1xf32>
    %cst_128 = arith.constant 7.812500e-03 : f32
    %348 = vector.broadcast %cst_128 : f32 to vector<64x1xf32>
    %349 = arith.mulf %345, %348 : vector<64x1xf32>
    %350 = arith.mulf %347, %347 : vector<64x1xf32>
    %351 = arith.subf %349, %350 : vector<64x1xf32>
    %352 = vector.broadcast %347 : vector<64x1xf32> to vector<64x128xf32>
    %353 = arith.subf %340, %352 : vector<64x128xf32>
    %cst_129 = arith.constant 9.99999974E-6 : f32
    %354 = vector.broadcast %cst_129 : f32 to vector<64x1xf32>
    %355 = arith.addf %351, %354 : vector<64x1xf32>
    %356 = math.rsqrt %355 : vector<64x1xf32>
    %357 = vector.broadcast %356 : vector<64x1xf32> to vector<64x128xf32>
    %358 = arith.mulf %353, %357 : vector<64x128xf32>
    %c27 = arith.constant 27 : index
    %c0_130 = arith.constant 0 : index
    %359 = vector.load %arg4[%c27, %c0_130] : memref<32x128xf32, #tpu.memory_space<vmem>>, vector<1x128xf32>
    %360 = vector.broadcast %359 : vector<1x128xf32> to vector<64x128xf32>
    %361 = arith.mulf %358, %360 : vector<64x128xf32>
    %c28 = arith.constant 28 : index
    %c0_131 = arith.constant 0 : index
    %362 = vector.load %arg4[%c28, %c0_131] : memref<32x128xf32, #tpu.memory_space<vmem>>, vector<1x128xf32>
    %363 = vector.broadcast %362 : vector<1x128xf32> to vector<64x128xf32>
    %364 = arith.addf %361, %363 : vector<64x128xf32>
    %cst_132 = arith.constant 0.000000e+00 : f32
    %365 = vector.broadcast %cst_132 : f32 to vector<64x128xf32>
    %366 = arith.maximumf %364, %365 : vector<64x128xf32>
    %367 = arith.addf %212, %366 : vector<64x128xf32>
    %cst_133 = arith.constant dense<0.000000e+00> : vector<64xf32>
    %368 = vector.multi_reduction <add>, %367, %cst_133 [1] : vector<64x128xf32> to vector<64xf32>
    %369 = vector.shape_cast %368 : vector<64xf32> to vector<64x1xf32>
    %370 = arith.mulf %367, %367 : vector<64x128xf32>
    %cst_134 = arith.constant dense<0.000000e+00> : vector<64xf32>
    %371 = vector.multi_reduction <add>, %370, %cst_134 [1] : vector<64x128xf32> to vector<64xf32>
    %372 = vector.shape_cast %371 : vector<64xf32> to vector<64x1xf32>
    %cst_135 = arith.constant 7.812500e-03 : f32
    %373 = vector.broadcast %cst_135 : f32 to vector<64x1xf32>
    %374 = arith.mulf %369, %373 : vector<64x1xf32>
    %cst_136 = arith.constant 7.812500e-03 : f32
    %375 = vector.broadcast %cst_136 : f32 to vector<64x1xf32>
    %376 = arith.mulf %372, %375 : vector<64x1xf32>
    %377 = arith.mulf %374, %374 : vector<64x1xf32>
    %378 = arith.subf %376, %377 : vector<64x1xf32>
    %379 = vector.broadcast %374 : vector<64x1xf32> to vector<64x128xf32>
    %380 = arith.subf %367, %379 : vector<64x128xf32>
    %cst_137 = arith.constant 9.99999974E-6 : f32
    %381 = vector.broadcast %cst_137 : f32 to vector<64x1xf32>
    %382 = arith.addf %378, %381 : vector<64x1xf32>
    %383 = math.rsqrt %382 : vector<64x1xf32>
    %384 = vector.broadcast %383 : vector<64x1xf32> to vector<64x128xf32>
    %385 = arith.mulf %380, %384 : vector<64x128xf32>
    %c29 = arith.constant 29 : index
    %c0_138 = arith.constant 0 : index
    %386 = vector.load %arg4[%c29, %c0_138] : memref<32x128xf32, #tpu.memory_space<vmem>>, vector<1x128xf32>
    %387 = vector.broadcast %386 : vector<1x128xf32> to vector<64x128xf32>
    %388 = arith.mulf %385, %387 : vector<64x128xf32>
    %c30 = arith.constant 30 : index
    %c0_139 = arith.constant 0 : index
    %389 = vector.load %arg4[%c30, %c0_139] : memref<32x128xf32, #tpu.memory_space<vmem>>, vector<1x128xf32>
    %390 = vector.broadcast %389 : vector<1x128xf32> to vector<64x128xf32>
    %391 = arith.addf %388, %390 : vector<64x128xf32>
    %392 = vector.extract_strided_slice %391 {offsets = [0, 0], sizes = [16, 128], strides = [1, 1]} : vector<64x128xf32> to vector<16x128xf32>
    %cst_140 = arith.constant dense<0xFF800000> : vector<128xf32>
    %393 = vector.multi_reduction <maximumf>, %392, %cst_140 [0] : vector<16x128xf32> to vector<128xf32>
    %394 = vector.shape_cast %393 : vector<128xf32> to vector<1x128xf32>
    %395 = vector.extract_strided_slice %391 {offsets = [16, 0], sizes = [16, 128], strides = [1, 1]} : vector<64x128xf32> to vector<16x128xf32>
    %cst_141 = arith.constant dense<0xFF800000> : vector<128xf32>
    %396 = vector.multi_reduction <maximumf>, %395, %cst_141 [0] : vector<16x128xf32> to vector<128xf32>
    %397 = vector.shape_cast %396 : vector<128xf32> to vector<1x128xf32>
    %398 = vector.extract_strided_slice %391 {offsets = [32, 0], sizes = [16, 128], strides = [1, 1]} : vector<64x128xf32> to vector<16x128xf32>
    %cst_142 = arith.constant dense<0xFF800000> : vector<128xf32>
    %399 = vector.multi_reduction <maximumf>, %398, %cst_142 [0] : vector<16x128xf32> to vector<128xf32>
    %400 = vector.shape_cast %399 : vector<128xf32> to vector<1x128xf32>
    %401 = vector.extract_strided_slice %391 {offsets = [48, 0], sizes = [16, 128], strides = [1, 1]} : vector<64x128xf32> to vector<16x128xf32>
    %cst_143 = arith.constant dense<0xFF800000> : vector<128xf32>
    %402 = vector.multi_reduction <maximumf>, %401, %cst_143 [0] : vector<16x128xf32> to vector<128xf32>
    %403 = vector.shape_cast %402 : vector<128xf32> to vector<1x128xf32>
    %404 = tpu.concatenate %394, %397, %400, %403 in 0 : vector<1x128xf32>, vector<1x128xf32>, vector<1x128xf32>, vector<1x128xf32> -> vector<4x128xf32>
    %c0_144 = arith.constant 0 : index
    %c0_145 = arith.constant 0 : index
    %405 = vector.load %arg5[%c0_144, %c0_145] : memref<4x128xf32, #tpu.memory_space<vmem>>, vector<4x128xf32>
    tpu.vector_store %arg5[%c0_144, %c0_145], %404 {strides = array<i32>} : memref<4x128xf32, #tpu.memory_space<vmem>>, vector<4x128xf32>,
    return
  }
  func.func @transform_0(%arg0: i32) -> (i32, i32) {
    %c0_i32 = arith.constant 0 : i32
    %c0_i32_0 = arith.constant 0 : i32
    %c0_i32_1 = arith.constant 0 : i32
    return %c0_i32, %c0_i32_0 : i32, i32
  }
  func.func @transform_1(%arg0: i32) -> (i32, i32, i32) {
    %c0_i32 = arith.constant 0 : i32
    %c0_i32_0 = arith.constant 0 : i32
    %c0_i32_1 = arith.constant 0 : i32
    %c0_i32_2 = arith.constant 0 : i32
    return %c0_i32, %c0_i32_0, %c0_i32_1 : i32, i32, i32
  }
  func.func @transform_2(%arg0: i32) -> (i32, i32, i32) {
    %c0_i32 = arith.constant 0 : i32
    %c0_i32_0 = arith.constant 0 : i32
    %c0_i32_1 = arith.constant 0 : i32
    %c0_i32_2 = arith.constant 0 : i32
    return %c0_i32, %c0_i32_0, %c0_i32_1 : i32, i32, i32
  }
  func.func @transform_3(%arg0: i32) -> (i32, i32) {
    %c0_i32 = arith.constant 0 : i32
    %c0_i32_0 = arith.constant 0 : i32
    %c0_i32_1 = arith.constant 0 : i32
    return %c0_i32, %c0_i32_0 : i32, i32
  }
  func.func @transform_4(%arg0: i32) -> (i32, i32) {
    %c0_i32 = arith.constant 0 : i32
    %c0_i32_0 = arith.constant 0 : i32
    %c0_i32_1 = arith.constant 0 : i32
    return %c0_i32, %c0_i32_0 : i32, i32
  }
}

</mosaic_0001>

<bundles_post_ra>
// kernel: tpu_custom_call.1
= control target key start
LH: loop header
LB: loop body
LE: loop exit
PB: predicated region body
PF: predicated region fallthrough
CT: control target
= control target key end

     0   :  { %9 = vsyncpa [#allocation3], 0  ;;  %s4977_s0 = inlined_call_operand.hbm [shape: f32[64,128], index: 0, kind: input, shape index: {}]   ;;  %s4978_s1 = inlined_call_operand.hbm [shape: bf16[7,128,128], index: 1, kind: input, shape index: {}]   ;;  %s4979_s2 = inlined_call_operand.hbm [shape: bf16[2,256,128], index: 2, kind: input, shape index: {}]   ;;  %s4980_s3 = inlined_call_operand.hbm [shape: f32[32,128], index: 3, kind: input, shape index: {}]   ;;  %s4981_s4 = inlined_call_operand.hbm [shape: f32[4,128], index: 4, kind: output, shape index: {}]  }
   0x1   :  { %10 = vsyncpa [#allocation6], 0 }
   0x2   :  { %11 = vsyncpa [#allocation9], 0 }
   0x3   :  { %12 = vsyncpa [#allocation4], 0  ;;  %s3941_s15 = smov [#allocation5]  }
   0x4   :  { %s30_s16 = sshll.u32 %s3941_s15, 4  ;;  %s31_s16 = int_to_ptr.vmem [resolvable:$true] %s30_s16 }
   0x5   :  { %s3841_s17 = scalar_lea.vmem %s31_s16, 7168  ;;  %p3846_p1 = scmp.lt.s32.totalorder %s31_s16, %s31_s16 }
   0x6   :  { %p3842_p0 = scmp.ne.s32.totalorder %s31_s16, %s3841_s17  ;;  %p3847_p2 = scmp.lt.s32.totalorder %s3841_s17, %s3841_s17 }
   0x8   :  { %p3848_p3 = por %p3847_p2, %p3846_p1 }
   0xa   :  { %p3849_p4 = pnand %p3848_p3, %p3842_p0 }
   0xc   :  { %3852 = shalt.err (!%p3849_p4)
}
   0xd   :  { %s3942_s18 = smov 64   ;;  %s3943_s19 = smov 4  }
   0xe   :  { %36 = dma.hbm_to_vmem [thread:$0]  %s4978_s1, 7168, %s31_s16, [#allocation6], %s3942_s18, %s3942_s18, %s3943_s19  }
   0xf   :  { %s3944_s22 = smov [#allocation2]  }
  0x10   :  { %s18_s23 = sshll.u32 %s3944_s22, 4  ;;  %s19_s23 = int_to_ptr.vmem [resolvable:$true] %s18_s23 }
  0x11   :  { %s3861_s24 = scalar_lea.vmem %s19_s23, 1024  ;;  %p3866_p6 = scmp.lt.s32.totalorder %s19_s23, %s19_s23 }
  0x12   :  { %p3862_p5 = scmp.ne.s32.totalorder %s19_s23, %s3861_s24  ;;  %p3867_p7 = scmp.lt.s32.totalorder %s3861_s24, %s3861_s24 }
  0x14   :  { %p3868_p8 = por %p3867_p7, %p3866_p6 }
  0x16   :  { %p3869_p9 = pnand %p3868_p8, %p3862_p5 }
  0x18   :  { %3872 = shalt.err (!%p3869_p9)
}
  0x19   :  { %s3945_s25 = smov 128   ;;  %s3946_s26 = smov 8  }
  0x1a   :  { %24 = dma.hbm_to_vmem [thread:$0]  %s4977_s0, 1024, %s19_s23, [#allocation3], %s3945_s25, %s3945_s25, %s3946_s26  }
  0x1b   :  { %s3947_s29 = smov [#allocation7]   ;;  %s3948_s5 = smov [#allocation8]  }
  0x1c   :  { %s42_s30 = sshll.u32 %s3947_s29, 4  ;;  %s54_s1 = sshll.u32 %s3948_s5, 4  ;;  %s43_s30 = int_to_ptr.vmem [resolvable:$true] %s42_s30  ;;  %s55_s1 = int_to_ptr.vmem [resolvable:$true] %s54_s1 }
  0x1d   :  { %s3881_s6 = scalar_lea.vmem %s43_s30, 4096  ;;  %p3886_p11 = scmp.lt.s32.totalorder %s43_s30, %s43_s30 }
  0x1e   :  { %p3882_p10 = scmp.ne.s32.totalorder %s43_s30, %s3881_s6  ;;  %p3887_p12 = scmp.lt.s32.totalorder %s3881_s6, %s3881_s6 }
  0x20   :  { %p3888_p13 = por %p3887_p12, %p3886_p11 }
  0x22   :  { %p3889_p0 = pnand %p3888_p13, %p3882_p10 }
  0x24   :  { %3892 = shalt.err (!%p3889_p0)
}
  0x25   :  { %48 = dma.hbm_to_vmem [thread:$0]  %s4979_s2, 4096, %s43_s30, [#allocation6], %s3942_s18, %s3942_s18, %s3943_s19  }
  0x26   :  { %s3901_s0 = scalar_lea.vmem %s55_s1, 512  ;;  %p3906_p2 = scmp.lt.s32.totalorder %s55_s1, %s55_s1 }
  0x27   :  { %p3902_p1 = scmp.ne.s32.totalorder %s55_s1, %s3901_s0  ;;  %p3907_p3 = scmp.lt.s32.totalorder %s3901_s0, %s3901_s0 }
  0x29   :  { %p3908_p4 = por %p3907_p3, %p3906_p2 }
  0x2b   :  { %p3909_p5 = pnand %p3908_p4, %p3902_p1 }
  0x2d   :  { %3912 = shalt.err (!%p3909_p5)
}
  0x2e   :  { %60 = dma.hbm_to_vmem [thread:$0]  %s4980_s3, 512, %s55_s1, [#allocation9], %s3945_s25, %s3945_s25, %s3946_s26  }
  0x2f   :  { %3933 = dma.done.wait [#allocation3], 1024  }
  0x30   :  { %3934 = vsyncadd [#allocation3], 4294966272 }
  0x31   :  { %3935 = dma.done.wait [#allocation6], 11264  }
  0x32   :  { %3936 = vsyncadd [#allocation6], 4294956032 }
  0x33   :  { %3937 = dma.done.wait [#allocation9], 512  }
  0x34   :  { %3938 = vsyncadd [#allocation9], 4294966784  ;;  %v3569_v0 = vld [vmem:[#allocation5 + $0x38] sm:$0xff]   ;;  %v3570_v1 = vld [vmem:[#allocation5 + $0x30] sm:$0xff]   ;;  %vm3069_vm0 = vcmask 1040384   ;;  %vm3071_vm1 = vcmask 1041408  }
  0x35   :  { %3376 = vmatprep.subr.bf16.mxu0 %v3569_v0  ;;  %v3571_v2 = vld [vmem:[#allocation5 + $0x28] sm:$0xff]   ;;  %v3572_v3 = vld [vmem:[#allocation5 + $0x20] sm:$0xff]   ;;  %v3573_v7 = vld [vmem:[#allocation5 + $0x18] sm:$0xff]   ;;  %s3949_s2 = smov [#allocation10]   ;;  %vm3073_vm2 = vcmask 1042432  }
  0x36   :  { %3377 = vmatpush3.bf16.msra.mxu0 %v3569_v0  ;;  %v74_v4 = vld [vmem:[#allocation2] sm:$0xff]  ;;  %v75_v5 = vld [vmem:[#allocation2 + $0x8] sm:$0xff]  ;;  %v3574_v8 = vld [vmem:[#allocation5 + $0x10] sm:$0xff]   ;;  %s3082_s3 = sshll.u32 %s3949_s2, 4  ;;  %s3083_s3 = int_to_ptr.vmem [resolvable:$true] %s3082_s3 }
  0x37   :  { %3378 = vmatprep.subr.bf16.mxu0 %v3570_v1  ;;  %v98_v6 = vpack.c.bf16 %v75_v5, %v74_v4  ;;  %v3575_v9 = vld [vmem:[#allocation5 + $0x8] sm:$0xff]   ;;  %v3576_v10 = vld [vmem:[#allocation5] sm:$0xff]   ;;  %v76_v11 = vld [vmem:[#allocation2 + $0x10] sm:$0xff]  ;;  %s3913_s11 = scalar_lea.vmem %s3083_s3, 64  ;;  %p3918_p7 = scmp.lt.s32.totalorder %s3083_s3, %s3083_s3 }
  0x38   :  { %v77_v12 = vld [vmem:[#allocation2 + $0x18] sm:$0xff]  ;;  %v78_v13 = vld [vmem:[#allocation2 + $0x20] sm:$0xff]  ;;  %v79_v14 = vld [vmem:[#allocation2 + $0x28] sm:$0xff]  ;;  %p3914_p6 = scmp.ne.s32.totalorder %s3083_s3, %s3913_s11  ;;  %p3919_p8 = scmp.lt.s32.totalorder %s3913_s11, %s3913_s11 }
  0x39   :  { %3392 = vmatprep.mubr.bf16.mxu0 %v98_v6  ;;  %v99_v15 = vpack.c.bf16 %v77_v12, %v76_v11  ;;  %v100_v16 = vpack.c.bf16 %v79_v14, %v78_v13  ;;  %v80_v17 = vld [vmem:[#allocation2 + $0x30] sm:$0xff]  ;;  %v81_v18 = vld [vmem:[#allocation2 + $0x38] sm:$0xff]  ;;  %v3093_v20 = vld [vmem:[#allocation8] ss:$0 sm:$0xff] }
  0x3a   :  { %3379 = vmatpush3.bf16.msra.mxu0 %v3570_v1  ;;  %v101_v19 = vpack.c.bf16 %v81_v18, %v80_v17  ;;  %v3577_v41 = vld [vmem:[#allocation5 + $0x78] sm:$0xff]   ;;  %v3578_v44 = vld [vmem:[#allocation5 + $0x70] sm:$0xff]   ;;  %v3579_v47 = vld [vmem:[#allocation5 + $0x68] sm:$0xff]   ;;  %p3920_p9 = por %p3919_p8, %p3918_p7 }
  0x3b   :  { %3380 = vmatprep.subr.bf16.mxu0 %v3571_v2  ;;  %3400 = vmatprep.subr.bf16.mxu1 %v3577_v41  ;;  %v3580_v48 = vld [vmem:[#allocation5 + $0x60] sm:$0xff]   ;;  %v3581_v49 = vld [vmem:[#allocation5 + $0x58] sm:$0xff]   ;;  %v3582_v50 = vld [vmem:[#allocation5 + $0x50] sm:$0xff]  }
  0x3c   :  { %3401 = vmatpush3.bf16.msra.mxu1 %v3577_v41  ;;  %v3583_v51 = vld [vmem:[#allocation5 + $0x48] sm:$0xff]   ;;  %v3584_v52 = vld [vmem:[#allocation5 + $0x40] sm:$0xff]   ;;  %p3921_p10 = pnand %p3920_p9, %p3914_p6 }
  0x3d   :  { %3402 = vmatprep.subr.bf16.mxu1 %v3578_v44 }
  0x3e   :  { %3381 = vmatpush3.bf16.msra.mxu0 %v3571_v2 }
  0x3f   :  { %3382 = vmatprep.subr.bf16.mxu0 %v3572_v3 }
  0x40   :  { %3403 = vmatpush3.bf16.msra.mxu1 %v3578_v44 }
  0x41   :  { %3404 = vmatprep.subr.bf16.mxu1 %v3579_v47 }
  0x42   :  { %3383 = vmatpush3.bf16.msra.mxu0 %v3572_v3 }
  0x43   :  { %3384 = vmatprep.subr.bf16.mxu0 %v3573_v7 }
  0x44   :  { %3405 = vmatpush3.bf16.msra.mxu1 %v3579_v47 }
  0x45   :  { %3406 = vmatprep.subr.bf16.mxu1 %v3580_v48 }
  0x46   :  { %3385 = vmatpush3.bf16.msra.mxu0 %v3573_v7 }
  0x47   :  { %3386 = vmatprep.subr.bf16.mxu0 %v3574_v8 }
  0x48   :  { %3407 = vmatpush3.bf16.msra.mxu1 %v3580_v48 }
  0x49   :  { %3408 = vmatprep.subr.bf16.mxu1 %v3581_v49 }
  0x4a   :  { %3387 = vmatpush3.bf16.msra.mxu0 %v3574_v8 }
  0x4b   :  { %3388 = vmatprep.subr.bf16.mxu0 %v3575_v9 }
  0x4c   :  { %3409 = vmatpush3.bf16.msra.mxu1 %v3581_v49 }
  0x4d   :  { %3410 = vmatprep.subr.bf16.mxu1 %v3582_v50 }
  0x4e   :  { %3389 = vmatpush3.bf16.msra.mxu0 %v3575_v9 }
  0x4f   :  { %3390 = vmatprep.subr.bf16.mxu0 %v3576_v10 }
  0x50   :  { %3411 = vmatpush3.bf16.msra.mxu1 %v3582_v50 }
  0x51   :  { %3412 = vmatprep.subr.bf16.mxu1 %v3583_v51 }
  0x52   :  { %3391 = vmatpush3.bf16.msra.mxu0 %v3576_v10 }
  0x54   :  { %3413 = vmatpush3.bf16.msra.mxu1 %v3583_v51 }
  0x55   :  { %3393 = vmatmul.mubr.bf16.vlgmr.msra.gmra.mxu0 %v99_v15  ;;  %3414 = vmatprep.subr.bf16.mxu1 %v3584_v52 }
  0x56   :  { %3396 = vmatprep.mubr.bf16.mxu0 %v100_v16 }
  0x58   :  { %3415 = vmatpush3.bf16.msra.mxu1 %v3584_v52 }
  0x5d   :  { %3397 = vmatmul.mubr.bf16.gmra.mxu0 %v101_v19 }
 0x115   :  { %v3394_v21 = vpop.f32.mrf.mxu0 }
 0x116   :  { %v3993_v22 = vadd.f32 %v3394_v21, %v3093_v20 }
 0x117   :  { %v189_v23 = vpop.f32.mrf.mxu0 }
 0x118   :  { %v3995_v24 = vadd.f32 %v3093_v20, %v189_v23  ;;  %224 = vadd.xlane.f32.xlu1 %v3993_v22  ;;  %v238_v35 = vmul.f32 %v3993_v22, %v3993_v22 }
 0x119   :  { %v3395_v25 = vpop.f32.mrf.mxu0 }
 0x11a   :  { %v3998_v26 = vadd.f32 %v3395_v25, %v3093_v20  ;;  %220 = vadd.xlane.f32.xlu0 %v3995_v24  ;;  %v236_v29 = vmul.f32 %v3995_v24, %v3995_v24 }
 0x11b   :  { %v192_v27 = vpop.f32.mrf.mxu0 }
 0x11c   :  { %v4001_v28 = vadd.f32 %v3093_v20, %v192_v27  ;;  %226 = vadd.xlane.f32.xlu1 %v3998_v26  ;;  %v239_v33 = vmul.f32 %v3998_v26, %v3998_v26 }
 0x11d   :  { %v3398_v30 = vpop.f32.mrf.mxu0 }
 0x11e   :  { %244 = vadd.xlane.f32.xlu0 %v236_v29  ;;  %v237_v31 = vmul.f32 %v4001_v28, %v4001_v28  ;;  %v4015_v38 = vadd.f32 %v3398_v30, %v3093_v20 }
 0x11f   :  { %v205_v32 = vpop.f32.mrf.mxu0 }
 0x120   :  { %246 = vadd.xlane.f32.xlu1 %v237_v31  ;;  %v4021_v40 = vadd.f32 %v3093_v20, %v205_v32  ;;  %v242_v46 = vmul.f32 %v4015_v38, %v4015_v38 }
 0x121   :  { %v3399_v34 = vpop.f32.mrf.mxu0 }
 0x122   :  { %222 = vadd.xlane.f32.xlu0 %v4001_v28  ;;  %v4013_v36 = vadd.f32 %v3399_v34, %v3093_v20  ;;  %v240_v43 = vmul.f32 %v4021_v40, %v4021_v40 }
 0x123   :  { %v208_v37 = vpop.f32.mrf.mxu0 }
 0x124   :  { %250 = vadd.xlane.f32.xlu1 %v239_v33  ;;  %v4018_v39 = vadd.f32 %v3093_v20, %v208_v37  ;;  %v243_v45 = vmul.f32 %v4013_v36, %v4013_v36 }
 0x126   :  { %248 = vadd.xlane.f32.xlu0 %v238_v35  ;;  %v241_v42 = vmul.f32 %v4018_v39, %v4018_v39 }
 0x128   :  { %234 = vadd.xlane.f32.xlu1 %v4013_v36 }
 0x12a   :  { %232 = vadd.xlane.f32.xlu0 %v4015_v38 }
 0x12c   :  { %230 = vadd.xlane.f32.xlu1 %v4018_v39 }
 0x12e   :  { %228 = vadd.xlane.f32.xlu0 %v4021_v40 }
 0x130   :  { %254 = vadd.xlane.f32.xlu1 %v241_v42 }
 0x132   :  { %252 = vadd.xlane.f32.xlu0 %v240_v43  ;;  %v4054_v43 = vld [vmem:[#allocation8 + $0x1] ss:$0 sm:$0xff] }
 0x134   :  { %258 = vadd.xlane.f32.xlu1 %v243_v45 }
 0x136   :  { %256 = vadd.xlane.f32.xlu0 %v242_v46 }
 0x1a1   :  { %v225_v53 = vpop.xlane.xlu1 %224 }
 0x1a2   :  { %v4035_v0 = vmul.f32 0.0078125, %v225_v53 }
 0x1a3   :  { %v221_v54 = vpop.xlane.xlu0 %220 }
 0x1a4   :  { %v260_v55 = vmul.f32 0.0078125, %v221_v54  ;;  %v278_v9 = vmul.f32 %v4035_v0, %v4035_v0 }
 0x1a5   :  { %v227_v56 = vpop.xlane.xlu1 %226 }
 0x1a6   :  { %v276_v58 = vmul.f32 %v260_v55, %v260_v55  ;;  %v4033_v60 = vmul.f32 0.0078125, %v227_v56  ;;  %v292_v27 = vsub.f32 %v3995_v24, %v260_v55  ;;  %v3103_v55 = vld [vmem:[#allocation8 + $0x2] ss:$0 sm:$0xff] }
 0x1a7   :  { %v245_v57 = vpop.xlane.xlu0 %244 }
 0x1a8   :  { %v268_v59 = vmul.f32 0.0078125, %v245_v57  ;;  %v279_v3 = vmul.f32 %v4033_v60, %v4033_v60  ;;  %v294_v57 = vsub.f32 %v3993_v22, %v4035_v0 }
 0x1a9   :  { %v247_v61 = vpop.xlane.xlu1 %246 }
 0x1aa   :  { %v284_v62 = vsub.f32 %v268_v59, %v276_v58  ;;  %v269_v5 = vmul.f32 0.0078125, %v247_v61  ;;  %v295_v58 = vsub.f32 %v3998_v26, %v4033_v60 }
 0x1ab   :  { %v223_v63 = vpop.xlane.xlu0 %222 }
 0x1ac   :  { %v300_v1 = vadd.f32 1e-05, %v284_v62  ;;  %v261_v2 = vmul.f32 0.0078125, %v223_v63 }
 0x1ad   :  { %v251_v4 = vpop.xlane.xlu1 %250 }
 0x1ae   :  { %3657 = vrsqrt.f32 %v300_v1  ;;  %v277_v6 = vmul.f32 %v261_v2, %v261_v2  ;;  %v271_v7 = vmul.f32 0.0078125, %v251_v4  ;;  %v293_v48 = vsub.f32 %v4001_v28, %v261_v2 }
 0x1af   :  { %v249_v8 = vpop.xlane.xlu0 %248 }
 0x1b0   :  { %v285_v10 = vsub.f32 %v269_v5, %v277_v6  ;;  %v287_v11 = vsub.f32 %v271_v7, %v279_v3  ;;  %v270_v12 = vmul.f32 0.0078125, %v249_v8 }
 0x1b1   :  { %v235_v13 = vpop.xlane.xlu1 %234 }
 0x1b2   :  { %v301_v14 = vadd.f32 1e-05, %v285_v10  ;;  %v303_v15 = vadd.f32 1e-05, %v287_v11  ;;  %v286_v16 = vsub.f32 %v270_v12, %v278_v9  ;;  %v4046_v29 = vmul.f32 0.0078125, %v235_v13 }
 0x1b3   :  { %v233_v17 = vpop.xlane.xlu0 %232 }
 0x1b4   :  { %3659 = vrsqrt.f32 %v301_v14  ;;  %v302_v18 = vadd.f32 1e-05, %v286_v16  ;;  %v4050_v33 = vmul.f32 0.0078125, %v233_v17  ;;  %v283_v24 = vmul.f32 %v4046_v29, %v4046_v29 }
 0x1b5   :  { %3661 = vrsqrt.f32 %v303_v15  ;;  %v231_v19 = vpop.xlane.xlu1 %230 }
 0x1b6   :  { %3663 = vrsqrt.f32 %v302_v18  ;;  %v4041_v20 = vmul.f32 0.0078125, %v231_v19  ;;  %v282_v49 = vmul.f32 %v4050_v33, %v4050_v33  ;;  %v299_v18 = vsub.f32 %v4013_v36, %v4046_v29 }
 0x1b7   :  { %v229_v21 = vpop.xlane.xlu0 %228 }
 0x1b8   :  { %v4043_v23 = vmul.f32 0.0078125, %v229_v21  ;;  %v281_v30 = vmul.f32 %v4041_v20, %v4041_v20  ;;  %v297_v12 = vsub.f32 %v4018_v39, %v4041_v20  ;;  %v298_v20 = vsub.f32 %v4015_v38, %v4050_v33 }
 0x1b9   :  { %v255_v25 = vpop.xlane.xlu1 %254 }
 0x1ba   :  { %v273_v31 = vmul.f32 0.0078125, %v255_v25  ;;  %v280_v35 = vmul.f32 %v4043_v23, %v4043_v23  ;;  %v296_v15 = vsub.f32 %v4021_v40, %v4043_v23 }
 0x1bb   :  { %v3658_v32 = vpop.eup %3657  ;;  %v253_v34 = vpop.xlane.xlu0 %252 }
 0x1bc   :  { %v289_v37 = vsub.f32 %v273_v31, %v281_v30  ;;  %v272_v41 = vmul.f32 0.0078125, %v253_v34  ;;  %v316_v42 = vmul.f32 %v3658_v32, %v292_v27 }
 0x1bd   :  { %v259_v44 = vpop.xlane.xlu1 %258 }
 0x1be   :  { %v305_v45 = vadd.f32 1e-05, %v289_v37  ;;  %v288_v46 = vsub.f32 %v272_v41, %v280_v35  ;;  %v275_v47 = vmul.f32 0.0078125, %v259_v44  ;;  %v329_v51 = vmul.f32 %v4054_v43, %v316_v42 }
 0x1bf   :  { %v257_v50 = vpop.xlane.xlu0 %256 }
 0x1c0   :  { %3665 = vrsqrt.f32 %v305_v45  ;;  %v304_v52 = vadd.f32 1e-05, %v288_v46  ;;  %v291_v53 = vsub.f32 %v275_v47, %v283_v24  ;;  %v274_v54 = vmul.f32 0.0078125, %v257_v50 }
 0x1c1   :  { %v3660_v56 = vpop.eup %3659  ;;  %v4066_v1 = vadd.f32 %v3103_v55, %v329_v51 }
 0x1c2   :  { %v3662_v59 = vpop.eup %3661  ;;  %v317_v28 = vmul.f32 %v3660_v56, %v293_v48  ;;  %3667 = vrsqrt.f32 %v304_v52  ;;  %v307_v61 = vadd.f32 1e-05, %v291_v53  ;;  %v290_v62 = vsub.f32 %v274_v54, %v282_v49 }
 0x1c3   :  { %v3664_v63 = vpop.eup %3663  ;;  %v319_v2 = vmul.f32 %v3662_v59, %v295_v58  ;;  %v350_v0 = vmax.f32 %v4066_v1, 0.0 }
 0x1c4   :  { %3669 = vrsqrt.f32 %v307_v61  ;;  %v306_v3 = vadd.f32 1e-05, %v290_v62  ;;  %v330_v4 = vmul.f32 %v4054_v43, %v317_v28  ;;  %v318_v5 = vmul.f32 %v3664_v63, %v294_v57 }
 0x1c5   :  { %v332_v6 = vmul.f32 %v4054_v43, %v319_v2  ;;  %v3585_v2 = vld [vmem:[#allocation5 + $0xb8] sm:$0xff]  }
 0x1c6   :  { %3671 = vrsqrt.f32 %v306_v3  ;;  %v4070_v22 = vadd.f32 %v3103_v55, %v330_v4  ;;  %v331_v26 = vmul.f32 %v4054_v43, %v318_v5  ;;  %3424 = vmatprep.subr.bf16.mxu0 %v3585_v2  ;;  %v3586_v5 = vld [vmem:[#allocation5 + $0xb0] sm:$0xff]  }
 0x1c7   :  { %v4073_v60 = vadd.f32 %v3103_v55, %v332_v6  ;;  %3425 = vmatpush3.bf16.msra.mxu0 %v3585_v2 }
 0x1c8   :  { %v351_v7 = vmax.f32 %v4070_v22, 0.0  ;;  %v4077_v8 = vadd.f32 %v3103_v55, %v331_v26  ;;  %3426 = vmatprep.subr.bf16.mxu0 %v3586_v5  ;;  %v3587_v26 = vld [vmem:[#allocation5 + $0xa8] sm:$0xff]  }
 0x1c9   :  { %v353_v11 = vmax.f32 %v4073_v60, 0.0 }
 0x1ca   :  { %v375_v9 = vpack.c.bf16 %v351_v7, %v350_v0  ;;  %v352_v10 = vmax.f32 %v4077_v8, 0.0 }
 0x1cb   :  { %3427 = vmatpush3.bf16.msra.mxu0 %v3586_v5 }
 0x1cc   :  { %3416 = vmatprep.mubr.bf16.mxu1 %v375_v9  ;;  %v376_v13 = vpack.c.bf16 %v353_v11, %v352_v10  ;;  %3428 = vmatprep.subr.bf16.mxu0 %v3587_v26  ;;  %v3588_v9 = vld [vmem:[#allocation5 + $0xa0] sm:$0xff]  }
 0x1cd   :  { %v3666_v14 = vpop.eup %3665 }
 0x1ce   :  { %3417 = vmatmul.mubr.bf16.vlgmr.msra.gmra.mxu1 %v376_v13  ;;  %v321_v16 = vmul.f32 %v3666_v14, %v297_v12  ;;  %v3589_v12 = vld [vmem:[#allocation5 + $0x98] sm:$0xff]   ;;  %v3590_v13 = vld [vmem:[#allocation5 + $0x90] sm:$0xff]   ;;  %v3591_v14 = vld [vmem:[#allocation5 + $0x88] sm:$0xff]  }
 0x1cf   :  { %v3668_v17 = vpop.eup %3667  ;;  %3429 = vmatpush3.bf16.msra.mxu0 %v3587_v26 }
 0x1d0   :  { %v320_v19 = vmul.f32 %v3668_v17, %v296_v15  ;;  %v334_v21 = vmul.f32 %v4054_v43, %v321_v16  ;;  %3430 = vmatprep.subr.bf16.mxu0 %v3588_v9  ;;  %v3592_v15 = vld [vmem:[#allocation5 + $0x80] sm:$0xff]  }
 0x1d1   :  { %v3670_v39 = vpop.eup %3669 }
 0x1d2   :  { %v333_v25 = vmul.f32 %v4054_v43, %v320_v19  ;;  %v4099_v27 = vadd.f32 %v3103_v55, %v334_v21  ;;  %v323_v30 = vmul.f32 %v3670_v39, %v299_v18 }
 0x1d3   :  { %v3672_v31 = vpop.eup %3671  ;;  %3431 = vmatpush3.bf16.msra.mxu0 %v3588_v9 }
 0x1d4   :  { %v4101_v40 = vadd.f32 %v3103_v55, %v333_v25  ;;  %v322_v23 = vmul.f32 %v3672_v31, %v298_v20  ;;  %v336_v32 = vmul.f32 %v4054_v43, %v323_v30  ;;  %v355_v29 = vmax.f32 %v4099_v27, 0.0  ;;  %3432 = vmatprep.subr.bf16.mxu0 %v3589_v12  ;;  %v3619_v27 = vld [vmem:[#allocation5 + $0x128] sm:$0xff]  }
 0x1d6   :  { %v354_v36 = vmax.f32 %v4101_v40, 0.0  ;;  %v335_v34 = vmul.f32 %v4054_v43, %v322_v23  ;;  %v4107_v35 = vadd.f32 %v3103_v55, %v336_v32  ;;  %v3104_v43 = vld [vmem:[#allocation8 + $0x3] ss:$0 sm:$0xff]  ;;  %v3618_v40 = vld [vmem:[#allocation5 + $0x130] sm:$0xff]  }
 0x1d7   :  { %3433 = vmatpush3.bf16.msra.mxu0 %v3589_v12 }
 0x1d8   :  { %v377_v38 = vpack.c.bf16 %v355_v29, %v354_v36  ;;  %v4113_v33 = vadd.f32 %v3103_v55, %v335_v34  ;;  %v357_v41 = vmax.f32 %v4107_v35, 0.0  ;;  %3434 = vmatprep.subr.bf16.mxu0 %v3590_v13 }
 0x1da   :  { %3420 = vmatprep.mubr.bf16.mxu1 %v377_v38  ;;  %v356_v37 = vmax.f32 %v4113_v33, 0.0  ;;  %v3617_v33 = vld [vmem:[#allocation5 + $0x138] sm:$0xff]  }
 0x1db   :  { %3435 = vmatpush3.bf16.msra.mxu0 %v3590_v13 }
 0x1dc   :  { %v378_v42 = vpack.c.bf16 %v357_v41, %v356_v37  ;;  %3436 = vmatprep.subr.bf16.mxu0 %v3591_v14 }
 0x1de   :  { %3421 = vmatmul.mubr.bf16.gmra.mxu1 %v378_v42 }
 0x1df   :  { %3437 = vmatpush3.bf16.msra.mxu0 %v3591_v14 }
 0x1e0   :  { %3438 = vmatprep.subr.bf16.mxu0 %v3592_v15 }
 0x1e3   :  { %3439 = vmatpush3.bf16.msra.mxu0 %v3592_v15 }
 0x28e   :  { %v3418_v44 = vpop.f32.mrf.mxu1 }
 0x28f   :  { %v4121_v24 = vadd.f32 %v3418_v44, %v3104_v43 }
 0x290   :  { %v466_v45 = vpop.f32.mrf.mxu1 }
 0x291   :  { %501 = vadd.xlane.f32.xlu0 %v4121_v24  ;;  %v4124_v47 = vadd.f32 %v3104_v43, %v466_v45  ;;  %v515_v53 = vmul.f32 %v4121_v24, %v4121_v24 }
 0x292   :  { %v3419_v46 = vpop.f32.mrf.mxu1 }
 0x293   :  { %v4126_v48 = vadd.f32 %v3419_v46, %v3104_v43  ;;  %v513_v51 = vmul.f32 %v4124_v47, %v4124_v47 }
 0x294   :  { %v469_v49 = vpop.f32.mrf.mxu1 }
 0x295   :  { %503 = vadd.xlane.f32.xlu1 %v4126_v48  ;;  %497 = vadd.xlane.f32.xlu0 %v4124_v47  ;;  %v4130_v50 = vadd.f32 %v3104_v43, %v469_v49  ;;  %v516_v56 = vmul.f32 %v4126_v48, %v4126_v48 }
 0x297   :  { %v514_v52 = vmul.f32 %v4130_v50, %v4130_v50 }
 0x299   :  { %499 = vadd.xlane.f32.xlu1 %v4130_v50  ;;  %521 = vadd.xlane.f32.xlu0 %v513_v51 }
 0x29d   :  { %523 = vadd.xlane.f32.xlu1 %v514_v52  ;;  %525 = vadd.xlane.f32.xlu0 %v515_v53 }
 0x29e   :  { %v3422_v54 = vpop.f32.mrf.mxu1 }
 0x29f   :  { %v4139_v55 = vadd.f32 %v3422_v54, %v3104_v43 }
 0x2a0   :  { %v482_v57 = vpop.f32.mrf.mxu1 }
 0x2a1   :  { %527 = vadd.xlane.f32.xlu1 %v516_v56  ;;  %509 = vadd.xlane.f32.xlu0 %v4139_v55  ;;  %v4144_v59 = vadd.f32 %v3104_v43, %v482_v57  ;;  %v519_v4 = vmul.f32 %v4139_v55, %v4139_v55 }
 0x2a2   :  { %v3423_v58 = vpop.f32.mrf.mxu1 }
 0x2a3   :  { %v4146_v28 = vadd.f32 %v3423_v58, %v3104_v43  ;;  %v517_v63 = vmul.f32 %v4144_v59, %v4144_v59 }
 0x2a4   :  { %v485_v61 = vpop.f32.mrf.mxu1 }
 0x2a5   :  { %511 = vadd.xlane.f32.xlu1 %v4146_v28  ;;  %505 = vadd.xlane.f32.xlu0 %v4144_v59  ;;  %v4150_v62 = vadd.f32 %v3104_v43, %v485_v61  ;;  %v520_v6 = vmul.f32 %v4146_v28, %v4146_v28 }
 0x2a7   :  { %v518_v3 = vmul.f32 %v4150_v62, %v4150_v62 }
 0x2a9   :  { %507 = vadd.xlane.f32.xlu1 %v4150_v62  ;;  %529 = vadd.xlane.f32.xlu0 %v517_v63 }
 0x2ad   :  { %531 = vadd.xlane.f32.xlu1 %v518_v3  ;;  %533 = vadd.xlane.f32.xlu0 %v519_v4 }
 0x2b1   :  { %535 = vadd.xlane.f32.xlu1 %v520_v6 }
 0x31a   :  { %v502_v16 = vpop.xlane.xlu0 %501 }
 0x31b   :  { %v4161_v21 = vmul.f32 0.0078125, %v502_v16 }
 0x31d   :  { %v555_v32 = vmul.f32 %v4161_v21, %v4161_v21 }
 0x31e   :  { %v504_v17 = vpop.xlane.xlu1 %503  ;;  %v498_v18 = vpop.xlane.xlu0 %497 }
 0x31f   :  { %v537_v19 = vmul.f32 0.0078125, %v498_v18  ;;  %v4165_v34 = vmul.f32 0.0078125, %v504_v17 }
 0x321   :  { %v553_v25 = vmul.f32 %v537_v19, %v537_v19  ;;  %v556_v54 = vmul.f32 %v4165_v34, %v4165_v34  ;;  %v569_v14 = vsub.f32 %v4124_v47, %v537_v19 }
 0x322   :  { %v500_v39 = vpop.xlane.xlu1 %499  ;;  %v522_v20 = vpop.xlane.xlu0 %521 }
 0x323   :  { %v538_v30 = vmul.f32 0.0078125, %v500_v39  ;;  %v545_v31 = vmul.f32 0.0078125, %v522_v20 }
 0x325   :  { %v561_v23 = vsub.f32 %v545_v31, %v553_v25  ;;  %v554_v43 = vmul.f32 %v538_v30, %v538_v30  ;;  %v4180_v31 = vld [vmem:[#allocation8 + $0x4] ss:$0 sm:$0xff]  ;;  %v570_v47 = vsub.f32 %v4130_v50, %v538_v30 }
 0x326   :  { %v524_v38 = vpop.xlane.xlu1 %523  ;;  %v526_v42 = vpop.xlane.xlu0 %525 }
 0x327   :  { %v577_v44 = vadd.f32 1e-05, %v561_v23  ;;  %v546_v45 = vmul.f32 0.0078125, %v524_v38  ;;  %v547_v46 = vmul.f32 0.0078125, %v526_v42 }
 0x329   :  { %3673 = vrsqrt.f32 %v577_v44  ;;  %v562_v49 = vsub.f32 %v546_v45, %v554_v43  ;;  %v563_v51 = vsub.f32 %v547_v46, %v555_v32  ;;  %v3114_v45 = vld [vmem:[#allocation8 + $0x5] ss:$0 sm:$0xff] }
 0x32a   :  { %v528_v52 = vpop.xlane.xlu1 %527  ;;  %v510_v53 = vpop.xlane.xlu0 %509 }
 0x32b   :  { %v578_v56 = vadd.f32 1e-05, %v562_v49  ;;  %v579_v57 = vadd.f32 1e-05, %v563_v51  ;;  %v548_v58 = vmul.f32 0.0078125, %v528_v52  ;;  %v4169_v5 = vmul.f32 0.0078125, %v510_v53 }
 0x32c   :  { %v571_v49 = vsub.f32 %v4121_v24, %v4161_v21 }
 0x32d   :  { %3675 = vrsqrt.f32 %v578_v56  ;;  %v564_v61 = vsub.f32 %v548_v58, %v556_v54  ;;  %v559_v17 = vmul.f32 %v4169_v5, %v4169_v5 }
 0x32e   :  { %3677 = vrsqrt.f32 %v579_v57  ;;  %v512_v63 = vpop.xlane.xlu1 %511  ;;  %v506_v2 = vpop.xlane.xlu0 %505 }
 0x32f   :  { %v580_v3 = vadd.f32 1e-05, %v564_v61  ;;  %v541_v4 = vmul.f32 0.0078125, %v506_v2  ;;  %v4176_v18 = vmul.f32 0.0078125, %v512_v63  ;;  %v572_v61 = vsub.f32 %v4126_v48, %v4165_v34 }
 0x331   :  { %3679 = vrsqrt.f32 %v580_v3  ;;  %v557_v9 = vmul.f32 %v541_v4, %v541_v4  ;;  %v560_v51 = vmul.f32 %v4176_v18, %v4176_v18  ;;  %v573_v48 = vsub.f32 %v4144_v59, %v541_v4 }
 0x332   :  { %v508_v6 = vpop.xlane.xlu1 %507  ;;  %v530_v26 = vpop.xlane.xlu0 %529  ;;  %v576_v59 = vsub.f32 %v4146_v28, %v4176_v18  ;;  %v3115_v18 = vld [vmem:[#allocation8 + $0x6] ss:$0 sm:$0xff] }
 0x333   :  { %v4171_v12 = vmul.f32 0.0078125, %v508_v6  ;;  %v549_v13 = vmul.f32 0.0078125, %v530_v26 }
 0x335   :  { %v565_v15 = vsub.f32 %v549_v13, %v557_v9  ;;  %v558_v39 = vmul.f32 %v4171_v12, %v4171_v12 }
 0x336   :  { %v3674_v16 = vpop.eup %3673  ;;  %v532_v20 = vpop.xlane.xlu1 %531 }
 0x337   :  { %v534_v25 = vpop.xlane.xlu0 %533  ;;  %v581_v23 = vadd.f32 1e-05, %v565_v15  ;;  %v550_v32 = vmul.f32 0.0078125, %v532_v20  ;;  %v593_v42 = vmul.f32 %v3674_v16, %v569_v14 }
 0x338   :  { %v551_v38 = vmul.f32 0.0078125, %v534_v25 }
 0x339   :  { %3681 = vrsqrt.f32 %v581_v23  ;;  %v566_v19 = vsub.f32 %v550_v32, %v558_v39  ;;  %v606_v44 = vmul.f32 %v4180_v31, %v593_v42  ;;  %v574_v32 = vsub.f32 %v4150_v62, %v4171_v12 }
 0x33a   :  { %v567_v43 = vsub.f32 %v551_v38, %v559_v17  ;;  %v3676_v46 = vpop.eup %3675  ;;  %v536_v52 = vpop.xlane.xlu1 %535 }
 0x33b   :  { %v3678_v53 = vpop.eup %3677  ;;  %v582_v54 = vadd.f32 1e-05, %v566_v19  ;;  %v552_v57 = vmul.f32 0.0078125, %v536_v52  ;;  %v594_v58 = vmul.f32 %v3676_v46, %v570_v47  ;;  %v619_v50 = vadd.f32 %v3114_v45, %v606_v44 }
 0x33c   :  { %v583_v56 = vadd.f32 1e-05, %v567_v43  ;;  %v595_v30 = vmul.f32 %v3678_v53, %v571_v49  ;;  %v575_v47 = vsub.f32 %v4139_v55, %v4169_v5 }
 0x33d   :  { %3683 = vrsqrt.f32 %v582_v54  ;;  %v568_v63 = vsub.f32 %v552_v57, %v560_v51  ;;  %v607_v2 = vmul.f32 %v4180_v31, %v594_v58  ;;  %v627_v9 = vmax.f32 %v619_v50, 0.0 }
 0x33e   :  { %v3680_v3 = vpop.eup %3679  ;;  %3685 = vrsqrt.f32 %v583_v56  ;;  %v608_v24 = vmul.f32 %v4180_v31, %v595_v30 }
 0x33f   :  { %v584_v21 = vadd.f32 1e-05, %v568_v63  ;;  %v620_v6 = vadd.f32 %v3114_v45, %v607_v2  ;;  %v596_v26 = vmul.f32 %v3680_v3, %v572_v61 }
 0x340   :  { %v621_v15 = vadd.f32 %v3114_v45, %v608_v24 }
 0x341   :  { %3687 = vrsqrt.f32 %v584_v21  ;;  %v628_v13 = vmax.f32 %v620_v6, 0.0  ;;  %v609_v14 = vmul.f32 %v4180_v31, %v596_v26 }
 0x342   :  { %v629_v34 = vmax.f32 %v621_v15, 0.0 }
 0x343   :  { %v652_v16 = vpack.c.bf16 %v628_v13, %v627_v9  ;;  %v622_v17 = vadd.f32 %v3114_v45, %v609_v14 }
 0x345   :  { %3440 = vmatprep.mubr.bf16.mxu0 %v652_v16  ;;  %v630_v39 = vmax.f32 %v622_v17, 0.0 }
 0x346   :  { %v3682_v20 = vpop.eup %3681 }
 0x347   :  { %v653_v25 = vpack.c.bf16 %v630_v39, %v629_v34  ;;  %v597_v23 = vmul.f32 %v3682_v20, %v573_v48 }
 0x349   :  { %3441 = vmatmul.mubr.bf16.vlgmr.msra.gmra.mxu0 %v653_v25  ;;  %v610_v38 = vmul.f32 %v4180_v31, %v597_v23 }
 0x34a   :  { %v3684_v42 = vpop.eup %3683 }
 0x34b   :  { %v3686_v19 = vpop.eup %3685  ;;  %v598_v43 = vmul.f32 %v3684_v42, %v574_v32  ;;  %v623_v46 = vadd.f32 %v3114_v45, %v610_v38  ;;  %v3593_v32 = vld [vmem:[#allocation7 + $0x78] sm:$0xff]   ;;  %v3595_v42 = vld [vmem:[#allocation7 + $0x70] sm:$0xff]  }
 0x34c   :  { %v599_v44 = vmul.f32 %v3686_v19, %v575_v47  ;;  %v3594_v38 = vld [vmem:[#allocation7 + $0x38] sm:$0xff]   ;;  %3248 = vmatprep.subr.bf16.mxu1 %v3593_v32  ;;  %v3596_v47 = vld [vmem:[#allocation7 + $0x30] sm:$0xff]   ;;  %v3597_v19 = vld [vmem:[#allocation7 + $0x68] sm:$0xff]  }
 0x34d   :  { %v611_v4 = vmul.f32 %v4180_v31, %v598_v43  ;;  %v631_v52 = vmax.f32 %v623_v46, 0.0  ;;  %3249 = vmatpush3.bf16.msra.mxu1 %v3594_v38  ;;  %v3598_v43 = vld [vmem:[#allocation7 + $0x28] sm:$0xff]   ;;  %v3602_v46 = vld [vmem:[#allocation7 + $0x18] sm:$0xff]  }
 0x34e   :  { %v3688_v49 = vpop.eup %3687  ;;  %v612_v51 = vmul.f32 %v4180_v31, %v599_v44  ;;  %3250 = vmatprep.subr.bf16.mxu1 %v3595_v42  ;;  %v3599_v44 = vld [vmem:[#allocation7 + $0x60] sm:$0xff]  }
 0x34f   :  { %v624_v62 = vadd.f32 %v3114_v45, %v611_v4  ;;  %v600_v12 = vmul.f32 %v3688_v49, %v576_v59  ;;  %v3600_v59 = vld [vmem:[#allocation7 + $0x20] sm:$0xff]   ;;  %v3601_v4 = vld [vmem:[#allocation7 + $0x58] sm:$0xff]   ;;  %v3603_v49 = vld [vmem:[#allocation7 + $0x50] sm:$0xff]  }
 0x350   :  { %v625_v56 = vadd.f32 %v3114_v45, %v612_v51  ;;  %v3604_v51 = vld [vmem:[#allocation7 + $0x10] sm:$0xff]  }
 0x351   :  { %v632_v53 = vmax.f32 %v624_v62, 0.0  ;;  %v613_v54 = vmul.f32 %v4180_v31, %v600_v12  ;;  %3251 = vmatpush3.bf16.msra.mxu1 %v3596_v47  ;;  %v3605_v62 = vld [vmem:[#allocation7 + $0x48] sm:$0xff]  }
 0x352   :  { %v633_v57 = vmax.f32 %v625_v56, 0.0  ;;  %3252 = vmatprep.subr.bf16.mxu1 %v3597_v19  ;;  %v3606_v12 = vld [vmem:[#allocation7 + $0x8] sm:$0xff]  }
 0x353   :  { %v654_v55 = vpack.c.bf16 %v632_v53, %v631_v52  ;;  %v626_v5 = vadd.f32 %v3114_v45, %v613_v54  ;;  %v3607_v52 = vld [vmem:[#allocation7 + $0x40] sm:$0xff]  }
 0x354   :  { %v3608_v53 = vld [vmem:[#allocation7] sm:$0xff]  }
 0x355   :  { %3444 = vmatprep.mubr.bf16.mxu0 %v654_v55  ;;  %v634_v58 = vmax.f32 %v626_v5, 0.0  ;;  %3253 = vmatpush3.bf16.msra.mxu1 %v3598_v43 }
 0x356   :  { %3254 = vmatprep.subr.bf16.mxu1 %v3599_v44 }
 0x357   :  { %v655_v50 = vpack.c.bf16 %v634_v58, %v633_v57 }
 0x359   :  { %3445 = vmatmul.mubr.bf16.gmra.mxu0 %v655_v50  ;;  %3255 = vmatpush3.bf16.msra.mxu1 %v3600_v59 }
 0x35a   :  { %3256 = vmatprep.subr.bf16.mxu1 %v3601_v4 }
 0x35d   :  { %3257 = vmatpush3.bf16.msra.mxu1 %v3602_v46 }
 0x35e   :  { %3258 = vmatprep.subr.bf16.mxu1 %v3603_v49 }
 0x361   :  { %3259 = vmatpush3.bf16.msra.mxu1 %v3604_v51 }
 0x362   :  { %3260 = vmatprep.subr.bf16.mxu1 %v3605_v62 }
 0x365   :  { %3261 = vmatpush3.bf16.msra.mxu1 %v3606_v12 }
 0x366   :  { %3262 = vmatprep.subr.bf16.mxu1 %v3607_v52 }
 0x369   :  { %3263 = vmatpush3.bf16.msra.mxu1 %v3608_v53 }
 0x36a   :  { %3472 = vmatprep.subr.bf16.mxu1 %v3617_v33 }
 0x409   :  { %v3442_v28 = vpop.f32.mrf.mxu0 }
 0x40a   :  { %v4212_v45 = vadd.f32 %v3442_v28, %v3115_v18 }
 0x40b   :  { %v743_v30 = vpop.f32.mrf.mxu0 }
 0x40c   :  { %v4204_v61 = vadd.f32 %v3115_v18, %v743_v30  ;;  %v792_v6 = vmul.f32 %v4212_v45, %v4212_v45 }
 0x40d   :  { %v3443_v63 = vpop.f32.mrf.mxu0 }
 0x40e   :  { %774 = vadd.xlane.f32.xlu0 %v4204_v61  ;;  %v790_v31 = vmul.f32 %v4204_v61, %v4204_v61  ;;  %v4217_v21 = vadd.f32 %v3443_v63, %v3115_v18 }
 0x40f   :  { %v746_v2 = vpop.f32.mrf.mxu0 }
 0x410   :  { %v4207_v3 = vadd.f32 %v3115_v18, %v746_v2  ;;  %v793_v14 = vmul.f32 %v4217_v21, %v4217_v21 }
 0x412   :  { %776 = vadd.xlane.f32.xlu1 %v4207_v3  ;;  %798 = vadd.xlane.f32.xlu0 %v790_v31  ;;  %v791_v24 = vmul.f32 %v4207_v3, %v4207_v3 }
 0x416   :  { %800 = vadd.xlane.f32.xlu1 %v791_v24  ;;  %778 = vadd.xlane.f32.xlu0 %v4212_v45 }
 0x419   :  { %v3446_v26 = vpop.f32.mrf.mxu0 }
 0x41a   :  { %780 = vadd.xlane.f32.xlu1 %v4217_v21  ;;  %802 = vadd.xlane.f32.xlu0 %v792_v6  ;;  %v4232_v34 = vadd.f32 %v3446_v26, %v3115_v18 }
 0x41b   :  { %v759_v9 = vpop.f32.mrf.mxu0 }
 0x41c   :  { %v4222_v13 = vadd.f32 %v3115_v18, %v759_v9  ;;  %v796_v25 = vmul.f32 %v4232_v34, %v4232_v34 }
 0x41d   :  { %v3447_v15 = vpop.f32.mrf.mxu0 }
 0x41e   :  { %804 = vadd.xlane.f32.xlu1 %v793_v14  ;;  %782 = vadd.xlane.f32.xlu0 %v4222_v13  ;;  %v794_v48 = vmul.f32 %v4222_v13, %v4222_v13  ;;  %v4237_v20 = vadd.f32 %v3447_v15, %v3115_v18 }
 0x41f   :  { %v762_v16 = vpop.f32.mrf.mxu0 }
 0x420   :  { %v4227_v17 = vadd.f32 %v3115_v18, %v762_v16  ;;  %v797_v23 = vmul.f32 %v4237_v20, %v4237_v20 }
 0x422   :  { %784 = vadd.xlane.f32.xlu1 %v4227_v17  ;;  %806 = vadd.xlane.f32.xlu0 %v794_v48  ;;  %v795_v39 = vmul.f32 %v4227_v17, %v4227_v17 }
 0x426   :  { %808 = vadd.xlane.f32.xlu1 %v795_v39  ;;  %786 = vadd.xlane.f32.xlu0 %v4232_v34 }
 0x42a   :  { %788 = vadd.xlane.f32.xlu1 %v4237_v20  ;;  %810 = vadd.xlane.f32.xlu0 %v796_v25 }
 0x42e   :  { %812 = vadd.xlane.f32.xlu1 %v797_v23 }
 0x497   :  { %v775_v54 = vpop.xlane.xlu0 %774 }
 0x498   :  { %v814_v56 = vmul.f32 0.0078125, %v775_v54 }
 0x49a   :  { %v830_v57 = vmul.f32 %v814_v56, %v814_v56  ;;  %v846_v51 = vsub.f32 %v4204_v61, %v814_v56 }
 0x49b   :  { %v777_v55 = vpop.xlane.xlu1 %776  ;;  %v799_v5 = vpop.xlane.xlu0 %798 }
 0x49c   :  { %v815_v58 = vmul.f32 0.0078125, %v777_v55  ;;  %v822_v50 = vmul.f32 0.0078125, %v799_v5 }
 0x49e   :  { %v838_v28 = vsub.f32 %v822_v50, %v830_v57  ;;  %v831_v63 = vmul.f32 %v815_v58, %v815_v58 }
 0x49f   :  { %v801_v18 = vpop.xlane.xlu1 %800  ;;  %v779_v30 = vpop.xlane.xlu0 %778 }
 0x4a0   :  { %v854_v2 = vadd.f32 1e-05, %v838_v28  ;;  %v823_v31 = vmul.f32 0.0078125, %v801_v18  ;;  %v816_v24 = vmul.f32 0.0078125, %v779_v30  ;;  %v4259_v28 = vld [vmem:[#allocation8 + $0x7] ss:$0 sm:$0xff]  ;;  %v847_v18 = vsub.f32 %v4207_v3, %v815_v58 }
 0x4a2   :  { %3689 = vrsqrt.f32 %v854_v2  ;;  %v839_v6 = vsub.f32 %v823_v31, %v831_v63  ;;  %v832_v15 = vmul.f32 %v816_v24, %v816_v24 }
 0x4a3   :  { %v781_v26 = vpop.xlane.xlu1 %780  ;;  %v803_v9 = vpop.xlane.xlu0 %802 }
 0x4a4   :  { %v855_v14 = vadd.f32 1e-05, %v839_v6  ;;  %v4244_v16 = vmul.f32 0.0078125, %v781_v26  ;;  %v824_v48 = vmul.f32 0.0078125, %v803_v9 }
 0x4a6   :  { %3691 = vrsqrt.f32 %v855_v14  ;;  %v840_v39 = vsub.f32 %v824_v48, %v832_v15  ;;  %v833_v32 = vmul.f32 %v4244_v16, %v4244_v16  ;;  %v4267_v15 = vld [vmem:[#allocation8 + $0x8] ss:$0 sm:$0xff]  ;;  %v848_v48 = vsub.f32 %v4212_v45, %v816_v24 }
 0x4a7   :  { %v805_v25 = vpop.xlane.xlu1 %804  ;;  %v783_v23 = vpop.xlane.xlu0 %782 }
 0x4a8   :  { %v856_v38 = vadd.f32 1e-05, %v840_v39  ;;  %v825_v42 = vmul.f32 0.0078125, %v805_v25  ;;  %v4248_v47 = vmul.f32 0.0078125, %v783_v23 }
 0x4aa   :  { %3693 = vrsqrt.f32 %v856_v38  ;;  %v841_v19 = vsub.f32 %v825_v42, %v833_v32  ;;  %v834_v4 = vmul.f32 %v4248_v47, %v4248_v47 }
 0x4ab   :  { %v785_v43 = vpop.xlane.xlu1 %784  ;;  %v807_v44 = vpop.xlane.xlu0 %806 }
 0x4ac   :  { %v857_v59 = vadd.f32 1e-05, %v841_v19  ;;  %v4252_v46 = vmul.f32 0.0078125, %v785_v43  ;;  %v826_v49 = vmul.f32 0.0078125, %v807_v44  ;;  %v849_v44 = vsub.f32 %v4217_v21, %v4244_v16 }
 0x4ae   :  { %3695 = vrsqrt.f32 %v857_v59  ;;  %v842_v62 = vsub.f32 %v826_v49, %v834_v4  ;;  %v835_v52 = vmul.f32 %v4252_v46, %v4252_v46 }
 0x4af   :  { %v3690_v12 = vpop.eup %3689  ;;  %v809_v53 = vpop.xlane.xlu1 %808 }
 0x4b0   :  { %v787_v54 = vpop.xlane.xlu0 %786  ;;  %v858_v55 = vadd.f32 1e-05, %v842_v62  ;;  %v827_v5 = vmul.f32 0.0078125, %v809_v53  ;;  %v870_v50 = vmul.f32 %v3690_v12, %v846_v51 }
 0x4b1   :  { %v4257_v57 = vmul.f32 0.0078125, %v787_v54 }
 0x4b2   :  { %3697 = vrsqrt.f32 %v858_v55  ;;  %v843_v30 = vsub.f32 %v827_v5, %v835_v52  ;;  %v883_v31 = vmul.f32 %v4259_v28, %v870_v50  ;;  %v850_v52 = vsub.f32 %v4222_v13, %v4248_v47 }
 0x4b3   :  { %v3692_v61 = vpop.eup %3691  ;;  %v836_v56 = vmul.f32 %v4257_v57, %v4257_v57  ;;  %v789_v63 = vpop.xlane.xlu1 %788 }
 0x4b4   :  { %v811_v2 = vpop.xlane.xlu0 %810  ;;  %v859_v6 = vadd.f32 1e-05, %v843_v30  ;;  %v4265_v26 = vmul.f32 0.0078125, %v789_v63  ;;  %v871_v14 = vmul.f32 %v3692_v61, %v847_v18  ;;  %v896_v23 = vadd.f32 %v4267_v15, %v883_v31 }
 0x4b5   :  { %v828_v9 = vmul.f32 0.0078125, %v811_v2  ;;  %v851_v18 = vsub.f32 %v4227_v17, %v4252_v46 }
 0x4b6   :  { %3699 = vrsqrt.f32 %v859_v6  ;;  %v884_v25 = vmul.f32 %v4259_v28, %v871_v14  ;;  %v837_v32 = vmul.f32 %v4265_v26, %v4265_v26  ;;  %v904_v4 = vmax.f32 %v896_v23, 0.0 }
 0x4b7   :  { %v844_v3 = vsub.f32 %v828_v9, %v836_v56  ;;  %v3694_v58 = vpop.eup %3693  ;;  %v813_v39 = vpop.xlane.xlu1 %812  ;;  %v852_v6 = vsub.f32 %v4232_v34, %v4257_v57 }
 0x4b8   :  { %v829_v42 = vmul.f32 0.0078125, %v813_v39  ;;  %v872_v19 = vmul.f32 %v3694_v58, %v848_v48  ;;  %v897_v43 = vadd.f32 %v4267_v15, %v884_v25  ;;  %v853_v25 = vsub.f32 %v4237_v20, %v4265_v26 }
 0x4b9   :  { %v860_v38 = vadd.f32 1e-05, %v844_v3 }
 0x4ba   :  { %v845_v45 = vsub.f32 %v829_v42, %v837_v32  ;;  %v885_v24 = vmul.f32 %v4259_v28, %v872_v19  ;;  %v905_v49 = vmax.f32 %v897_v43, 0.0 }
 0x4bb   :  { %3701 = vrsqrt.f32 %v860_v38  ;;  %v3696_v59 = vpop.eup %3695 }
 0x4bc   :  { %v861_v51 = vadd.f32 1e-05, %v845_v45  ;;  %v873_v62 = vmul.f32 %v3696_v59, %v849_v44  ;;  %v912_v12 = vmax.f32 %v904_v4, %v905_v49  ;;  %v898_v54 = vadd.f32 %v4267_v15, %v885_v24 }
 0x4bd   :  { %v972_v43 = vpack.c.bf16 %v905_v49, %v904_v4 }
 0x4be   :  { %3703 = vrsqrt.f32 %v861_v51  ;;  %v886_v53 = vmul.f32 %v4259_v28, %v873_v62  ;;  %v913_v21 = vrot.slane %v912_v12, 4  ;;  %v906_v30 = vmax.f32 %v898_v54, 0.0 }
 0x4bf   :  { %v3698_v55 = vpop.eup %3697 }
 0x4c0   :  { %v899_v16 = vadd.f32 %v4267_v15, %v886_v53  ;;  %v874_v5 = vmul.f32 %v3698_v55, %v850_v52  ;;  %v914_v50 = vmax.f32 %v912_v12, %v913_v21 }
 0x4c2   :  { %v907_v61 = vmax.f32 %v899_v16, 0.0  ;;  %v887_v56 = vmul.f32 %v4259_v28, %v874_v5  ;;  %v915_v13 = vrot.slane %v914_v50, 2 }
 0x4c3   :  { %v3700_v63 = vpop.eup %3699 }
 0x4c4   :  { %v919_v47 = vmax.f32 %v906_v30, %v907_v61  ;;  %v875_v2 = vmul.f32 %v3700_v63, %v851_v18  ;;  %v916_v31 = vmax.f32 %v914_v50, %v915_v13  ;;  %v900_v48 = vadd.f32 %v4267_v15, %v887_v56 }
 0x4c5   :  { %v974_v4 = vpack.c.bf16 %v907_v61, %v906_v30  ;;  %v3126_v61 = vld [vmem:[#allocation8 + $0x9] ss:$0 sm:$0xff] }
 0x4c6   :  { %v920_v9 = vrot.slane %v919_v47, 4  ;;  %v888_v14 = vmul.f32 %v4259_v28, %v875_v2  ;;  %v917_v58 = vrot.slane %v916_v31, 1  ;;  %v908_v38 = vmax.f32 %v900_v48, 0.0 }
 0x4c8   :  { %v3702_v3 = vpop.eup %3701  ;;  %v921_v17 = vmax.f32 %v919_v47, %v920_v9  ;;  %v901_v46 = vadd.f32 %v4267_v15, %v888_v14  ;;  %v918_v23 = vmax.f32 %v916_v31, %v917_v58 }
 0x4c9   :  { %v876_v39 = vmul.f32 %v3702_v3, %v852_v6 }
 0x4ca   :  { %v922_v32 = vrot.slane %v921_v17, 2  ;;  %v909_v42 = vmax.f32 %v901_v46, 0.0  ;;  %v973_v19 = vpack.c.bf16 %v918_v23, %v918_v23 }
 0x4cb   :  { %v889_v34 = vmul.f32 %v4259_v28, %v876_v39  ;;  %v3704_v57 = vpop.eup %3703 }
 0x4cc   :  { %v923_v44 = vmax.f32 %v921_v17, %v922_v32  ;;  %v926_v45 = vmax.f32 %v908_v38, %v909_v42  ;;  %v877_v24 = vmul.f32 %v3704_v57, %v853_v25  ;;  %1113 = vmatprep.mubr.bf16.mxu1 %v973_v19  ;;  %v976_v13 = vpack.c.bf16 %v909_v42, %v908_v38 }
 0x4cd   :  { %1114 = vmatmul.mubr.bf16.vlgmr.msra.gmra.mxu1 %v972_v43  ;;  %v902_v20 = vadd.f32 %v4267_v15, %v889_v34 }
 0x4ce   :  { %v924_v59 = vrot.slane %v923_v44, 1  ;;  %v927_v51 = vrot.slane %v926_v45, 4  ;;  %v890_v62 = vmul.f32 %v4259_v28, %v877_v24  ;;  %3473 = vmatpush3.bf16.msra.mxu1 %v3617_v33 }
 0x4cf   :  { %v910_v55 = vmax.f32 %v902_v20, 0.0  ;;  %3474 = vmatprep.subr.bf16.mxu1 %v3618_v40 }
 0x4d0   :  { %v925_v26 = vmax.f32 %v923_v44, %v924_v59  ;;  %v928_v12 = vmax.f32 %v926_v45, %v927_v51  ;;  %v903_v52 = vadd.f32 %v4267_v15, %v890_v62 }
 0x4d2   :  { %v975_v53 = vpack.c.bf16 %v925_v26, %v925_v26  ;;  %v929_v54 = vrot.slane %v928_v12, 2  ;;  %v911_v21 = vmax.f32 %v903_v52, 0.0  ;;  %3475 = vmatpush3.bf16.msra.mxu1 %v3618_v40  ;;  %v3156_v40 = vld [vmem:[#allocation8 + $0xf] ss:$0 sm:$0xff] }
 0x4d3   :  { %3476 = vmatprep.subr.bf16.mxu1 %v3619_v27 }
 0x4d4   :  { %1121 = vmatprep.mubr.bf16.mxu1 %v975_v53  ;;  %v930_v49 = vmax.f32 %v928_v12, %v929_v54  ;;  %v933_v16 = vmax.f32 %v910_v55, %v911_v21  ;;  %v978_v6 = vpack.c.bf16 %v911_v21, %v910_v55 }
 0x4d5   :  { %1122 = vmatmul.mubr.bf16.gmra.mxu1 %v974_v4 }
 0x4d6   :  { %v931_v5 = vrot.slane %v930_v49, 1  ;;  %v934_v50 = vrot.slane %v933_v16, 4  ;;  %3477 = vmatpush3.bf16.msra.mxu1 %v3619_v27 }
 0x4d8   :  { %v932_v18 = vmax.f32 %v930_v49, %v931_v5  ;;  %v935_v56 = vmax.f32 %v933_v16, %v934_v50  ;;  %v3609_v5 = vld [vmem:[#allocation5 + $0xf8] sm:$0xff]  }
 0x4d9   :  { %3448 = vmatprep.subr.bf16.mxu0 %v3609_v5 }
 0x4da   :  { %v977_v28 = vpack.c.bf16 %v932_v18, %v932_v18  ;;  %v936_v63 = vrot.slane %v935_v56, 2  ;;  %3449 = vmatpush3.bf16.msra.mxu0 %v3609_v5 }
 0x4dc   :  { %1129 = vmatprep.mubr.bf16.mxu1 %v977_v28  ;;  %v937_v47 = vmax.f32 %v935_v56, %v936_v63  ;;  %v3610_v63 = vld [vmem:[#allocation5 + $0xf0] sm:$0xff]  }
 0x4dd   :  { %1130 = vmatmul.mubr.bf16.gmra.mxu1 %v976_v13  ;;  %3450 = vmatprep.subr.bf16.mxu0 %v3610_v63 }
 0x4de   :  { %v938_v15 = vrot.slane %v937_v47, 1  ;;  %3451 = vmatpush3.bf16.msra.mxu0 %v3610_v63 }
 0x4e0   :  { %v939_v2 = vmax.f32 %v937_v47, %v938_v15  ;;  %v3611_v47 = vld [vmem:[#allocation5 + $0xe8] sm:$0xff]   ;;  %v3612_v15 = vld [vmem:[#allocation5 + $0xe0] sm:$0xff]  }
 0x4e1   :  { %3452 = vmatprep.subr.bf16.mxu0 %v3611_v47 }
 0x4e2   :  { %v979_v31 = vpack.c.bf16 %v939_v2, %v939_v2  ;;  %3453 = vmatpush3.bf16.msra.mxu0 %v3611_v47  ;;  %v3613_v2 = vld [vmem:[#allocation5 + $0xd8] sm:$0xff]  }
 0x4e3   :  { %3454 = vmatprep.subr.bf16.mxu0 %v3612_v15 }
 0x4e4   :  { %1137 = vmatprep.mubr.bf16.mxu1 %v979_v31  ;;  %v3614_v31 = vld [vmem:[#allocation5 + $0xd0] sm:$0xff]  }
 0x4e5   :  { %1138 = vmatmul.mubr.bf16.gmra.mxu1 %v978_v6  ;;  %v3615_v6 = vld [vmem:[#allocation5 + $0xc8] sm:$0xff]  }
 0x4e6   :  { %3455 = vmatpush3.bf16.msra.mxu0 %v3612_v15 }
 0x4e7   :  { %3456 = vmatprep.subr.bf16.mxu0 %v3613_v2 }
 0x4ea   :  { %3457 = vmatpush3.bf16.msra.mxu0 %v3613_v2 }
 0x4eb   :  { %3458 = vmatprep.subr.bf16.mxu0 %v3614_v31 }
 0x4ee   :  { %3459 = vmatpush3.bf16.msra.mxu0 %v3614_v31 }
 0x4ef   :  { %3460 = vmatprep.subr.bf16.mxu0 %v3615_v6 }
 0x4f2   :  { %3461 = vmatpush3.bf16.msra.mxu0 %v3615_v6 }
 0x58d   :  { %v3264_v30 = vpop.f32.mrf.mxu1 }
 0x58f   :  { %v3265_v9 = vpop.f32.mrf.mxu1 }
 0x590   :  { %v3266_v14 = vadd.f32 %v3265_v9, %v3264_v30  ;;  %v3616_v30 = vld [vmem:[#allocation5 + $0xc0] sm:$0xff]  }
 0x591   :  { %v3267_v48 = vpop.f32.mrf.mxu1  ;;  %3462 = vmatprep.subr.bf16.mxu0 %v3616_v30 }
 0x592   :  { %v4297_v3 = vadd.f32 %v3266_v14, %v3126_v61  ;;  %3463 = vmatpush3.bf16.msra.mxu0 %v3616_v30 }
 0x593   :  { %v3268_v58 = vpop.f32.mrf.mxu1 }
 0x594   :  { %v3269_v17 = vadd.f32 %v3268_v58, %v3267_v48  ;;  %1146 = vadd.xlane.f32.xlu0 %v4297_v3  ;;  %v1162_v25 = vmul.f32 %v4297_v3, %v4297_v3 }
 0x595   :  { %v3270_v46 = vpop.f32.mrf.mxu1 }
 0x596   :  { %v4300_v39 = vadd.f32 %v3269_v17, %v3126_v61 }
 0x597   :  { %v3271_v23 = vpop.f32.mrf.mxu1 }
 0x598   :  { %v3272_v32 = vadd.f32 %v3271_v23, %v3270_v46  ;;  %1148 = vadd.xlane.f32.xlu1 %v4300_v39  ;;  %1170 = vadd.xlane.f32.xlu0 %v1162_v25  ;;  %v1163_v34 = vmul.f32 %v4300_v39, %v4300_v39 }
 0x599   :  { %v3273_v38 = vpop.f32.mrf.mxu1 }
 0x59a   :  { %v4305_v42 = vadd.f32 %v3272_v32, %v3126_v61 }
 0x59b   :  { %v3274_v57 = vpop.f32.mrf.mxu1 }
 0x59c   :  { %v3275_v19 = vadd.f32 %v3274_v57, %v3273_v38  ;;  %1172 = vadd.xlane.f32.xlu1 %v1163_v34  ;;  %1150 = vadd.xlane.f32.xlu0 %v4305_v42  ;;  %v1164_v45 = vmul.f32 %v4305_v42, %v4305_v42 }
 0x59d   :  { %v3276_v43 = vpop.f32.mrf.mxu1 }
 0x59e   :  { %v4310_v44 = vadd.f32 %v3275_v19, %v3126_v61 }
 0x59f   :  { %v3277_v24 = vpop.f32.mrf.mxu1 }
 0x5a0   :  { %v3278_v59 = vadd.f32 %v3277_v24, %v3276_v43  ;;  %1152 = vadd.xlane.f32.xlu1 %v4310_v44  ;;  %1174 = vadd.xlane.f32.xlu0 %v1164_v45  ;;  %v1165_v20 = vmul.f32 %v4310_v44, %v4310_v44 }
 0x5a1   :  { %v3279_v51 = vpop.f32.mrf.mxu1 }
 0x5a2   :  { %v4315_v62 = vadd.f32 %v3278_v59, %v3126_v61 }
 0x5a3   :  { %v3280_v26 = vpop.f32.mrf.mxu1 }
 0x5a4   :  { %v3281_v12 = vadd.f32 %v3280_v26, %v3279_v51  ;;  %1176 = vadd.xlane.f32.xlu1 %v1165_v20  ;;  %1154 = vadd.xlane.f32.xlu0 %v4315_v62  ;;  %v1166_v54 = vmul.f32 %v4315_v62, %v4315_v62 }
 0x5a5   :  { %v3282_v52 = vpop.f32.mrf.mxu1 }
 0x5a6   :  { %v4320_v53 = vadd.f32 %v3281_v12, %v3126_v61 }
 0x5a7   :  { %v3283_v55 = vpop.f32.mrf.mxu1 }
 0x5a8   :  { %v3284_v21 = vadd.f32 %v3283_v55, %v3282_v52  ;;  %1156 = vadd.xlane.f32.xlu1 %v4320_v53  ;;  %1178 = vadd.xlane.f32.xlu0 %v1166_v54  ;;  %v1167_v16 = vmul.f32 %v4320_v53, %v4320_v53 }
 0x5a9   :  { %v3285_v4 = vpop.f32.mrf.mxu1 }
 0x5aa   :  { %v4325_v49 = vadd.f32 %v3284_v21, %v3126_v61 }
 0x5ab   :  { %v3286_v50 = vpop.f32.mrf.mxu1 }
 0x5ac   :  { %v3287_v18 = vadd.f32 %v3286_v50, %v3285_v4  ;;  %1180 = vadd.xlane.f32.xlu1 %v1167_v16  ;;  %1158 = vadd.xlane.f32.xlu0 %v4325_v49  ;;  %v1168_v28 = vmul.f32 %v4325_v49, %v4325_v49 }
 0x5ae   :  { %v4330_v56 = vadd.f32 %v3287_v18, %v3126_v61 }
 0x5b0   :  { %1160 = vadd.xlane.f32.xlu1 %v4330_v56  ;;  %1182 = vadd.xlane.f32.xlu0 %v1168_v28  ;;  %v1169_v13 = vmul.f32 %v4330_v56, %v4330_v56 }
 0x5b4   :  { %1184 = vadd.xlane.f32.xlu1 %v1169_v13 }
 0x61d   :  { %v1147_v61 = vpop.xlane.xlu0 %1146 }
 0x61e   :  { %v1186_v9 = vmul.f32 0.0078125, %v1147_v61 }
 0x620   :  { %v1202_v58 = vmul.f32 %v1186_v9, %v1186_v9  ;;  %v1218_v15 = vsub.f32 %v4297_v3, %v1186_v9 }
 0x621   :  { %v1149_v14 = vpop.xlane.xlu1 %1148  ;;  %v1171_v48 = vpop.xlane.xlu0 %1170 }
 0x622   :  { %v1187_v17 = vmul.f32 0.0078125, %v1149_v14  ;;  %v1194_v46 = vmul.f32 0.0078125, %v1171_v48 }
 0x624   :  { %v1210_v25 = vsub.f32 %v1194_v46, %v1202_v58  ;;  %v1203_v38 = vmul.f32 %v1187_v17, %v1187_v17 }
 0x625   :  { %v1173_v23 = vpop.xlane.xlu1 %1172  ;;  %v1151_v32 = vpop.xlane.xlu0 %1150 }
 0x626   :  { %v1226_v34 = vadd.f32 1e-05, %v1210_v25  ;;  %v1195_v57 = vmul.f32 0.0078125, %v1173_v23  ;;  %v1188_v19 = vmul.f32 0.0078125, %v1151_v32  ;;  %v4350_v25 = vld [vmem:[#allocation8 + $0xa] ss:$0 sm:$0xff]  ;;  %v1219_v23 = vsub.f32 %v4300_v39, %v1187_v17 }
 0x628   :  { %3705 = vrsqrt.f32 %v1226_v34  ;;  %v1211_v43 = vsub.f32 %v1195_v57, %v1203_v38  ;;  %v1204_v51 = vmul.f32 %v1188_v19, %v1188_v19 }
 0x629   :  { %v1153_v45 = vpop.xlane.xlu1 %1152  ;;  %v1175_v24 = vpop.xlane.xlu0 %1174 }
 0x62a   :  { %v1227_v59 = vadd.f32 1e-05, %v1211_v43  ;;  %v4337_v20 = vmul.f32 0.0078125, %v1153_v45  ;;  %v1196_v26 = vmul.f32 0.0078125, %v1175_v24 }
 0x62c   :  { %3707 = vrsqrt.f32 %v1227_v59  ;;  %v1212_v12 = vsub.f32 %v1196_v26, %v1204_v51  ;;  %v1205_v55 = vmul.f32 %v4337_v20, %v4337_v20  ;;  %v3144_v51 = vld [vmem:[#allocation8 + $0xb] ss:$0 sm:$0xff]  ;;  %v1220_v26 = vsub.f32 %v4305_v42, %v1188_v19 }
 0x62d   :  { %v1177_v52 = vpop.xlane.xlu1 %1176  ;;  %v1155_v54 = vpop.xlane.xlu0 %1154 }
 0x62e   :  { %v1228_v21 = vadd.f32 1e-05, %v1212_v12  ;;  %v1197_v4 = vmul.f32 0.0078125, %v1177_v52  ;;  %v4341_v16 = vmul.f32 0.0078125, %v1155_v54 }
 0x630   :  { %3709 = vrsqrt.f32 %v1228_v21  ;;  %v1213_v5 = vsub.f32 %v1197_v4, %v1205_v55  ;;  %v1206_v63 = vmul.f32 %v4341_v16, %v4341_v16 }
 0x631   :  { %v1157_v50 = vpop.xlane.xlu1 %1156  ;;  %v1179_v18 = vpop.xlane.xlu0 %1178 }
 0x632   :  { %v1229_v28 = vadd.f32 1e-05, %v1213_v5  ;;  %v4345_v13 = vmul.f32 0.0078125, %v1157_v50  ;;  %v1198_v47 = vmul.f32 0.0078125, %v1179_v18  ;;  %v1221_v18 = vsub.f32 %v4310_v44, %v4337_v20 }
 0x634   :  { %3711 = vrsqrt.f32 %v1229_v28  ;;  %v1214_v2 = vsub.f32 %v1198_v47, %v1206_v63  ;;  %v1207_v6 = vmul.f32 %v4345_v13, %v4345_v13 }
 0x635   :  { %v3706_v31 = vpop.eup %3705  ;;  %v1181_v30 = vpop.xlane.xlu1 %1180 }
 0x636   :  { %v1159_v61 = vpop.xlane.xlu0 %1158  ;;  %v1230_v14 = vadd.f32 1e-05, %v1214_v2  ;;  %v1199_v48 = vmul.f32 0.0078125, %v1181_v30  ;;  %v1242_v46 = vmul.f32 %v3706_v31, %v1218_v15 }
 0x637   :  { %v1192_v58 = vmul.f32 0.0078125, %v1159_v61 }
 0x638   :  { %3713 = vrsqrt.f32 %v1230_v14  ;;  %v1215_v32 = vsub.f32 %v1199_v48, %v1207_v6  ;;  %v1255_v57 = vmul.f32 %v4350_v25, %v1242_v46  ;;  %v1222_v6 = vsub.f32 %v4315_v62, %v4341_v16 }
 0x639   :  { %v3708_v38 = vpop.eup %3707  ;;  %v1208_v3 = vmul.f32 %v1192_v58, %v1192_v58  ;;  %v1161_v9 = vpop.xlane.xlu1 %1160  ;;  %v1223_v48 = vsub.f32 %v4320_v53, %v4345_v13  ;;  %v1224_v62 = vsub.f32 %v4325_v49, %v1192_v58 }
 0x63a   :  { %v1183_v34 = vpop.xlane.xlu0 %1182  ;;  %v1231_v43 = vadd.f32 1e-05, %v1215_v32  ;;  %v1193_v45 = vmul.f32 0.0078125, %v1161_v9  ;;  %v1243_v59 = vmul.f32 %v3708_v38, %v1219_v23  ;;  %v1268_v17 = vadd.f32 %v3144_v51, %v1255_v57 }
 0x63b   :  { %v1200_v24 = vmul.f32 0.0078125, %v1183_v34 }
 0x63c   :  { %3715 = vrsqrt.f32 %v1231_v43  ;;  %v1256_v39 = vmul.f32 %v4350_v25, %v1243_v59  ;;  %v1209_v55 = vmul.f32 %v1193_v45, %v1193_v45  ;;  %v1276_v19 = vmax.f32 %v1268_v17, 0.0 }
 0x63d   :  { %v1216_v12 = vsub.f32 %v1200_v24, %v1208_v3  ;;  %v3710_v52 = vpop.eup %3709  ;;  %v1185_v54 = vpop.xlane.xlu1 %1184  ;;  %v1225_v59 = vsub.f32 %v4330_v56, %v1193_v45 }
 0x63e   :  { %v1201_v4 = vmul.f32 0.0078125, %v1185_v54  ;;  %v1244_v5 = vmul.f32 %v3710_v52, %v1220_v26  ;;  %v1269_v50 = vadd.f32 %v3144_v51, %v1256_v39 }
 0x63f   :  { %v1232_v21 = vadd.f32 1e-05, %v1216_v12 }
 0x640   :  { %v1217_v28 = vsub.f32 %v1201_v4, %v1209_v55  ;;  %v1257_v63 = vmul.f32 %v4350_v25, %v1244_v5  ;;  %v1277_v47 = vmax.f32 %v1269_v50, 0.0  ;;  %v3145_v4 = vld [vmem:[#allocation8 + $0xc] ss:$0 sm:$0xff] }
 0x641   :  { %3717 = vrsqrt.f32 %v1232_v21  ;;  %v3712_v42 = vpop.eup %3711 }
 0x642   :  { %v1233_v15 = vadd.f32 1e-05, %v1217_v28  ;;  %v1245_v2 = vmul.f32 %v3712_v42, %v1221_v18  ;;  %v1301_v31 = vpack.c.bf16 %v1277_v47, %v1276_v19  ;;  %v1270_v61 = vadd.f32 %v3144_v51, %v1257_v63 }
 0x644   :  { %3719 = vrsqrt.f32 %v1233_v15  ;;  %v1258_v30 = vmul.f32 %v4350_v25, %v1245_v2  ;;  %3464 = vmatprep.mubr.bf16.mxu0 %v1301_v31  ;;  %v1278_v46 = vmax.f32 %v1270_v61, 0.0 }
 0x645   :  { %v3714_v14 = vpop.eup %3713 }
 0x646   :  { %v1271_v44 = vadd.f32 %v3144_v51, %v1258_v30  ;;  %v1246_v20 = vmul.f32 %v3714_v14, %v1222_v6 }
 0x648   :  { %v1279_v23 = vmax.f32 %v1271_v44, 0.0  ;;  %v1259_v32 = vmul.f32 %v4350_v25, %v1246_v20 }
 0x649   :  { %v3716_v38 = vpop.eup %3715 }
 0x64a   :  { %v1302_v3 = vpack.c.bf16 %v1279_v23, %v1278_v46  ;;  %v1247_v9 = vmul.f32 %v3716_v38, %v1223_v48  ;;  %v1272_v34 = vadd.f32 %v3144_v51, %v1259_v32 }
 0x64c   :  { %3465 = vmatmul.mubr.bf16.vlgmr.msra.gmra.mxu0 %v1302_v3  ;;  %v1260_v16 = vmul.f32 %v4350_v25, %v1247_v9  ;;  %v1280_v26 = vmax.f32 %v1272_v34, 0.0 }
 0x64e   :  { %v3718_v57 = vpop.eup %3717  ;;  %v1273_v43 = vadd.f32 %v3144_v51, %v1260_v16 }
 0x64f   :  { %v1248_v24 = vmul.f32 %v3718_v57, %v1224_v62 }
 0x650   :  { %v1281_v53 = vmax.f32 %v1273_v43, 0.0 }
 0x651   :  { %v1261_v13 = vmul.f32 %v4350_v25, %v1248_v24  ;;  %v3720_v12 = vpop.eup %3719 }
 0x652   :  { %v1303_v52 = vpack.c.bf16 %v1281_v53, %v1280_v26  ;;  %v1249_v54 = vmul.f32 %v3720_v12, %v1225_v59 }
 0x653   :  { %v1274_v49 = vadd.f32 %v3144_v51, %v1261_v13 }
 0x654   :  { %3468 = vmatprep.mubr.bf16.mxu0 %v1303_v52  ;;  %v1262_v39 = vmul.f32 %v4350_v25, %v1249_v54 }
 0x655   :  { %v1282_v17 = vmax.f32 %v1274_v49, 0.0 }
 0x656   :  { %v1275_v58 = vadd.f32 %v3144_v51, %v1262_v39 }
 0x658   :  { %v1283_v55 = vmax.f32 %v1275_v58, 0.0 }
 0x65a   :  { %v1304_v21 = vpack.c.bf16 %v1283_v55, %v1282_v17 }
 0x65c   :  { %3469 = vmatmul.mubr.bf16.gmra.mxu0 %v1304_v21 }
 0x70c   :  { %v3466_v5 = vpop.f32.mrf.mxu0 }
 0x70d   :  { %v4370_v50 = vadd.f32 %v3466_v5, %v3145_v4 }
 0x70e   :  { %v1392_v56 = vpop.f32.mrf.mxu0 }
 0x70f   :  { %1427 = vadd.xlane.f32.xlu0 %v4370_v50  ;;  %v4373_v18 = vadd.f32 %v3145_v4, %v1392_v56  ;;  %v1441_v19 = vmul.f32 %v4370_v50, %v4370_v50 }
 0x710   :  { %v3467_v45 = vpop.f32.mrf.mxu0 }
 0x711   :  { %v4375_v28 = vadd.f32 %v3467_v45, %v3145_v4  ;;  %v1439_v51 = vmul.f32 %v4373_v18, %v4373_v18 }
 0x712   :  { %v1395_v63 = vpop.f32.mrf.mxu0 }
 0x713   :  { %1429 = vadd.xlane.f32.xlu1 %v4375_v28  ;;  %1423 = vadd.xlane.f32.xlu0 %v4373_v18  ;;  %v4379_v25 = vadd.f32 %v3145_v4, %v1395_v63  ;;  %v1442_v2 = vmul.f32 %v4375_v28, %v4375_v28 }
 0x715   :  { %v1440_v42 = vmul.f32 %v4379_v25, %v4379_v25 }
 0x717   :  { %1425 = vadd.xlane.f32.xlu1 %v4379_v25  ;;  %1447 = vadd.xlane.f32.xlu0 %v1439_v51 }
 0x71b   :  { %1449 = vadd.xlane.f32.xlu1 %v1440_v42  ;;  %1451 = vadd.xlane.f32.xlu0 %v1441_v19 }
 0x71c   :  { %v3470_v47 = vpop.f32.mrf.mxu0 }
 0x71d   :  { %v4388_v15 = vadd.f32 %v3470_v47, %v3145_v4 }
 0x71e   :  { %v1408_v31 = vpop.f32.mrf.mxu0 }
 0x71f   :  { %1453 = vadd.xlane.f32.xlu1 %v1442_v2  ;;  %1435 = vadd.xlane.f32.xlu0 %v4388_v15  ;;  %v4393_v30 = vadd.f32 %v3145_v4, %v1408_v31  ;;  %v1445_v46 = vmul.f32 %v4388_v15, %v4388_v15 }
 0x720   :  { %v3471_v6 = vpop.f32.mrf.mxu0 }
 0x721   :  { %v4395_v61 = vadd.f32 %v3471_v6, %v3145_v4  ;;  %v1443_v20 = vmul.f32 %v4393_v30, %v4393_v30 }
 0x722   :  { %v1411_v14 = vpop.f32.mrf.mxu0 }
 0x723   :  { %1437 = vadd.xlane.f32.xlu1 %v4395_v61  ;;  %1431 = vadd.xlane.f32.xlu0 %v4393_v30  ;;  %v4399_v44 = vadd.f32 %v3145_v4, %v1411_v14  ;;  %v1446_v23 = vmul.f32 %v4395_v61, %v4395_v61 }
 0x725   :  { %v1444_v48 = vmul.f32 %v4399_v44, %v4399_v44 }
 0x727   :  { %1433 = vadd.xlane.f32.xlu1 %v4399_v44  ;;  %1455 = vadd.xlane.f32.xlu0 %v1443_v20 }
 0x72b   :  { %1457 = vadd.xlane.f32.xlu1 %v1444_v48  ;;  %1459 = vadd.xlane.f32.xlu0 %v1445_v46 }
 0x72f   :  { %1461 = vadd.xlane.f32.xlu1 %v1446_v23 }
 0x798   :  { %v1428_v32 = vpop.xlane.xlu0 %1427 }
 0x799   :  { %v4410_v62 = vmul.f32 0.0078125, %v1428_v32 }
 0x79b   :  { %v1481_v26 = vmul.f32 %v4410_v62, %v4410_v62 }
 0x79c   :  { %v1430_v38 = vpop.xlane.xlu1 %1429  ;;  %v1424_v3 = vpop.xlane.xlu0 %1423 }
 0x79d   :  { %v1463_v9 = vmul.f32 0.0078125, %v1424_v3  ;;  %v4414_v53 = vmul.f32 0.0078125, %v1430_v38 }
 0x79f   :  { %v1479_v57 = vmul.f32 %v1463_v9, %v1463_v9  ;;  %v1482_v4 = vmul.f32 %v4414_v53, %v4414_v53  ;;  %v1495_v32 = vsub.f32 %v4373_v18, %v1463_v9  ;;  %v1497_v9 = vsub.f32 %v4370_v50, %v4410_v62  ;;  %v3155_v50 = vld [vmem:[#allocation8 + $0xe] ss:$0 sm:$0xff] }
 0x7a0   :  { %v1426_v16 = vpop.xlane.xlu1 %1425  ;;  %v1448_v34 = vpop.xlane.xlu0 %1447 }
 0x7a1   :  { %v1464_v43 = vmul.f32 0.0078125, %v1426_v16  ;;  %v1471_v24 = vmul.f32 0.0078125, %v1448_v34 }
 0x7a3   :  { %v1487_v59 = vsub.f32 %v1471_v24, %v1479_v57  ;;  %v1480_v52 = vmul.f32 %v1464_v43, %v1464_v43 }
 0x7a4   :  { %v1450_v13 = vpop.xlane.xlu1 %1449  ;;  %v1452_v12 = vpop.xlane.xlu0 %1451 }
 0x7a5   :  { %v1503_v54 = vadd.f32 1e-05, %v1487_v59  ;;  %v1472_v39 = vmul.f32 0.0078125, %v1450_v13  ;;  %v1473_v49 = vmul.f32 0.0078125, %v1452_v12 }
 0x7a7   :  { %3721 = vrsqrt.f32 %v1503_v54  ;;  %v1488_v58 = vsub.f32 %v1472_v39, %v1480_v52  ;;  %v1489_v17 = vsub.f32 %v1473_v49, %v1481_v26  ;;  %v4433_v54 = vld [vmem:[#allocation8 + $0xd] ss:$0 sm:$0xff]  ;;  %v1496_v39 = vsub.f32 %v4379_v25, %v1464_v43 }
 0x7a8   :  { %v1454_v55 = vpop.xlane.xlu1 %1453  ;;  %v1436_v21 = vpop.xlane.xlu0 %1435 }
 0x7a9   :  { %v1504_v5 = vadd.f32 1e-05, %v1488_v58  ;;  %v1505_v56 = vadd.f32 1e-05, %v1489_v17  ;;  %v1474_v45 = vmul.f32 0.0078125, %v1454_v55  ;;  %v4420_v2 = vmul.f32 0.0078125, %v1436_v21 }
 0x7ab   :  { %3723 = vrsqrt.f32 %v1504_v5  ;;  %v1490_v63 = vsub.f32 %v1474_v45, %v1482_v4  ;;  %v1485_v38 = vmul.f32 %v4420_v2, %v4420_v2 }
 0x7ac   :  { %3725 = vrsqrt.f32 %v1505_v56  ;;  %v1438_v51 = vpop.xlane.xlu1 %1437  ;;  %v1432_v42 = vpop.xlane.xlu0 %1431 }
 0x7ad   :  { %v1506_v19 = vadd.f32 1e-05, %v1490_v63  ;;  %v4418_v47 = vmul.f32 0.0078125, %v1432_v42  ;;  %v4429_v3 = vmul.f32 0.0078125, %v1438_v51  ;;  %v1498_v63 = vsub.f32 %v4375_v28, %v4414_v53 }
 0x7af   :  { %3727 = vrsqrt.f32 %v1506_v19  ;;  %v1483_v14 = vmul.f32 %v4418_v47, %v4418_v47  ;;  %v1486_v17 = vmul.f32 %v4429_v3, %v4429_v3 }
 0x7b0   :  { %v1434_v31 = vpop.xlane.xlu1 %1433  ;;  %v1456_v6 = vpop.xlane.xlu0 %1455 }
 0x7b1   :  { %v4424_v20 = vmul.f32 0.0078125, %v1434_v31  ;;  %v1475_v48 = vmul.f32 0.0078125, %v1456_v6 }
 0x7b3   :  { %v1491_v46 = vsub.f32 %v1475_v48, %v1483_v14  ;;  %v1484_v57 = vmul.f32 %v4424_v20, %v4424_v20 }
 0x7b4   :  { %v3722_v23 = vpop.eup %3721  ;;  %v1458_v16 = vpop.xlane.xlu1 %1457 }
 0x7b5   :  { %v1460_v34 = vpop.xlane.xlu0 %1459  ;;  %v1507_v24 = vadd.f32 1e-05, %v1491_v46  ;;  %v1476_v59 = vmul.f32 0.0078125, %v1458_v16  ;;  %v1519_v13 = vmul.f32 %v3722_v23, %v1495_v32  ;;  %v1499_v16 = vsub.f32 %v4393_v30, %v4418_v47 }
 0x7b6   :  { %v1477_v26 = vmul.f32 0.0078125, %v1460_v34  ;;  %v1501_v30 = vsub.f32 %v4388_v15, %v4420_v2 }
 0x7b7   :  { %3729 = vrsqrt.f32 %v1507_v24  ;;  %v1492_v12 = vsub.f32 %v1476_v59, %v1484_v57  ;;  %v1532_v56 = vmul.f32 %v4433_v54, %v1519_v13 }
 0x7b8   :  { %v1493_v52 = vsub.f32 %v1477_v26, %v1485_v38  ;;  %v3724_v18 = vpop.eup %3723  ;;  %v1462_v49 = vpop.xlane.xlu1 %1461 }
 0x7b9   :  { %v3726_v58 = vpop.eup %3725  ;;  %v1508_v55 = vadd.f32 1e-05, %v1492_v12  ;;  %v1478_v4 = vmul.f32 0.0078125, %v1462_v49  ;;  %v1520_v45 = vmul.f32 %v3724_v18, %v1496_v39  ;;  %v1545_v6 = vadd.f32 %v3155_v50, %v1532_v56  ;;  %v3622_v56 = vld [vmem:[#allocation5 + $0x110] sm:$0xff]  }
 0x7ba   :  { %v1509_v21 = vadd.f32 1e-05, %v1493_v52  ;;  %v1521_v5 = vmul.f32 %v3726_v58, %v1497_v9 }
 0x7bb   :  { %3731 = vrsqrt.f32 %v1508_v55  ;;  %v1494_v51 = vsub.f32 %v1478_v4, %v1486_v17  ;;  %v1533_v19 = vmul.f32 %v4433_v54, %v1520_v45  ;;  %v1553_v53 = vmax.f32 %v1545_v6, 0.0  ;;  %v3623_v45 = vld [vmem:[#allocation5 + $0x108] sm:$0xff]  }
 0x7bc   :  { %v3728_v62 = vpop.eup %3727  ;;  %3733 = vrsqrt.f32 %v1509_v21  ;;  %v1534_v25 = vmul.f32 %v4433_v54, %v1521_v5  ;;  %v3621_v5 = vld [vmem:[#allocation5 + $0x118] sm:$0xff]  }
 0x7bd   :  { %v1510_v43 = vadd.f32 1e-05, %v1494_v51  ;;  %v1522_v42 = vmul.f32 %v3728_v62, %v1498_v63  ;;  %v1546_v23 = vadd.f32 %v3155_v50, %v1533_v19  ;;  %v4459_v24 = vadd.f32 %v1553_v53, %v350_v0  ;;  %v3624_v63 = vld [vmem:[#allocation5 + $0x100] sm:$0xff]  }
 0x7be   :  { %v1547_v31 = vadd.f32 %v3155_v50, %v1534_v25 }
 0x7bf   :  { %3735 = vrsqrt.f32 %v1510_v43  ;;  %v1535_v14 = vmul.f32 %v4433_v54, %v1522_v42  ;;  %v1554_v57 = vmax.f32 %v1546_v23, 0.0  ;;  %v1585_v0 = vmul.f32 %v4459_v24, %v4459_v24 }
 0x7c0   :  { %v1555_v48 = vmax.f32 %v1547_v31, 0.0 }
 0x7c1   :  { %v1548_v46 = vadd.f32 %v3155_v50, %v1535_v14 }
 0x7c2   :  { %v4448_v28 = vadd.f32 %v1555_v48, %v352_v10  ;;  %v1500_v10 = vsub.f32 %v4399_v44, %v4424_v20  ;;  %v1502_v20 = vsub.f32 %v4395_v61, %v4429_v3 }
 0x7c3   :  { %v1556_v32 = vmax.f32 %v1548_v46, 0.0 }
 0x7c4   :  { %v3730_v38 = vpop.eup %3729  ;;  %1573 = vadd.xlane.f32.xlu0 %v4448_v28  ;;  %v1587_v13 = vmul.f32 %v4448_v28, %v4448_v28 }
 0x7c5   :  { %v4455_v34 = vadd.f32 %v1556_v32, %v353_v11  ;;  %v1523_v8 = vmul.f32 %v3730_v38, %v1499_v16  ;;  %v4469_v11 = vadd.f32 %v1554_v57, %v351_v7 }
 0x7c7   :  { %1575 = vadd.xlane.f32.xlu1 %v4455_v34  ;;  %v1536_v44 = vmul.f32 %v4433_v54, %v1523_v8  ;;  %v1586_v22 = vmul.f32 %v4469_v11, %v4469_v11  ;;  %v1588_v18 = vmul.f32 %v4455_v34, %v4455_v34 }
 0x7c8   :  { %v3732_v59 = vpop.eup %3731  ;;  %1569 = vadd.xlane.f32.xlu0 %v4459_v24 }
 0x7c9   :  { %v3734_v60 = vpop.eup %3733  ;;  %v1524_v1 = vmul.f32 %v3732_v59, %v1500_v10  ;;  %v1549_v52 = vadd.f32 %v3155_v50, %v1536_v44 }
 0x7ca   :  { %v1525_v47 = vmul.f32 %v3734_v60, %v1501_v30 }
 0x7cb   :  { %1571 = vadd.xlane.f32.xlu1 %v4469_v11  ;;  %v1537_v26 = vmul.f32 %v4433_v54, %v1524_v1  ;;  %v1557_v58 = vmax.f32 %v1549_v52, 0.0 }
 0x7cc   :  { %v3736_v15 = vpop.eup %3735  ;;  %1593 = vadd.xlane.f32.xlu0 %v1585_v0  ;;  %v1538_v2 = vmul.f32 %v4433_v54, %v1525_v47 }
 0x7cd   :  { %v1526_v7 = vmul.f32 %v3736_v15, %v1502_v20  ;;  %v1550_v39 = vadd.f32 %v3155_v50, %v1537_v26  ;;  %v4497_v21 = vadd.f32 %v1557_v58, %v354_v36 }
 0x7ce   :  { %v1551_v12 = vadd.f32 %v3155_v50, %v1538_v2 }
 0x7cf   :  { %1595 = vadd.xlane.f32.xlu1 %v1586_v22  ;;  %v1539_v61 = vmul.f32 %v4433_v54, %v1526_v7  ;;  %v1558_v54 = vmax.f32 %v1550_v39, 0.0  ;;  %v1589_v4 = vmul.f32 %v4497_v21, %v4497_v21 }
 0x7d0   :  { %1597 = vadd.xlane.f32.xlu0 %v1587_v13  ;;  %v1559_v3 = vmax.f32 %v1551_v12, 0.0 }
 0x7d1   :  { %v1552_v9 = vadd.f32 %v3155_v50, %v1539_v61 }
 0x7d2   :  { %v4488_v49 = vadd.f32 %v1559_v3, %v356_v37  ;;  %v4503_v37 = vadd.f32 %v1558_v54, %v355_v29 }
 0x7d3   :  { %1599 = vadd.xlane.f32.xlu1 %v1588_v18  ;;  %v1560_v17 = vmax.f32 %v1552_v9, 0.0 }
 0x7d4   :  { %1581 = vadd.xlane.f32.xlu0 %v4488_v49  ;;  %v1590_v36 = vmul.f32 %v4503_v37, %v4503_v37  ;;  %v1591_v35 = vmul.f32 %v4488_v49, %v4488_v49 }
 0x7d5   :  { %v4493_v55 = vadd.f32 %v1560_v17, %v357_v41  ;;  %v3620_v41 = vld [vmem:[#allocation5 + $0x120] sm:$0xff]  }
 0x7d6   :  { %3478 = vmatprep.subr.bf16.mxu1 %v3620_v41 }
 0x7d7   :  { %1583 = vadd.xlane.f32.xlu1 %v4493_v55  ;;  %v1592_v29 = vmul.f32 %v4493_v55, %v4493_v55  ;;  %3479 = vmatpush3.bf16.msra.mxu1 %v3620_v41 }
 0x7d8   :  { %1577 = vadd.xlane.f32.xlu0 %v4497_v21  ;;  %3480 = vmatprep.subr.bf16.mxu1 %v3621_v5 }
 0x7db   :  { %1579 = vadd.xlane.f32.xlu1 %v4503_v37  ;;  %3481 = vmatpush3.bf16.msra.mxu1 %v3621_v5 }
 0x7dc   :  { %1601 = vadd.xlane.f32.xlu0 %v1589_v4  ;;  %3482 = vmatprep.subr.bf16.mxu1 %v3622_v56 }
 0x7df   :  { %1603 = vadd.xlane.f32.xlu1 %v1590_v36  ;;  %3483 = vmatpush3.bf16.msra.mxu1 %v3622_v56 }
 0x7e0   :  { %1605 = vadd.xlane.f32.xlu0 %v1591_v35  ;;  %3484 = vmatprep.subr.bf16.mxu1 %v3623_v45 }
 0x7e3   :  { %1607 = vadd.xlane.f32.xlu1 %v1592_v29  ;;  %3485 = vmatpush3.bf16.msra.mxu1 %v3623_v45 }
 0x7e4   :  { %3486 = vmatprep.subr.bf16.mxu1 %v3624_v63 }
 0x7e7   :  { %3487 = vmatpush3.bf16.msra.mxu1 %v3624_v63 }
 0x84d   :  { %v1574_v51 = vpop.xlane.xlu0 %1573 }
 0x84e   :  { %v4516_v31 = vmul.f32 0.0078125, %v1574_v51 }
 0x850   :  { %v1576_v50 = vpop.xlane.xlu1 %1575  ;;  %v1627_v16 = vmul.f32 %v4516_v31, %v4516_v31 }
 0x851   :  { %v1570_v62 = vpop.xlane.xlu0 %1569  ;;  %v4518_v23 = vmul.f32 0.0078125, %v1576_v50 }
 0x852   :  { %v1609_v25 = vmul.f32 0.0078125, %v1570_v62 }
 0x853   :  { %v1628_v60 = vmul.f32 %v4518_v23, %v4518_v23 }
 0x854   :  { %v1572_v43 = vpop.xlane.xlu1 %1571  ;;  %v1625_v6 = vmul.f32 %v1609_v25, %v1609_v25  ;;  %v1641_v18 = vsub.f32 %v4459_v24, %v1609_v25  ;;  %v1643_v24 = vsub.f32 %v4448_v28, %v4516_v31 }
 0x855   :  { %v4514_v42 = vmul.f32 0.0078125, %v1572_v43  ;;  %v1594_v19 = vpop.xlane.xlu0 %1593 }
 0x856   :  { %v1617_v14 = vmul.f32 0.0078125, %v1594_v19 }
 0x857   :  { %v1626_v53 = vmul.f32 %v4514_v42, %v4514_v42  ;;  %v1642_v41 = vsub.f32 %v4469_v11, %v4514_v42  ;;  %v1644_v11 = vsub.f32 %v4455_v34, %v4518_v23 }
 0x858   :  { %v1633_v48 = vsub.f32 %v1617_v14, %v1625_v6  ;;  %v1596_v46 = vpop.xlane.xlu1 %1595  ;;  %v3157_v6 = vld [vmem:[#allocation8 + $0x10] ss:$0 sm:$0xff] }
 0x859   :  { %v1618_v32 = vmul.f32 0.0078125, %v1596_v46  ;;  %v1598_v38 = vpop.xlane.xlu0 %1597 }
 0x85a   :  { %v1649_v57 = vadd.f32 1e-05, %v1633_v48  ;;  %v1619_v8 = vmul.f32 0.0078125, %v1598_v38 }
 0x85b   :  { %v1634_v10 = vsub.f32 %v1618_v32, %v1626_v53 }
 0x85c   :  { %3737 = vrsqrt.f32 %v1649_v57  ;;  %v1635_v59 = vsub.f32 %v1619_v8, %v1627_v16  ;;  %v1600_v30 = vpop.xlane.xlu1 %1599 }
 0x85d   :  { %v1650_v1 = vadd.f32 1e-05, %v1634_v10  ;;  %v1620_v0 = vmul.f32 0.0078125, %v1600_v30  ;;  %v1582_v47 = vpop.xlane.xlu0 %1581 }
 0x85e   :  { %v1651_v44 = vadd.f32 1e-05, %v1635_v59  ;;  %v1615_v52 = vmul.f32 0.0078125, %v1582_v47 }
 0x85f   :  { %3739 = vrsqrt.f32 %v1650_v1  ;;  %v1636_v20 = vsub.f32 %v1620_v0, %v1628_v60 }
 0x860   :  { %3741 = vrsqrt.f32 %v1651_v44  ;;  %v1584_v15 = vpop.xlane.xlu1 %1583  ;;  %v1631_v36 = vmul.f32 %v1615_v52, %v1615_v52  ;;  %v1647_v47 = vsub.f32 %v4488_v49, %v1615_v52 }
 0x861   :  { %v1652_v2 = vadd.f32 1e-05, %v1636_v20  ;;  %v1578_v22 = vpop.xlane.xlu0 %1577  ;;  %v1616_v17 = vmul.f32 0.0078125, %v1584_v15 }
 0x862   :  { %v1613_v7 = vmul.f32 0.0078125, %v1578_v22 }
 0x863   :  { %3743 = vrsqrt.f32 %v1652_v2  ;;  %v1632_v62 = vmul.f32 %v1616_v17, %v1616_v17  ;;  %v1648_v22 = vsub.f32 %v4493_v55, %v1616_v17 }
 0x864   :  { %v1580_v26 = vpop.xlane.xlu1 %1579  ;;  %v1629_v61 = vmul.f32 %v1613_v7, %v1613_v7  ;;  %v1645_v59 = vsub.f32 %v4497_v21, %v1613_v7 }
 0x865   :  { %v1614_v13 = vmul.f32 0.0078125, %v1580_v26  ;;  %v1602_v12 = vpop.xlane.xlu0 %1601 }
 0x866   :  { %v1621_v3 = vmul.f32 0.0078125, %v1602_v12 }
 0x867   :  { %v1630_v54 = vmul.f32 %v1614_v13, %v1614_v13  ;;  %v1646_v1 = vsub.f32 %v4503_v37, %v1614_v13 }
 0x868   :  { %v1637_v9 = vsub.f32 %v1621_v3, %v1629_v61  ;;  %v1604_v39 = vpop.xlane.xlu1 %1603 }
 0x869   :  { %v3738_v58 = vpop.eup %3737  ;;  %v1622_v33 = vmul.f32 0.0078125, %v1604_v39  ;;  %v1606_v4 = vpop.xlane.xlu0 %1605 }
 0x86a   :  { %v1653_v35 = vadd.f32 1e-05, %v1637_v9  ;;  %v1623_v27 = vmul.f32 0.0078125, %v1606_v4  ;;  %v1665_v29 = vmul.f32 %v3738_v58, %v1641_v18  ;;  %v3158_v18 = vld [vmem:[#allocation8 + $0x11] ss:$0 sm:$0xff] }
 0x86b   :  { %v1638_v5 = vsub.f32 %v1622_v33, %v1630_v54 }
 0x86c   :  { %v3740_v56 = vpop.eup %3739  ;;  %3745 = vrsqrt.f32 %v1653_v35  ;;  %v1639_v45 = vsub.f32 %v1623_v27, %v1631_v36  ;;  %v1608_v63 = vpop.xlane.xlu1 %1607  ;;  %v1678_v51 = vmul.f32 %v3156_v40, %v1665_v29 }
 0x86d   :  { %v3742_v50 = vpop.eup %3741  ;;  %v1654_v25 = vadd.f32 1e-05, %v1638_v5  ;;  %v1624_v43 = vmul.f32 0.0078125, %v1608_v63  ;;  %v1666_v19 = vmul.f32 %v3740_v56, %v1642_v41 }
 0x86e   :  { %v1667_v14 = vmul.f32 %v3742_v50, %v1643_v24  ;;  %v1655_v48 = vadd.f32 1e-05, %v1639_v45  ;;  %v4533_v28 = vadd.f32 %v3157_v6, %v1678_v51 }
 0x86f   :  { %3747 = vrsqrt.f32 %v1654_v25  ;;  %v1640_v42 = vsub.f32 %v1624_v43, %v1632_v62  ;;  %v1679_v46 = vmul.f32 %v3156_v40, %v1666_v19  ;;  %v3625_v25 = vld [vmem:[#allocation5 + $0x178] sm:$0xff]  }
 0x870   :  { %v3744_v53 = vpop.eup %3743  ;;  %3749 = vrsqrt.f32 %v1655_v48  ;;  %v1680_v16 = vmul.f32 %v3156_v40, %v1667_v14  ;;  %3496 = vmatprep.subr.bf16.mxu0 %v3625_v25  ;;  %v3627_v48 = vld [vmem:[#allocation5 + $0x168] sm:$0xff]  }
 0x871   :  { %v1668_v31 = vmul.f32 %v3744_v53, %v1644_v11  ;;  %v1656_v32 = vadd.f32 1e-05, %v1640_v42  ;;  %v4535_v38 = vadd.f32 %v3157_v6, %v1679_v46  ;;  %3497 = vmatpush3.bf16.msra.mxu0 %v3625_v25  ;;  %v3628_v11 = vld [vmem:[#allocation5 + $0x160] sm:$0xff]   ;;  %v3629_v42 = vld [vmem:[#allocation5 + $0x158] sm:$0xff]   ;;  %v3630_v46 = vld [vmem:[#allocation5 + $0x150] sm:$0xff]  }
 0x872   :  { %v4539_v10 = vadd.f32 %v3157_v6, %v1680_v16  ;;  %v3631_v53 = vld [vmem:[#allocation5 + $0x148] sm:$0xff]  }
 0x873   :  { %3751 = vrsqrt.f32 %v1656_v32  ;;  %v1716_v57 = vpack.c.bf16 %v4535_v38, %v4533_v28  ;;  %v1681_v8 = vmul.f32 %v3156_v40, %v1668_v31  ;;  %v3632_v31 = vld [vmem:[#allocation5 + $0x140] sm:$0xff]  }
 0x875   :  { %3488 = vmatprep.mubr.bf16.mxu1 %v1716_v57  ;;  %v4541_v34 = vadd.f32 %v3157_v6, %v1681_v8 }
 0x877   :  { %v1717_v23 = vpack.c.bf16 %v4541_v34, %v4539_v10 }
 0x879   :  { %v3746_v30 = vpop.eup %3745  ;;  %3489 = vmatmul.mubr.bf16.vlgmr.msra.gmra.mxu1 %v1717_v23 }
 0x87a   :  { %v1669_v60 = vmul.f32 %v3746_v30, %v1645_v59 }
 0x87c   :  { %v3748_v0 = vpop.eup %3747  ;;  %v1682_v15 = vmul.f32 %v3156_v40, %v1669_v60 }
 0x87d   :  { %v3750_v44 = vpop.eup %3749  ;;  %v1670_v20 = vmul.f32 %v3748_v0, %v1646_v1 }
 0x87e   :  { %v1671_v2 = vmul.f32 %v3750_v44, %v1647_v47  ;;  %v4549_v61 = vadd.f32 %v3157_v6, %v1682_v15 }
 0x87f   :  { %v1683_v26 = vmul.f32 %v3156_v40, %v1670_v20 }
 0x880   :  { %v3752_v12 = vpop.eup %3751  ;;  %v1684_v7 = vmul.f32 %v3156_v40, %v1671_v2 }
 0x881   :  { %v4551_v3 = vadd.f32 %v3157_v6, %v1683_v26  ;;  %v1672_v21 = vmul.f32 %v3752_v12, %v1648_v22 }
 0x882   :  { %v4555_v49 = vadd.f32 %v3157_v6, %v1684_v7 }
 0x883   :  { %v1718_v37 = vpack.c.bf16 %v4551_v3, %v4549_v61  ;;  %v1685_v13 = vmul.f32 %v3156_v40, %v1672_v21 }
 0x885   :  { %3492 = vmatprep.mubr.bf16.mxu1 %v1718_v37  ;;  %v4557_v52 = vadd.f32 %v3157_v6, %v1685_v13  ;;  %v3626_v6 = vld [vmem:[#allocation5 + $0x170] sm:$0xff]  }
 0x886   :  { %3498 = vmatprep.subr.bf16.mxu0 %v3626_v6 }
 0x887   :  { %v1719_v55 = vpack.c.bf16 %v4557_v52, %v4555_v49  ;;  %3499 = vmatpush3.bf16.msra.mxu0 %v3626_v6 }
 0x888   :  { %3500 = vmatprep.subr.bf16.mxu0 %v3627_v48 }
 0x889   :  { %3493 = vmatmul.mubr.bf16.gmra.mxu1 %v1719_v55 }
 0x88b   :  { %3501 = vmatpush3.bf16.msra.mxu0 %v3627_v48 }
 0x88c   :  { %3502 = vmatprep.subr.bf16.mxu0 %v3628_v11 }
 0x88f   :  { %3503 = vmatpush3.bf16.msra.mxu0 %v3628_v11 }
 0x890   :  { %3504 = vmatprep.subr.bf16.mxu0 %v3629_v42 }
 0x893   :  { %3505 = vmatpush3.bf16.msra.mxu0 %v3629_v42 }
 0x894   :  { %3506 = vmatprep.subr.bf16.mxu0 %v3630_v46 }
 0x897   :  { %3507 = vmatpush3.bf16.msra.mxu0 %v3630_v46 }
 0x898   :  { %3508 = vmatprep.subr.bf16.mxu0 %v3631_v53 }
 0x89b   :  { %3509 = vmatpush3.bf16.msra.mxu0 %v3631_v53  ;;  %v4620_v53 = vld [vmem:[#allocation8 + $0x12] ss:$0 sm:$0xff] }
 0x89c   :  { %3510 = vmatprep.subr.bf16.mxu0 %v3632_v31 }
 0x89f   :  { %3511 = vmatpush3.bf16.msra.mxu0 %v3632_v31 }
 0x939   :  { %v3490_v9 = vpop.f32.mrf.mxu1 }
 0x93a   :  { %v4561_v39 = vadd.f32 %v3490_v9, %v3158_v18 }
 0x93b   :  { %v1807_v58 = vpop.f32.mrf.mxu1 }
 0x93c   :  { %1842 = vadd.xlane.f32.xlu0 %v4561_v39  ;;  %v4564_v54 = vadd.f32 %v3158_v18, %v1807_v58  ;;  %v1856_v27 = vmul.f32 %v4561_v39, %v4561_v39 }
 0x93d   :  { %v3491_v17 = vpop.f32.mrf.mxu1 }
 0x93e   :  { %v4566_v33 = vadd.f32 %v3491_v17, %v3158_v18  ;;  %v1854_v36 = vmul.f32 %v4564_v54, %v4564_v54 }
 0x93f   :  { %v1810_v4 = vpop.f32.mrf.mxu1 }
 0x940   :  { %1844 = vadd.xlane.f32.xlu1 %v4566_v33  ;;  %1838 = vadd.xlane.f32.xlu0 %v4564_v54  ;;  %v4570_v40 = vadd.f32 %v3158_v18, %v1810_v4  ;;  %v1857_v5 = vmul.f32 %v4566_v33, %v4566_v33 }
 0x942   :  { %v1855_v35 = vmul.f32 %v4570_v40, %v4570_v40 }
 0x944   :  { %1840 = vadd.xlane.f32.xlu1 %v4570_v40  ;;  %1862 = vadd.xlane.f32.xlu0 %v1854_v36 }
 0x948   :  { %1864 = vadd.xlane.f32.xlu1 %v1855_v35  ;;  %1866 = vadd.xlane.f32.xlu0 %v1856_v27 }
 0x949   :  { %v3494_v29 = vpop.f32.mrf.mxu1 }
 0x94a   :  { %v4579_v41 = vadd.f32 %v3494_v29, %v3158_v18 }
 0x94b   :  { %v1823_v56 = vpop.f32.mrf.mxu1 }
 0x94c   :  { %1868 = vadd.xlane.f32.xlu1 %v1857_v5  ;;  %1850 = vadd.xlane.f32.xlu0 %v4579_v41  ;;  %v4584_v45 = vadd.f32 %v3158_v18, %v1823_v56  ;;  %v1860_v19 = vmul.f32 %v4579_v41, %v4579_v41 }
 0x94d   :  { %v3495_v24 = vpop.f32.mrf.mxu1 }
 0x94e   :  { %v4586_v63 = vadd.f32 %v3495_v24, %v3158_v18  ;;  %v1858_v62 = vmul.f32 %v4584_v45, %v4584_v45 }
 0x94f   :  { %v1826_v51 = vpop.f32.mrf.mxu1 }
 0x950   :  { %1852 = vadd.xlane.f32.xlu1 %v4586_v63  ;;  %1846 = vadd.xlane.f32.xlu0 %v4584_v45  ;;  %v4590_v50 = vadd.f32 %v3158_v18, %v1826_v51  ;;  %v1861_v14 = vmul.f32 %v4586_v63, %v4586_v63 }
 0x952   :  { %v1859_v43 = vmul.f32 %v4590_v50, %v4590_v50 }
 0x954   :  { %1848 = vadd.xlane.f32.xlu1 %v4590_v50  ;;  %1870 = vadd.xlane.f32.xlu0 %v1858_v62 }
 0x958   :  { %1872 = vadd.xlane.f32.xlu1 %v1859_v43  ;;  %1874 = vadd.xlane.f32.xlu0 %v1860_v19 }
 0x95c   :  { %1876 = vadd.xlane.f32.xlu1 %v1861_v14 }
 0x9c5   :  { %v1843_v32 = vpop.xlane.xlu0 %1842 }
 0x9c6   :  { %v4601_v23 = vmul.f32 0.0078125, %v1843_v32 }
 0x9c8   :  { %v1896_v44 = vmul.f32 %v4601_v23, %v4601_v23 }
 0x9c9   :  { %v1845_v16 = vpop.xlane.xlu1 %1844  ;;  %v1839_v57 = vpop.xlane.xlu0 %1838 }
 0x9ca   :  { %v1878_v8 = vmul.f32 0.0078125, %v1839_v57  ;;  %v4605_v20 = vmul.f32 0.0078125, %v1845_v16 }
 0x9cc   :  { %v1894_v60 = vmul.f32 %v1878_v8, %v1878_v8  ;;  %v1897_v18 = vmul.f32 %v4605_v20, %v4605_v20  ;;  %v1910_v43 = vsub.f32 %v4564_v54, %v1878_v8 }
 0x9cd   :  { %v1841_v59 = vpop.xlane.xlu1 %1840  ;;  %v1863_v30 = vpop.xlane.xlu0 %1862 }
 0x9ce   :  { %v1879_v1 = vmul.f32 0.0078125, %v1841_v59  ;;  %v1886_v0 = vmul.f32 0.0078125, %v1863_v30 }
 0x9d0   :  { %v1902_v47 = vsub.f32 %v1886_v0, %v1894_v60  ;;  %v1895_v22 = vmul.f32 %v1879_v1, %v1879_v1  ;;  %v1911_v54 = vsub.f32 %v4570_v40, %v1879_v1  ;;  %v3168_v60 = vld [vmem:[#allocation8 + $0x13] ss:$0 sm:$0xff] }
 0x9d1   :  { %v1865_v15 = vpop.xlane.xlu1 %1864  ;;  %v1867_v2 = vpop.xlane.xlu0 %1866 }
 0x9d2   :  { %v1918_v26 = vadd.f32 1e-05, %v1902_v47  ;;  %v1887_v12 = vmul.f32 0.0078125, %v1865_v15  ;;  %v1888_v21 = vmul.f32 0.0078125, %v1867_v2  ;;  %v1912_v47 = vsub.f32 %v4561_v39, %v4601_v23 }
 0x9d4   :  { %3753 = vrsqrt.f32 %v1918_v26  ;;  %v1903_v7 = vsub.f32 %v1887_v12, %v1895_v22  ;;  %v1904_v37 = vsub.f32 %v1888_v21, %v1896_v44 }
 0x9d5   :  { %v1869_v13 = vpop.xlane.xlu1 %1868  ;;  %v1851_v55 = vpop.xlane.xlu0 %1850 }
 0x9d6   :  { %v1919_v9 = vadd.f32 1e-05, %v1903_v7  ;;  %v1920_v58 = vadd.f32 1e-05, %v1904_v37  ;;  %v1889_v17 = vmul.f32 0.0078125, %v1869_v13  ;;  %v4609_v5 = vmul.f32 0.0078125, %v1851_v55 }
 0x9d7   :  { %v1913_v7 = vsub.f32 %v4566_v33, %v4605_v20 }
 0x9d8   :  { %3755 = vrsqrt.f32 %v1919_v9  ;;  %v1905_v4 = vsub.f32 %v1889_v17, %v1897_v18  ;;  %v1900_v14 = vmul.f32 %v4609_v5, %v4609_v5 }
 0x9d9   :  { %3757 = vrsqrt.f32 %v1920_v58  ;;  %v1853_v36 = vpop.xlane.xlu1 %1852  ;;  %v1847_v35 = vpop.xlane.xlu0 %1846 }
 0x9da   :  { %v1921_v27 = vadd.f32 1e-05, %v1905_v4  ;;  %v1882_v29 = vmul.f32 0.0078125, %v1847_v35  ;;  %v4616_v48 = vmul.f32 0.0078125, %v1853_v36 }
 0x9dc   :  { %3759 = vrsqrt.f32 %v1921_v27  ;;  %v1898_v51 = vmul.f32 %v1882_v29, %v1882_v29  ;;  %v1901_v44 = vmul.f32 %v4616_v48, %v4616_v48  ;;  %v1914_v33 = vsub.f32 %v4584_v45, %v1882_v29 }
 0x9dd   :  { %v1849_v56 = vpop.xlane.xlu1 %1848  ;;  %v1871_v24 = vpop.xlane.xlu0 %1870  ;;  %v1917_v45 = vsub.f32 %v4586_v63, %v4616_v48  ;;  %v3169_v48 = vld [vmem:[#allocation8 + $0x14] ss:$0 sm:$0xff] }
 0x9de   :  { %v4611_v62 = vmul.f32 0.0078125, %v1849_v56  ;;  %v1890_v25 = vmul.f32 0.0078125, %v1871_v24 }
 0x9e0   :  { %v1906_v19 = vsub.f32 %v1890_v25, %v1898_v51  ;;  %v1899_v11 = vmul.f32 %v4611_v62, %v4611_v62 }
 0x9e1   :  { %v3754_v6 = vpop.eup %3753  ;;  %v1873_v42 = vpop.xlane.xlu1 %1872 }
 0x9e2   :  { %v1875_v46 = vpop.xlane.xlu0 %1874  ;;  %v1922_v31 = vadd.f32 1e-05, %v1906_v19  ;;  %v1891_v32 = vmul.f32 0.0078125, %v1873_v42  ;;  %v1934_v57 = vmul.f32 %v3754_v6, %v1910_v43  ;;  %v1915_v43 = vsub.f32 %v4590_v50, %v4611_v62 }
 0x9e3   :  { %v1892_v16 = vmul.f32 0.0078125, %v1875_v46 }
 0x9e4   :  { %3761 = vrsqrt.f32 %v1922_v31  ;;  %v1907_v8 = vsub.f32 %v1891_v32, %v1899_v11  ;;  %v1947_v30 = vmul.f32 %v4620_v53, %v1934_v57 }
 0x9e5   :  { %v1908_v59 = vsub.f32 %v1892_v16, %v1900_v14  ;;  %v3756_v0 = vpop.eup %3755  ;;  %v1877_v15 = vpop.xlane.xlu1 %1876  ;;  %v1916_v14 = vsub.f32 %v4579_v41, %v4609_v5 }
 0x9e6   :  { %v3758_v2 = vpop.eup %3757  ;;  %v1923_v22 = vadd.f32 1e-05, %v1907_v8  ;;  %v1893_v12 = vmul.f32 0.0078125, %v1877_v15  ;;  %v1935_v21 = vmul.f32 %v3756_v0, %v1911_v54  ;;  %v1960_v1 = vadd.f32 %v3168_v60, %v1947_v30 }
 0x9e7   :  { %v1924_v26 = vadd.f32 1e-05, %v1908_v59  ;;  %v1936_v40 = vmul.f32 %v3758_v2, %v1912_v47 }
 0x9e8   :  { %3763 = vrsqrt.f32 %v1923_v22  ;;  %v1909_v37 = vsub.f32 %v1893_v12, %v1901_v44  ;;  %v1948_v13 = vmul.f32 %v4620_v53, %v1935_v21  ;;  %v1968_v58 = vmax.f32 %v1960_v1, 0.0 }
 0x9e9   :  { %v3760_v55 = vpop.eup %3759  ;;  %3765 = vrsqrt.f32 %v1924_v26  ;;  %v1949_v39 = vmul.f32 %v4620_v53, %v1936_v40 }
 0x9ea   :  { %v1937_v23 = vmul.f32 %v3760_v55, %v1913_v7  ;;  %v1925_v18 = vadd.f32 1e-05, %v1909_v37  ;;  %v1961_v9 = vadd.f32 %v3168_v60, %v1948_v13 }
 0x9eb   :  { %v1962_v36 = vadd.f32 %v3168_v60, %v1949_v39 }
 0x9ec   :  { %3767 = vrsqrt.f32 %v1925_v18  ;;  %v1969_v17 = vmax.f32 %v1961_v9, 0.0  ;;  %v1950_v4 = vmul.f32 %v4620_v53, %v1937_v23 }
 0x9ed   :  { %v1970_v20 = vmax.f32 %v1962_v36, 0.0 }
 0x9ee   :  { %v1993_v35 = vpack.c.bf16 %v1969_v17, %v1968_v58  ;;  %v1963_v27 = vadd.f32 %v3168_v60, %v1950_v4 }
 0x9f0   :  { %3512 = vmatprep.mubr.bf16.mxu0 %v1993_v35  ;;  %v1971_v56 = vmax.f32 %v1963_v27, 0.0  ;;  %v3633_v35 = vld [vmem:[#allocation7 + $0xf8] sm:$0xff]  }
 0x9f1   :  { %v3762_v24 = vpop.eup %3761  ;;  %v3634_v27 = vld [vmem:[#allocation7 + $0xb8] sm:$0xff]   ;;  %3324 = vmatprep.subr.bf16.mxu1 %v3633_v35 }
 0x9f2   :  { %v1994_v51 = vpack.c.bf16 %v1971_v56, %v1970_v20  ;;  %v1938_v25 = vmul.f32 %v3762_v24, %v1914_v33  ;;  %3325 = vmatpush3.bf16.msra.mxu1 %v3634_v27  ;;  %v3635_v33 = vld [vmem:[#allocation7 + $0xf0] sm:$0xff]   ;;  %v3637_v56 = vld [vmem:[#allocation7 + $0xe8] sm:$0xff]  }
 0x9f3   :  { %v3636_v20 = vld [vmem:[#allocation7 + $0xb0] sm:$0xff]   ;;  %3326 = vmatprep.subr.bf16.mxu1 %v3635_v33  ;;  %v3638_v24 = vld [vmem:[#allocation7 + $0xa8] sm:$0xff]  }
 0x9f4   :  { %3513 = vmatmul.mubr.bf16.vlgmr.msra.gmra.mxu0 %v1994_v51  ;;  %v1951_v19 = vmul.f32 %v4620_v53, %v1938_v25  ;;  %v3639_v51 = vld [vmem:[#allocation7 + $0xe0] sm:$0xff]  }
 0x9f5   :  { %v3764_v6 = vpop.eup %3763  ;;  %v3640_v25 = vld [vmem:[#allocation7 + $0xa0] sm:$0xff]  }
 0x9f6   :  { %v3766_v11 = vpop.eup %3765  ;;  %v1939_v42 = vmul.f32 %v3764_v6, %v1915_v43  ;;  %v1964_v31 = vadd.f32 %v3168_v60, %v1951_v19  ;;  %3327 = vmatpush3.bf16.msra.mxu1 %v3636_v20  ;;  %v3641_v43 = vld [vmem:[#allocation7 + $0xd8] sm:$0xff]   ;;  %v3643_v6 = vld [vmem:[#allocation7 + $0xd0] sm:$0xff]  }
 0x9f7   :  { %v1940_v46 = vmul.f32 %v3766_v11, %v1916_v14  ;;  %3328 = vmatprep.subr.bf16.mxu1 %v3637_v56  ;;  %v3642_v19 = vld [vmem:[#allocation7 + $0x98] sm:$0xff]   ;;  %v3644_v14 = vld [vmem:[#allocation7 + $0x90] sm:$0xff]   ;;  %v3645_v11 = vld [vmem:[#allocation7 + $0xc8] sm:$0xff]  }
 0x9f8   :  { %v1952_v29 = vmul.f32 %v4620_v53, %v1939_v42  ;;  %v1972_v57 = vmax.f32 %v1964_v31, 0.0  ;;  %v3646_v42 = vld [vmem:[#allocation7 + $0x88] sm:$0xff]  }
 0x9f9   :  { %v3768_v32 = vpop.eup %3767  ;;  %v1953_v16 = vmul.f32 %v4620_v53, %v1940_v46  ;;  %v3647_v46 = vld [vmem:[#allocation7 + $0xc0] sm:$0xff]  }
 0x9fa   :  { %v1965_v50 = vadd.f32 %v3168_v60, %v1952_v29  ;;  %v1941_v62 = vmul.f32 %v3768_v32, %v1917_v45  ;;  %3329 = vmatpush3.bf16.msra.mxu1 %v3638_v24  ;;  %v3648_v45 = vld [vmem:[#allocation7 + $0x80] sm:$0xff]  }
 0x9fb   :  { %v1966_v59 = vadd.f32 %v3168_v60, %v1953_v16  ;;  %3330 = vmatprep.subr.bf16.mxu1 %v3639_v51 }
 0x9fc   :  { %v1973_v54 = vmax.f32 %v1965_v50, 0.0  ;;  %v1954_v8 = vmul.f32 %v4620_v53, %v1941_v62 }
 0x9fd   :  { %v1974_v30 = vmax.f32 %v1966_v59, 0.0 }
 0x9fe   :  { %v1995_v41 = vpack.c.bf16 %v1973_v54, %v1972_v57  ;;  %v1967_v5 = vadd.f32 %v3168_v60, %v1954_v8  ;;  %3331 = vmatpush3.bf16.msra.mxu1 %v3640_v25 }
 0x9ff   :  { %3332 = vmatprep.subr.bf16.mxu1 %v3641_v43 }
 0xa00   :  { %3516 = vmatprep.mubr.bf16.mxu0 %v1995_v41  ;;  %v1975_v0 = vmax.f32 %v1967_v5, 0.0 }
 0xa02   :  { %v1996_v47 = vpack.c.bf16 %v1975_v0, %v1974_v30  ;;  %3333 = vmatpush3.bf16.msra.mxu1 %v3642_v19 }
 0xa03   :  { %3334 = vmatprep.subr.bf16.mxu1 %v3643_v6 }
 0xa04   :  { %3517 = vmatmul.mubr.bf16.gmra.mxu0 %v1996_v47 }
 0xa06   :  { %3335 = vmatpush3.bf16.msra.mxu1 %v3644_v14 }
 0xa07   :  { %3336 = vmatprep.subr.bf16.mxu1 %v3645_v11 }
 0xa0a   :  { %3337 = vmatpush3.bf16.msra.mxu1 %v3646_v42  ;;  %v4699_v42 = vld [vmem:[#allocation8 + $0x15] ss:$0 sm:$0xff] }
 0xa0b   :  { %3338 = vmatprep.subr.bf16.mxu1 %v3647_v46 }
 0xa0e   :  { %3339 = vmatpush3.bf16.msra.mxu1 %v3648_v45 }
 0xab4   :  { %v3514_v63 = vpop.f32.mrf.mxu0 }
 0xab5   :  { %v4652_v60 = vadd.f32 %v3514_v63, %v3169_v48 }
 0xab6   :  { %v2084_v44 = vpop.f32.mrf.mxu0 }
 0xab7   :  { %v4644_v15 = vadd.f32 %v3169_v48, %v2084_v44  ;;  %v2133_v40 = vmul.f32 %v4652_v60, %v4652_v60 }
 0xab8   :  { %v3515_v2 = vpop.f32.mrf.mxu0 }
 0xab9   :  { %2115 = vadd.xlane.f32.xlu0 %v4644_v15  ;;  %v2131_v53 = vmul.f32 %v4644_v15, %v4644_v15  ;;  %v4657_v21 = vadd.f32 %v3515_v2, %v3169_v48 }
 0xaba   :  { %v2087_v22 = vpop.f32.mrf.mxu0 }
 0xabb   :  { %v4647_v26 = vadd.f32 %v3169_v48, %v2087_v22  ;;  %v2134_v13 = vmul.f32 %v4657_v21, %v4657_v21 }
 0xabd   :  { %2117 = vadd.xlane.f32.xlu1 %v4647_v26  ;;  %2139 = vadd.xlane.f32.xlu0 %v2131_v53  ;;  %v2132_v12 = vmul.f32 %v4647_v26, %v4647_v26 }
 0xac1   :  { %2141 = vadd.xlane.f32.xlu1 %v2132_v12  ;;  %2119 = vadd.xlane.f32.xlu0 %v4652_v60 }
 0xac4   :  { %v3518_v1 = vpop.f32.mrf.mxu0 }
 0xac5   :  { %2121 = vadd.xlane.f32.xlu1 %v4657_v21  ;;  %2143 = vadd.xlane.f32.xlu0 %v2133_v40  ;;  %v4672_v9 = vadd.f32 %v3518_v1, %v3169_v48 }
 0xac6   :  { %v2100_v7 = vpop.f32.mrf.mxu0 }
 0xac7   :  { %v4662_v37 = vadd.f32 %v3169_v48, %v2100_v7  ;;  %v2137_v4 = vmul.f32 %v4672_v9, %v4672_v9 }
 0xac8   :  { %v3519_v55 = vpop.f32.mrf.mxu0 }
 0xac9   :  { %2145 = vadd.xlane.f32.xlu1 %v2134_v13  ;;  %2123 = vadd.xlane.f32.xlu0 %v4662_v37  ;;  %v2135_v18 = vmul.f32 %v4662_v37, %v4662_v37  ;;  %v4677_v17 = vadd.f32 %v3519_v55, %v3169_v48 }
 0xaca   :  { %v2103_v39 = vpop.f32.mrf.mxu0 }
 0xacb   :  { %v4667_v23 = vadd.f32 %v3169_v48, %v2103_v39  ;;  %v2138_v36 = vmul.f32 %v4677_v17, %v4677_v17 }
 0xacd   :  { %2125 = vadd.xlane.f32.xlu1 %v4667_v23  ;;  %2147 = vadd.xlane.f32.xlu0 %v2135_v18  ;;  %v2136_v58 = vmul.f32 %v4667_v23, %v4667_v23 }
 0xad1   :  { %2149 = vadd.xlane.f32.xlu1 %v2136_v58  ;;  %2127 = vadd.xlane.f32.xlu0 %v4672_v9 }
 0xad5   :  { %2129 = vadd.xlane.f32.xlu1 %v4677_v17  ;;  %2151 = vadd.xlane.f32.xlu0 %v2137_v4 }
 0xad9   :  { %2153 = vadd.xlane.f32.xlu1 %v2138_v36 }
 0xb42   :  { %v2116_v29 = vpop.xlane.xlu0 %2115 }
 0xb43   :  { %v2155_v31 = vmul.f32 0.0078125, %v2116_v29 }
 0xb45   :  { %v2171_v50 = vmul.f32 %v2155_v31, %v2155_v31  ;;  %v2187_v20 = vsub.f32 %v4644_v15, %v2155_v31 }
 0xb46   :  { %v2118_v32 = vpop.xlane.xlu1 %2117  ;;  %v2140_v16 = vpop.xlane.xlu0 %2139 }
 0xb47   :  { %v2156_v62 = vmul.f32 0.0078125, %v2118_v32  ;;  %v2163_v57 = vmul.f32 0.0078125, %v2140_v16 }
 0xb49   :  { %v2179_v54 = vsub.f32 %v2163_v57, %v2171_v50  ;;  %v2172_v41 = vmul.f32 %v2156_v62, %v2156_v62  ;;  %v2188_v46 = vsub.f32 %v4647_v26, %v2156_v62 }
 0xb4a   :  { %v2142_v8 = vpop.xlane.xlu1 %2141  ;;  %v2120_v59 = vpop.xlane.xlu0 %2119 }
 0xb4b   :  { %v2195_v5 = vadd.f32 1e-05, %v2179_v54  ;;  %v2164_v30 = vmul.f32 0.0078125, %v2142_v8  ;;  %v2157_v0 = vmul.f32 0.0078125, %v2120_v59  ;;  %v4707_v59 = vld [vmem:[#allocation8 + $0x16] ss:$0 sm:$0xff] }
 0xb4d   :  { %3769 = vrsqrt.f32 %v2195_v5  ;;  %v2180_v47 = vsub.f32 %v2164_v30, %v2172_v41  ;;  %v2173_v2 = vmul.f32 %v2157_v0, %v2157_v0  ;;  %v2189_v41 = vsub.f32 %v4652_v60, %v2157_v0 }
 0xb4e   :  { %v2122_v63 = vpop.xlane.xlu1 %2121  ;;  %v2144_v48 = vpop.xlane.xlu0 %2143 }
 0xb4f   :  { %v2196_v44 = vadd.f32 1e-05, %v2180_v47  ;;  %v4684_v22 = vmul.f32 0.0078125, %v2122_v63  ;;  %v2165_v53 = vmul.f32 0.0078125, %v2144_v48 }
 0xb51   :  { %3771 = vrsqrt.f32 %v2196_v44  ;;  %v2181_v12 = vsub.f32 %v2165_v53, %v2173_v2  ;;  %v2174_v7 = vmul.f32 %v4684_v22, %v4684_v22 }
 0xb52   :  { %v2146_v40 = vpop.xlane.xlu1 %2145  ;;  %v2124_v1 = vpop.xlane.xlu0 %2123 }
 0xb53   :  { %v2197_v13 = vadd.f32 1e-05, %v2181_v12  ;;  %v2166_v55 = vmul.f32 0.0078125, %v2146_v40  ;;  %v4688_v39 = vmul.f32 0.0078125, %v2124_v1  ;;  %v2190_v12 = vsub.f32 %v4657_v21, %v4684_v22 }
 0xb55   :  { %3773 = vrsqrt.f32 %v2197_v13  ;;  %v2182_v18 = vsub.f32 %v2166_v55, %v2174_v7  ;;  %v2175_v35 = vmul.f32 %v4688_v39, %v4688_v39 }
 0xb56   :  { %v2126_v58 = vpop.xlane.xlu1 %2125  ;;  %v2148_v4 = vpop.xlane.xlu0 %2147 }
 0xb57   :  { %v2198_v36 = vadd.f32 1e-05, %v2182_v18  ;;  %v4692_v27 = vmul.f32 0.0078125, %v2126_v58  ;;  %v2167_v33 = vmul.f32 0.0078125, %v2148_v4  ;;  %v2191_v58 = vsub.f32 %v4662_v37, %v4688_v39 }
 0xb59   :  { %3775 = vrsqrt.f32 %v2198_v36  ;;  %v2183_v56 = vsub.f32 %v2167_v33, %v2175_v35  ;;  %v2176_v51 = vmul.f32 %v4692_v27, %v4692_v27 }
 0xb5a   :  { %v3770_v24 = vpop.eup %3769  ;;  %v2150_v25 = vpop.xlane.xlu1 %2149 }
 0xb5b   :  { %v2128_v43 = vpop.xlane.xlu0 %2127  ;;  %v2199_v19 = vadd.f32 1e-05, %v2183_v56  ;;  %v2168_v6 = vmul.f32 0.0078125, %v2150_v25  ;;  %v2211_v11 = vmul.f32 %v3770_v24, %v2187_v20  ;;  %v2192_v56 = vsub.f32 %v4667_v23, %v4692_v27 }
 0xb5c   :  { %v4697_v14 = vmul.f32 0.0078125, %v2128_v43 }
 0xb5d   :  { %3777 = vrsqrt.f32 %v2199_v19  ;;  %v2184_v45 = vsub.f32 %v2168_v6, %v2176_v51  ;;  %v2224_v16 = vmul.f32 %v4699_v42, %v2211_v11 }
 0xb5e   :  { %v3772_v15 = vpop.eup %3771  ;;  %v2177_v29 = vmul.f32 %v4697_v14, %v4697_v14  ;;  %v2130_v31 = vpop.xlane.xlu1 %2129  ;;  %v2193_v11 = vsub.f32 %v4672_v9, %v4697_v14 }
 0xb5f   :  { %v2152_v32 = vpop.xlane.xlu0 %2151  ;;  %v2200_v50 = vadd.f32 1e-05, %v2184_v45  ;;  %v4705_v57 = vmul.f32 0.0078125, %v2130_v31  ;;  %v2212_v8 = vmul.f32 %v3772_v15, %v2188_v46  ;;  %v2237_v47 = vadd.f32 %v4707_v59, %v2224_v16 }
 0xb60   :  { %v2169_v54 = vmul.f32 0.0078125, %v2152_v32 }
 0xb61   :  { %3779 = vrsqrt.f32 %v2200_v50  ;;  %v2225_v30 = vmul.f32 %v4699_v42, %v2212_v8  ;;  %v2178_v63 = vmul.f32 %v4705_v57, %v4705_v57  ;;  %v2245_v1 = vmax.f32 %v2237_v47, 0.0 }
 0xb62   :  { %v2185_v26 = vsub.f32 %v2169_v54, %v2177_v29  ;;  %v3774_v62 = vpop.eup %3773  ;;  %v2154_v5 = vpop.xlane.xlu1 %2153  ;;  %v2194_v16 = vsub.f32 %v4677_v17, %v4705_v57 }
 0xb63   :  { %v2170_v44 = vmul.f32 0.0078125, %v2154_v5  ;;  %v2213_v2 = vmul.f32 %v3774_v62, %v2189_v41  ;;  %v2238_v53 = vadd.f32 %v4707_v59, %v2225_v30 }
 0xb64   :  { %v2201_v48 = vadd.f32 1e-05, %v2185_v26 }
 0xb65   :  { %v2186_v60 = vsub.f32 %v2170_v44, %v2178_v63  ;;  %v2226_v0 = vmul.f32 %v4699_v42, %v2213_v2  ;;  %v2246_v7 = vmax.f32 %v2238_v53, 0.0 }
 0xb66   :  { %3781 = vrsqrt.f32 %v2201_v48  ;;  %v3776_v40 = vpop.eup %3775 }
 0xb67   :  { %v2202_v13 = vadd.f32 1e-05, %v2186_v60  ;;  %v2214_v55 = vmul.f32 %v3776_v40, %v2190_v12  ;;  %v2253_v18 = vmax.f32 %v2245_v1, %v2246_v7  ;;  %v2239_v36 = vadd.f32 %v4707_v59, %v2226_v0 }
 0xb68   :  { %v2314_v62 = vpack.c.bf16 %v2246_v7, %v2245_v1 }
 0xb69   :  { %3783 = vrsqrt.f32 %v2202_v13  ;;  %v2227_v4 = vmul.f32 %v4699_v42, %v2214_v55  ;;  %v2254_v21 = vrot.slane %v2253_v18, 4  ;;  %v2247_v24 = vmax.f32 %v2239_v36, 0.0 }
 0xb6a   :  { %v3778_v35 = vpop.eup %3777 }
 0xb6b   :  { %v2240_v22 = vadd.f32 %v4707_v59, %v2227_v4  ;;  %v2215_v33 = vmul.f32 %v3778_v35, %v2191_v58  ;;  %v2255_v20 = vmax.f32 %v2253_v18, %v2254_v21 }
 0xb6d   :  { %v2248_v51 = vmax.f32 %v2240_v22, 0.0  ;;  %v2228_v25 = vmul.f32 %v4699_v42, %v2215_v33  ;;  %v2256_v37 = vrot.slane %v2255_v20, 2 }
 0xb6e   :  { %v3780_v43 = vpop.eup %3779 }
 0xb6f   :  { %v2260_v39 = vmax.f32 %v2247_v24, %v2248_v51  ;;  %v2216_v19 = vmul.f32 %v3780_v43, %v2192_v56  ;;  %v2257_v6 = vmax.f32 %v2255_v20, %v2256_v37  ;;  %v2241_v15 = vadd.f32 %v4707_v59, %v2228_v25 }
 0xb70   :  { %v2316_v1 = vpack.c.bf16 %v2248_v51, %v2247_v24  ;;  %v3180_v24 = vld [vmem:[#allocation8 + $0x17] ss:$0 sm:$0xff] }
 0xb71   :  { %v2261_v46 = vrot.slane %v2260_v39, 4  ;;  %v2229_v45 = vmul.f32 %v4699_v42, %v2216_v19  ;;  %v2258_v31 = vrot.slane %v2257_v6, 1  ;;  %v2249_v8 = vmax.f32 %v2241_v15, 0.0 }
 0xb73   :  { %v3782_v29 = vpop.eup %3781  ;;  %v2262_v23 = vmax.f32 %v2260_v39, %v2261_v46  ;;  %v2242_v27 = vadd.f32 %v4707_v59, %v2229_v45  ;;  %v2259_v50 = vmax.f32 %v2257_v6, %v2258_v31 }
 0xb74   :  { %v2217_v32 = vmul.f32 %v3782_v29, %v2193_v11 }
 0xb75   :  { %v2263_v54 = vrot.slane %v2262_v23, 2  ;;  %v2250_v41 = vmax.f32 %v2242_v27, 0.0  ;;  %v2315_v26 = vpack.c.bf16 %v2259_v50, %v2259_v50 }
 0xb76   :  { %v2230_v9 = vmul.f32 %v4699_v42, %v2217_v32  ;;  %v3784_v14 = vpop.eup %3783 }
 0xb77   :  { %v2264_v5 = vmax.f32 %v2262_v23, %v2263_v54  ;;  %v2267_v30 = vmax.f32 %v2249_v8, %v2250_v41  ;;  %v2218_v47 = vmul.f32 %v3784_v14, %v2194_v16  ;;  %2455 = vmatprep.mubr.bf16.mxu1 %v2315_v26  ;;  %v2318_v35 = vpack.c.bf16 %v2250_v41, %v2249_v8 }
 0xb78   :  { %2456 = vmatmul.mubr.bf16.vlgmr.msra.gmra.mxu1 %v2314_v62  ;;  %v2243_v17 = vadd.f32 %v4707_v59, %v2230_v9 }
 0xb79   :  { %v2265_v63 = vrot.slane %v2264_v5, 1  ;;  %v2268_v48 = vrot.slane %v2267_v30, 4  ;;  %v2231_v44 = vmul.f32 %v4699_v42, %v2218_v47 }
 0xb7a   :  { %v2251_v0 = vmax.f32 %v2243_v17, 0.0 }
 0xb7b   :  { %v2266_v57 = vmax.f32 %v2264_v5, %v2265_v63  ;;  %v2269_v2 = vmax.f32 %v2267_v30, %v2268_v48  ;;  %v2244_v53 = vadd.f32 %v4707_v59, %v2231_v44 }
 0xb7d   :  { %v2317_v12 = vpack.c.bf16 %v2266_v57, %v2266_v57  ;;  %v2270_v60 = vrot.slane %v2269_v2, 2  ;;  %v2252_v40 = vmax.f32 %v2244_v53, 0.0  ;;  %v3649_v53 = vld [vmem:[#allocation5 + $0x1b8] sm:$0xff]  }
 0xb7e   :  { %3520 = vmatprep.subr.bf16.mxu0 %v3649_v53  ;;  %3544 = vmatprep.subr.bf16.mxu1 %v3649_v53 }
 0xb7f   :  { %2463 = vmatprep.mubr.bf16.mxu1 %v2317_v12  ;;  %v2271_v7 = vmax.f32 %v2269_v2, %v2270_v60  ;;  %v2274_v13 = vmax.f32 %v2251_v0, %v2252_v40  ;;  %v2320_v20 = vpack.c.bf16 %v2252_v40, %v2251_v0  ;;  %3521 = vmatpush3.bf16.msra.mxu0 %v3649_v53 }
 0xb80   :  { %2464 = vmatmul.mubr.bf16.gmra.mxu1 %v2316_v1  ;;  %v3650_v1 = vld [vmem:[#allocation5 + $0x1b0] sm:$0xff]  }
 0xb81   :  { %v2272_v55 = vrot.slane %v2271_v7, 1  ;;  %v2275_v18 = vrot.slane %v2274_v13, 4  ;;  %3552 = vmatpush3.bf16.msra.mxu1 %v3649_v53  ;;  %3522 = vmatprep.subr.bf16.mxu0 %v3650_v1 }
 0xb82   :  { %3545 = vmatprep.subr.bf16.mxu1 %v3650_v1 }
 0xb83   :  { %v2273_v58 = vmax.f32 %v2271_v7, %v2272_v55  ;;  %v2276_v4 = vmax.f32 %v2274_v13, %v2275_v18  ;;  %3523 = vmatpush3.bf16.msra.mxu0 %v3650_v1  ;;  %v3651_v13 = vld [vmem:[#allocation5 + $0x1a8] sm:$0xff]   ;;  %v3652_v55 = vld [vmem:[#allocation5 + $0x1a0] sm:$0xff]   ;;  %v3653_v18 = vld [vmem:[#allocation5 + $0x198] sm:$0xff]  }
 0xb84   :  { %3524 = vmatprep.subr.bf16.mxu0 %v3651_v13 }
 0xb85   :  { %v2319_v42 = vpack.c.bf16 %v2273_v58, %v2273_v58  ;;  %v2277_v36 = vrot.slane %v2276_v4, 2  ;;  %3553 = vmatpush3.bf16.msra.mxu1 %v3650_v1  ;;  %v3654_v58 = vld [vmem:[#allocation5 + $0x190] sm:$0xff]  }
 0xb86   :  { %3546 = vmatprep.subr.bf16.mxu1 %v3651_v13 }
 0xb87   :  { %2471 = vmatprep.mubr.bf16.mxu1 %v2319_v42  ;;  %v2278_v21 = vmax.f32 %v2276_v4, %v2277_v36  ;;  %3525 = vmatpush3.bf16.msra.mxu0 %v3651_v13  ;;  %v3655_v4 = vld [vmem:[#allocation5 + $0x188] sm:$0xff]   ;;  %v3656_v42 = vld [vmem:[#allocation5 + $0x180] sm:$0xff]  }
 0xb88   :  { %2472 = vmatmul.mubr.bf16.gmra.mxu1 %v2318_v35  ;;  %3526 = vmatprep.subr.bf16.mxu0 %v3652_v55 }
 0xb89   :  { %v2279_v59 = vrot.slane %v2278_v21, 1  ;;  %3554 = vmatpush3.bf16.msra.mxu1 %v3651_v13 }
 0xb8a   :  { %3547 = vmatprep.subr.bf16.mxu1 %v3652_v55 }
 0xb8b   :  { %v2280_v22 = vmax.f32 %v2278_v21, %v2279_v59  ;;  %3527 = vmatpush3.bf16.msra.mxu0 %v3652_v55 }
 0xb8c   :  { %3528 = vmatprep.subr.bf16.mxu0 %v3653_v18 }
 0xb8d   :  { %v2321_v33 = vpack.c.bf16 %v2280_v22, %v2280_v22  ;;  %3555 = vmatpush3.bf16.msra.mxu1 %v3652_v55 }
 0xb8e   :  { %3548 = vmatprep.subr.bf16.mxu1 %v3653_v18 }
 0xb8f   :  { %2479 = vmatprep.mubr.bf16.mxu1 %v2321_v33  ;;  %3529 = vmatpush3.bf16.msra.mxu0 %v3653_v18 }
 0xb90   :  { %2480 = vmatmul.mubr.bf16.gmra.mxu1 %v2320_v20  ;;  %3530 = vmatprep.subr.bf16.mxu0 %v3654_v58 }
 0xb91   :  { %3556 = vmatpush3.bf16.msra.mxu1 %v3653_v18 }
 0xb92   :  { %3549 = vmatprep.subr.bf16.mxu1 %v3654_v58 }
 0xb93   :  { %3531 = vmatpush3.bf16.msra.mxu0 %v3654_v58 }
 0xb94   :  { %3532 = vmatprep.subr.bf16.mxu0 %v3655_v4 }
 0xb95   :  { %3557 = vmatpush3.bf16.msra.mxu1 %v3654_v58  ;;  %v4790_v58 = vld [vmem:[#allocation8 + $0x18] ss:$0 sm:$0xff] }
 0xb96   :  { %3550 = vmatprep.subr.bf16.mxu1 %v3655_v4 }
 0xb97   :  { %3533 = vmatpush3.bf16.msra.mxu0 %v3655_v4 }
 0xb98   :  { %3534 = vmatprep.subr.bf16.mxu0 %v3656_v42 }
 0xb99   :  { %3558 = vmatpush3.bf16.msra.mxu1 %v3655_v4 }
 0xb9a   :  { %3551 = vmatprep.subr.bf16.mxu1 %v3656_v42 }
 0xb9b   :  { %3535 = vmatpush3.bf16.msra.mxu0 %v3656_v42 }
 0xb9d   :  { %3559 = vmatpush3.bf16.msra.mxu1 %v3656_v42 }
 0xc38   :  { %v3340_v56 = vpop.f32.mrf.mxu1 }
 0xc3a   :  { %v3341_v51 = vpop.f32.mrf.mxu1 }
 0xc3b   :  { %v3342_v25 = vadd.f32 %v3341_v51, %v3340_v56 }
 0xc3c   :  { %v3343_v43 = vpop.f32.mrf.mxu1 }
 0xc3d   :  { %v4737_v37 = vadd.f32 %v3342_v25, %v3180_v24 }
 0xc3e   :  { %v3344_v39 = vpop.f32.mrf.mxu1 }
 0xc3f   :  { %v3345_v19 = vadd.f32 %v3344_v39, %v3343_v43  ;;  %2488 = vadd.xlane.f32.xlu0 %v4737_v37  ;;  %v2504_v46 = vmul.f32 %v4737_v37, %v4737_v37 }
 0xc40   :  { %v3346_v6 = vpop.f32.mrf.mxu1 }
 0xc41   :  { %v4740_v11 = vadd.f32 %v3345_v19, %v3180_v24 }
 0xc42   :  { %v3347_v45 = vpop.f32.mrf.mxu1 }
 0xc43   :  { %v3348_v15 = vadd.f32 %v3347_v45, %v3346_v6  ;;  %2490 = vadd.xlane.f32.xlu1 %v4740_v11  ;;  %2512 = vadd.xlane.f32.xlu0 %v2504_v46  ;;  %v2505_v23 = vmul.f32 %v4740_v11, %v4740_v11 }
 0xc44   :  { %v3349_v29 = vpop.f32.mrf.mxu1 }
 0xc45   :  { %v4745_v31 = vadd.f32 %v3348_v15, %v3180_v24 }
 0xc46   :  { %v3350_v27 = vpop.f32.mrf.mxu1 }
 0xc47   :  { %v3351_v32 = vadd.f32 %v3350_v27, %v3349_v29  ;;  %2514 = vadd.xlane.f32.xlu1 %v2505_v23  ;;  %2492 = vadd.xlane.f32.xlu0 %v4745_v31  ;;  %v2506_v54 = vmul.f32 %v4745_v31, %v4745_v31 }
 0xc48   :  { %v3352_v16 = vpop.f32.mrf.mxu1 }
 0xc49   :  { %v4750_v50 = vadd.f32 %v3351_v32, %v3180_v24 }
 0xc4a   :  { %v3353_v8 = vpop.f32.mrf.mxu1 }
 0xc4b   :  { %v3354_v41 = vadd.f32 %v3353_v8, %v3352_v16  ;;  %2494 = vadd.xlane.f32.xlu1 %v4750_v50  ;;  %2516 = vadd.xlane.f32.xlu0 %v2506_v54  ;;  %v2507_v26 = vmul.f32 %v4750_v50, %v4750_v50 }
 0xc4c   :  { %v3355_v9 = vpop.f32.mrf.mxu1 }
 0xc4d   :  { %v4755_v14 = vadd.f32 %v3354_v41, %v3180_v24 }
 0xc4e   :  { %v3356_v62 = vpop.f32.mrf.mxu1 }
 0xc4f   :  { %v3357_v5 = vadd.f32 %v3356_v62, %v3355_v9  ;;  %2518 = vadd.xlane.f32.xlu1 %v2507_v26  ;;  %2496 = vadd.xlane.f32.xlu0 %v4755_v14  ;;  %v2508_v63 = vmul.f32 %v4755_v14, %v4755_v14 }
 0xc50   :  { %v3358_v30 = vpop.f32.mrf.mxu1 }
 0xc51   :  { %v4760_v47 = vadd.f32 %v3357_v5, %v3180_v24 }
 0xc52   :  { %v3359_v48 = vpop.f32.mrf.mxu1 }
 0xc53   :  { %v3360_v44 = vadd.f32 %v3359_v48, %v3358_v30  ;;  %2498 = vadd.xlane.f32.xlu1 %v4760_v47  ;;  %2520 = vadd.xlane.f32.xlu0 %v2508_v63  ;;  %v2509_v2 = vmul.f32 %v4760_v47, %v4760_v47 }
 0xc54   :  { %v3361_v17 = vpop.f32.mrf.mxu1 }
 0xc55   :  { %v4765_v57 = vadd.f32 %v3360_v44, %v3180_v24 }
 0xc56   :  { %v3362_v12 = vpop.f32.mrf.mxu1 }
 0xc57   :  { %v3363_v60 = vadd.f32 %v3362_v12, %v3361_v17  ;;  %2522 = vadd.xlane.f32.xlu1 %v2509_v2  ;;  %2500 = vadd.xlane.f32.xlu0 %v4765_v57  ;;  %v2510_v40 = vmul.f32 %v4765_v57, %v4765_v57 }
 0xc59   :  { %v4770_v0 = vadd.f32 %v3363_v60, %v3180_v24 }
 0xc5b   :  { %2502 = vadd.xlane.f32.xlu1 %v4770_v0  ;;  %2524 = vadd.xlane.f32.xlu0 %v2510_v40  ;;  %v2511_v7 = vmul.f32 %v4770_v0, %v4770_v0 }
 0xc5f   :  { %2526 = vadd.xlane.f32.xlu1 %v2511_v7 }
 0xcc8   :  { %v2489_v36 = vpop.xlane.xlu0 %2488 }
 0xcc9   :  { %v2528_v35 = vmul.f32 0.0078125, %v2489_v36 }
 0xccb   :  { %v2544_v22 = vmul.f32 %v2528_v35, %v2528_v35  ;;  %v2560_v2 = vsub.f32 %v4737_v37, %v2528_v35 }
 0xccc   :  { %v2491_v21 = vpop.xlane.xlu1 %2490  ;;  %v2513_v59 = vpop.xlane.xlu0 %2512 }
 0xccd   :  { %v2529_v33 = vmul.f32 0.0078125, %v2491_v21  ;;  %v2536_v20 = vmul.f32 0.0078125, %v2513_v59 }
 0xccf   :  { %v2552_v56 = vsub.f32 %v2536_v20, %v2544_v22  ;;  %v2545_v25 = vmul.f32 %v2529_v33, %v2529_v33  ;;  %v2561_v4 = vsub.f32 %v4740_v11, %v2529_v33 }
 0xcd0   :  { %v2515_v24 = vpop.xlane.xlu1 %2514  ;;  %v2493_v51 = vpop.xlane.xlu0 %2492 }
 0xcd1   :  { %v2568_v43 = vadd.f32 1e-05, %v2552_v56  ;;  %v2537_v39 = vmul.f32 0.0078125, %v2515_v24  ;;  %v2530_v19 = vmul.f32 0.0078125, %v2493_v51  ;;  %v3198_v51 = vld [vmem:[#allocation8 + $0x19] ss:$0 sm:$0xff] }
 0xcd3   :  { %3785 = vrsqrt.f32 %v2568_v43  ;;  %v2553_v6 = vsub.f32 %v2537_v39, %v2545_v25  ;;  %v2546_v29 = vmul.f32 %v2530_v19, %v2530_v19  ;;  %v2562_v25 = vsub.f32 %v4745_v31, %v2530_v19 }
 0xcd4   :  { %v2495_v46 = vpop.xlane.xlu1 %2494  ;;  %v2517_v45 = vpop.xlane.xlu0 %2516 }
 0xcd5   :  { %v2569_v15 = vadd.f32 1e-05, %v2553_v6  ;;  %v4777_v23 = vmul.f32 0.0078125, %v2495_v46  ;;  %v2538_v27 = vmul.f32 0.0078125, %v2517_v45 }
 0xcd7   :  { %3787 = vrsqrt.f32 %v2569_v15  ;;  %v2554_v32 = vsub.f32 %v2538_v27, %v2546_v29  ;;  %v2547_v8 = vmul.f32 %v4777_v23, %v4777_v23 }
 0xcd8   :  { %v2519_v16 = vpop.xlane.xlu1 %2518  ;;  %v2497_v54 = vpop.xlane.xlu0 %2496 }
 0xcd9   :  { %v2570_v41 = vadd.f32 1e-05, %v2554_v32  ;;  %v2539_v9 = vmul.f32 0.0078125, %v2519_v16  ;;  %v4781_v26 = vmul.f32 0.0078125, %v2497_v54  ;;  %v2563_v32 = vsub.f32 %v4750_v50, %v4777_v23 }
 0xcdb   :  { %3789 = vrsqrt.f32 %v2570_v41  ;;  %v2555_v62 = vsub.f32 %v2539_v9, %v2547_v8  ;;  %v2548_v48 = vmul.f32 %v4781_v26, %v4781_v26 }
 0xcdc   :  { %v2499_v5 = vpop.xlane.xlu1 %2498  ;;  %v2521_v30 = vpop.xlane.xlu0 %2520 }
 0xcdd   :  { %v2571_v63 = vadd.f32 1e-05, %v2555_v62  ;;  %v4785_v44 = vmul.f32 0.0078125, %v2499_v5  ;;  %v2540_v17 = vmul.f32 0.0078125, %v2521_v30  ;;  %v2564_v5 = vsub.f32 %v4755_v14, %v4781_v26 }
 0xcdf   :  { %3791 = vrsqrt.f32 %v2571_v63  ;;  %v2556_v53 = vsub.f32 %v2540_v17, %v2548_v48  ;;  %v2549_v60 = vmul.f32 %v4785_v44, %v4785_v44  ;;  %v2565_v17 = vsub.f32 %v4760_v47, %v4785_v44 }
 0xce0   :  { %v3786_v12 = vpop.eup %3785  ;;  %v2523_v40 = vpop.xlane.xlu1 %2522 }
 0xce1   :  { %v2501_v1 = vpop.xlane.xlu0 %2500  ;;  %v2572_v7 = vadd.f32 1e-05, %v2556_v53  ;;  %v2541_v13 = vmul.f32 0.0078125, %v2523_v40  ;;  %v2584_v18 = vmul.f32 %v3786_v12, %v2560_v2 }
 0xce2   :  { %v2534_v55 = vmul.f32 0.0078125, %v2501_v1 }
 0xce3   :  { %3793 = vrsqrt.f32 %v2572_v7  ;;  %v2557_v42 = vsub.f32 %v2541_v13, %v2549_v60  ;;  %v2597_v59 = vmul.f32 %v4790_v58, %v2584_v18 }
 0xce4   :  { %v3788_v36 = vpop.eup %3787  ;;  %v2550_v37 = vmul.f32 %v2534_v55, %v2534_v55  ;;  %v2503_v35 = vpop.xlane.xlu1 %2502  ;;  %v2566_v14 = vsub.f32 %v4765_v57, %v2534_v55 }
 0xce5   :  { %v2525_v21 = vpop.xlane.xlu0 %2524  ;;  %v2573_v22 = vadd.f32 1e-05, %v2557_v42  ;;  %v2535_v20 = vmul.f32 0.0078125, %v2503_v35  ;;  %v2585_v24 = vmul.f32 %v3788_v36, %v2561_v4  ;;  %v2610_v33 = vadd.f32 %v3198_v51, %v2597_v59 }
 0xce6   :  { %v2542_v56 = vmul.f32 0.0078125, %v2525_v21 }
 0xce7   :  { %3795 = vrsqrt.f32 %v2573_v22  ;;  %v2598_v11 = vmul.f32 %v4790_v58, %v2585_v24  ;;  %v2551_v45 = vmul.f32 %v2535_v20, %v2535_v20  ;;  %v2618_v19 = vmax.f32 %v2610_v33, 0.0 }
 0xce8   :  { %v2558_v43 = vsub.f32 %v2542_v56, %v2550_v37  ;;  %v3790_v39 = vpop.eup %3789  ;;  %v2527_v6 = vpop.xlane.xlu1 %2526  ;;  %v2567_v42 = vsub.f32 %v4770_v0, %v2535_v20 }
 0xce9   :  { %v2586_v46 = vmul.f32 %v3790_v39, %v2562_v25  ;;  %v2543_v29 = vmul.f32 0.0078125, %v2527_v6  ;;  %v2611_v27 = vadd.f32 %v3198_v51, %v2598_v11  ;;  %v3199_v25 = vld [vmem:[#allocation8 + $0x1a] ss:$0 sm:$0xff] }
 0xcea   :  { %v2574_v15 = vadd.f32 1e-05, %v2558_v43 }
 0xceb   :  { %v2559_v16 = vsub.f32 %v2543_v29, %v2551_v45  ;;  %v2599_v54 = vmul.f32 %v4790_v58, %v2586_v46  ;;  %v2619_v8 = vmax.f32 %v2611_v27, 0.0 }
 0xcec   :  { %3797 = vrsqrt.f32 %v2574_v15  ;;  %v3792_v31 = vpop.eup %3791 }
 0xced   :  { %v2587_v41 = vmul.f32 %v3792_v31, %v2563_v32  ;;  %v2575_v9 = vadd.f32 1e-05, %v2559_v16  ;;  %v2643_v62 = vpack.c.bf16 %v2619_v8, %v2618_v19  ;;  %v2612_v63 = vadd.f32 %v3198_v51, %v2599_v54 }
 0xcef   :  { %3799 = vrsqrt.f32 %v2575_v9  ;;  %v2600_v30 = vmul.f32 %v4790_v58, %v2587_v41  ;;  %3536 = vmatprep.mubr.bf16.mxu0 %v2643_v62  ;;  %v2620_v2 = vmax.f32 %v2612_v63, 0.0 }
 0xcf0   :  { %v3794_v48 = vpop.eup %3793 }
 0xcf1   :  { %v2613_v50 = vadd.f32 %v3198_v51, %v2600_v30  ;;  %v2588_v23 = vmul.f32 %v3794_v48, %v2564_v5 }
 0xcf3   :  { %v2621_v53 = vmax.f32 %v2613_v50, 0.0  ;;  %v2601_v12 = vmul.f32 %v4790_v58, %v2588_v23 }
 0xcf4   :  { %v3796_v60 = vpop.eup %3795 }
 0xcf5   :  { %v2644_v40 = vpack.c.bf16 %v2621_v53, %v2620_v2  ;;  %v2589_v1 = vmul.f32 %v3796_v60, %v2565_v17  ;;  %v2614_v7 = vadd.f32 %v3198_v51, %v2601_v12 }
 0xcf7   :  { %3537 = vmatmul.mubr.bf16.vlgmr.msra.gmra.mxu0 %v2644_v40  ;;  %v2602_v26 = vmul.f32 %v4790_v58, %v2589_v1  ;;  %v2622_v36 = vmax.f32 %v2614_v7, 0.0 }
 0xcf9   :  { %v3798_v13 = vpop.eup %3797  ;;  %v2615_v4 = vadd.f32 %v3198_v51, %v2602_v26 }
 0xcfa   :  { %v2590_v18 = vmul.f32 %v3798_v13, %v2566_v14 }
 0xcfb   :  { %v2623_v47 = vmax.f32 %v2615_v4, 0.0 }
 0xcfc   :  { %v2603_v44 = vmul.f32 %v4790_v58, %v2590_v18  ;;  %v3800_v37 = vpop.eup %3799 }
 0xcfd   :  { %v2591_v35 = vmul.f32 %v3800_v37, %v2567_v42  ;;  %v2645_v21 = vpack.c.bf16 %v2623_v47, %v2622_v36 }
 0xcfe   :  { %v2616_v57 = vadd.f32 %v3198_v51, %v2603_v44 }
 0xcff   :  { %3540 = vmatprep.mubr.bf16.mxu1 %v2645_v21  ;;  %v2604_v59 = vmul.f32 %v4790_v58, %v2591_v35 }
 0xd00   :  { %v2624_v22 = vmax.f32 %v2616_v57, 0.0 }
 0xd01   :  { %v2617_v55 = vadd.f32 %v3198_v51, %v2604_v59 }
 0xd03   :  { %v2625_v56 = vmax.f32 %v2617_v55, 0.0 }
 0xd05   :  { %v2646_v24 = vpack.c.bf16 %v2625_v56, %v2624_v22 }
 0xd07   :  { %3541 = vmatmul.mubr.bf16.vlgmr.msra.gmra.mxu1 %v2646_v24 }
 0xdb7   :  { %v3538_v43 = vpop.f32.mrf.mxu0 }
 0xdb8   :  { %v4810_v39 = vadd.f32 %v3538_v43, %v3199_v25 }
 0xdb9   :  { %v2734_v0 = vpop.f32.mrf.mxu0 }
 0xdba   :  { %2769 = vadd.xlane.f32.xlu0 %v4810_v39  ;;  %v4813_v6 = vadd.f32 %v3199_v25, %v2734_v0  ;;  %v2783_v51 = vmul.f32 %v4810_v39, %v4810_v39 }
 0xdbb   :  { %v3539_v20 = vpop.f32.mrf.mxu0 }
 0xdbc   :  { %v4815_v11 = vadd.f32 %v3539_v20, %v3199_v25  ;;  %v2781_v45 = vmul.f32 %v4813_v6, %v4813_v6 }
 0xdbd   :  { %v2737_v33 = vpop.f32.mrf.mxu0 }
 0xdbe   :  { %2771 = vadd.xlane.f32.xlu1 %v4815_v11  ;;  %2765 = vadd.xlane.f32.xlu0 %v4813_v6  ;;  %v4819_v58 = vadd.f32 %v3199_v25, %v2737_v33  ;;  %v2784_v46 = vmul.f32 %v4815_v11, %v4815_v11 }
 0xdc0   :  { %v2782_v27 = vmul.f32 %v4819_v58, %v4819_v58 }
 0xdc2   :  { %2767 = vadd.xlane.f32.xlu1 %v4819_v58  ;;  %2793 = vadd.xlane.f32.xlu0 %v2783_v51 }
 0xdc6   :  { %2795 = vadd.xlane.f32.xlu1 %v2784_v46  ;;  %2789 = vadd.xlane.f32.xlu0 %v2781_v45 }
 0xdc7   :  { %v3542_v15 = vpop.f32.mrf.mxu1 }
 0xdc8   :  { %v4828_v29 = vadd.f32 %v3542_v15, %v3199_v25 }
 0xdc9   :  { %v2750_v32 = vpop.f32.mrf.mxu1 }
 0xdca   :  { %2791 = vadd.xlane.f32.xlu1 %v2782_v27  ;;  %2777 = vadd.xlane.f32.xlu0 %v4828_v29  ;;  %v4833_v54 = vadd.f32 %v3199_v25, %v2750_v32  ;;  %v2787_v62 = vmul.f32 %v4828_v29, %v4828_v29 }
 0xdcb   :  { %v3543_v16 = vpop.f32.mrf.mxu1 }
 0xdcc   :  { %v4835_v31 = vadd.f32 %v3543_v16, %v3199_v25  ;;  %v2785_v41 = vmul.f32 %v4833_v54, %v4833_v54 }
 0xdcd   :  { %v2753_v19 = vpop.f32.mrf.mxu1 }
 0xdce   :  { %2779 = vadd.xlane.f32.xlu1 %v4835_v31  ;;  %2773 = vadd.xlane.f32.xlu0 %v4833_v54  ;;  %v4839_v8 = vadd.f32 %v3199_v25, %v2753_v19  ;;  %v2788_v5 = vmul.f32 %v4835_v31, %v4835_v31 }
 0xdd0   :  { %v2786_v9 = vmul.f32 %v4839_v8, %v4839_v8 }
 0xdd2   :  { %2775 = vadd.xlane.f32.xlu1 %v4839_v8  ;;  %2797 = vadd.xlane.f32.xlu0 %v2785_v41 }
 0xdd6   :  { %2799 = vadd.xlane.f32.xlu1 %v2786_v9  ;;  %2801 = vadd.xlane.f32.xlu0 %v2787_v62  ;;  %v4877_v62 = vld [vmem:[#allocation8 + $0x1b] ss:$0 sm:$0xff] }
 0xdda   :  { %2803 = vadd.xlane.f32.xlu1 %v2788_v5 }
 0xe43   :  { %v2770_v30 = vpop.xlane.xlu0 %2769 }
 0xe44   :  { %v2807_v50 = vmul.f32 0.0078125, %v2770_v30 }
 0xe46   :  { %v2823_v12 = vmul.f32 %v2807_v50, %v2807_v50  ;;  %v2839_v45 = vsub.f32 %v4810_v39, %v2807_v50 }
 0xe47   :  { %v2772_v63 = vpop.xlane.xlu1 %2771  ;;  %v2766_v48 = vpop.xlane.xlu0 %2765 }
 0xe48   :  { %v4850_v23 = vmul.f32 0.0078125, %v2772_v63  ;;  %v4852_v17 = vmul.f32 0.0078125, %v2766_v48 }
 0xe4a   :  { %v2824_v1 = vmul.f32 %v4850_v23, %v4850_v23  ;;  %v2821_v14 = vmul.f32 %v4852_v17, %v4852_v17 }
 0xe4b   :  { %v2768_v2 = vpop.xlane.xlu1 %2767  ;;  %v2794_v53 = vpop.xlane.xlu0 %2793 }
 0xe4c   :  { %v2815_v60 = vmul.f32 0.0078125, %v2794_v53  ;;  %v4858_v13 = vmul.f32 0.0078125, %v2768_v2  ;;  %v4879_v2 = vld [vmem:[#allocation8 + $0x1c] ss:$0 sm:$0xff] }
 0xe4e   :  { %v2831_v40 = vsub.f32 %v2815_v60, %v2823_v12  ;;  %v2822_v35 = vmul.f32 %v4858_v13, %v4858_v13  ;;  %v2840_v60 = vsub.f32 %v4815_v11, %v4850_v23 }
 0xe4f   :  { %v2796_v26 = vpop.xlane.xlu1 %2795  ;;  %v2790_v7 = vpop.xlane.xlu0 %2789 }
 0xe50   :  { %v2847_v18 = vadd.f32 1e-05, %v2831_v40  ;;  %v2816_v4 = vmul.f32 0.0078125, %v2796_v26  ;;  %v2813_v42 = vmul.f32 0.0078125, %v2790_v7  ;;  %v2837_v40 = vsub.f32 %v4813_v6, %v4852_v17 }
 0xe52   :  { %3801 = vrsqrt.f32 %v2847_v18  ;;  %v2832_v36 = vsub.f32 %v2816_v4, %v2824_v1  ;;  %v2829_v47 = vsub.f32 %v2813_v42, %v2821_v14 }
 0xe53   :  { %v2792_v44 = vpop.xlane.xlu1 %2791  ;;  %v2778_v37 = vpop.xlane.xlu0 %2777 }
 0xe54   :  { %v2848_v21 = vadd.f32 1e-05, %v2832_v36  ;;  %v2845_v59 = vadd.f32 1e-05, %v2829_v47  ;;  %v2814_v57 = vmul.f32 0.0078125, %v2792_v44  ;;  %v4864_v43 = vmul.f32 0.0078125, %v2778_v37 }
 0xe55   :  { %v2838_v44 = vsub.f32 %v4819_v58, %v4858_v13 }
 0xe56   :  { %3803 = vrsqrt.f32 %v2848_v21  ;;  %v2830_v55 = vsub.f32 %v2814_v57, %v2822_v35  ;;  %v2827_v32 = vmul.f32 %v4864_v43, %v4864_v43 }
 0xe57   :  { %3805 = vrsqrt.f32 %v2845_v59  ;;  %v2780_v22 = vpop.xlane.xlu1 %2779  ;;  %v2774_v56 = vpop.xlane.xlu0 %2773 }
 0xe58   :  { %v2846_v24 = vadd.f32 1e-05, %v2830_v55  ;;  %v4862_v25 = vmul.f32 0.0078125, %v2774_v56  ;;  %v4873_v16 = vmul.f32 0.0078125, %v2780_v22 }
 0xe5a   :  { %3807 = vrsqrt.f32 %v2846_v24  ;;  %v2825_v33 = vmul.f32 %v4862_v25, %v4862_v25  ;;  %v2828_v1 = vmul.f32 %v4873_v16, %v4873_v16 }
 0xe5b   :  { %v2776_v0 = vpop.xlane.xlu1 %2775  ;;  %v2798_v20 = vpop.xlane.xlu0 %2797 }
 0xe5c   :  { %v4868_v51 = vmul.f32 0.0078125, %v2776_v0  ;;  %v2817_v46 = vmul.f32 0.0078125, %v2798_v20 }
 0xe5e   :  { %v2833_v15 = vsub.f32 %v2817_v46, %v2825_v33  ;;  %v2826_v19 = vmul.f32 %v4868_v51, %v4868_v51  ;;  %v2841_v33 = vsub.f32 %v4833_v54, %v4862_v25 }
 0xe5f   :  { %v3802_v27 = vpop.eup %3801  ;;  %v2800_v41 = vpop.xlane.xlu1 %2799 }
 0xe60   :  { %v2802_v9 = vpop.xlane.xlu0 %2801  ;;  %v2849_v5 = vadd.f32 1e-05, %v2833_v15  ;;  %v2818_v30 = vmul.f32 0.0078125, %v2800_v41  ;;  %v2863_v48 = vmul.f32 %v3802_v27, %v2839_v45  ;;  %v2843_v27 = vsub.f32 %v4828_v29, %v4864_v43 }
 0xe61   :  { %v2819_v63 = vmul.f32 0.0078125, %v2802_v9 }
 0xe62   :  { %3809 = vrsqrt.f32 %v2849_v5  ;;  %v2834_v39 = vsub.f32 %v2818_v30, %v2826_v19  ;;  %v2876_v53 = vmul.f32 %v4877_v62, %v2863_v48 }
 0xe63   :  { %v2835_v50 = vsub.f32 %v2819_v63, %v2827_v32  ;;  %v3804_v12 = vpop.eup %3803  ;;  %v2804_v14 = vpop.xlane.xlu1 %2803 }
 0xe64   :  { %v3806_v26 = vpop.eup %3805  ;;  %v2850_v7 = vadd.f32 1e-05, %v2834_v39  ;;  %v2820_v4 = vmul.f32 0.0078125, %v2804_v14  ;;  %v2889_v42 = vadd.f32 %v4879_v2, %v2876_v53  ;;  %v2864_v36 = vmul.f32 %v3804_v12, %v2840_v60 }
 0xe65   :  { %v2851_v18 = vadd.f32 1e-05, %v2835_v50  ;;  %v2861_v47 = vmul.f32 %v3806_v26, %v2837_v40 }
 0xe66   :  { %3811 = vrsqrt.f32 %v2850_v7  ;;  %v2836_v11 = vsub.f32 %v2820_v4, %v2828_v1  ;;  %v2897_v23 = vmax.f32 %v2889_v42, 0.0  ;;  %v2877_v6 = vmul.f32 %v4877_v62, %v2864_v36 }
 0xe67   :  { %v3808_v37 = vpop.eup %3807  ;;  %3813 = vrsqrt.f32 %v2851_v18  ;;  %v2874_v17 = vmul.f32 %v4877_v62, %v2861_v47 }
 0xe68   :  { %v2852_v35 = vadd.f32 1e-05, %v2836_v11  ;;  %v4894_v21 = vadd.f32 %v2897_v23, %v4539_v10  ;;  %v2862_v59 = vmul.f32 %v3808_v37, %v2838_v44  ;;  %v2890_v57 = vadd.f32 %v4879_v2, %v2877_v6 }
 0xe69   :  { %v2887_v55 = vadd.f32 %v4879_v2, %v2874_v17 }
 0xe6a   :  { %3815 = vrsqrt.f32 %v2852_v35  ;;  %2915 = vadd.xlane.f32.xlu0 %v4894_v21  ;;  %v2875_v58 = vmul.f32 %v4877_v62, %v2862_v59  ;;  %v2898_v13 = vmax.f32 %v2890_v57, 0.0  ;;  %v2929_v45 = vmul.f32 %v4894_v21, %v4894_v21 }
 0xe6b   :  { %v2895_v22 = vmax.f32 %v2887_v55, 0.0 }
 0xe6c   :  { %v2888_v56 = vadd.f32 %v4879_v2, %v2875_v58  ;;  %v4902_v24 = vadd.f32 %v2898_v13, %v4541_v34 }
 0xe6d   :  { %v4905_v10 = vadd.f32 %v2895_v22, %v4533_v28  ;;  %v2842_v28 = vsub.f32 %v4839_v8, %v4868_v51  ;;  %v2844_v8 = vsub.f32 %v4835_v31, %v4873_v16 }
 0xe6e   :  { %v2896_v0 = vmax.f32 %v2888_v56, 0.0  ;;  %2917 = vadd.xlane.f32.xlu1 %v4902_v24 }
 0xe6f   :  { %v3810_v20 = vpop.eup %3809  ;;  %2911 = vadd.xlane.f32.xlu0 %v4905_v10  ;;  %v2927_v32 = vmul.f32 %v4905_v10, %v4905_v10 }
 0xe70   :  { %v4912_v46 = vadd.f32 %v2896_v0, %v4535_v38  ;;  %v2865_v34 = vmul.f32 %v3810_v20, %v2841_v33  ;;  %v2930_v38 = vmul.f32 %v4902_v24, %v4902_v24 }
 0xe72   :  { %2913 = vadd.xlane.f32.xlu1 %v4912_v46  ;;  %v2878_v41 = vmul.f32 %v4877_v62, %v2865_v34  ;;  %v2928_v5 = vmul.f32 %v4912_v46, %v4912_v46 }
 0xe73   :  { %v3812_v15 = vpop.eup %3811  ;;  %2939 = vadd.xlane.f32.xlu0 %v2929_v45 }
 0xe74   :  { %v3814_v54 = vpop.eup %3813  ;;  %v2866_v25 = vmul.f32 %v3812_v15, %v2842_v28  ;;  %v2891_v63 = vadd.f32 %v4879_v2, %v2878_v41 }
 0xe75   :  { %v2867_v19 = vmul.f32 %v3814_v54, %v2843_v27 }
 0xe76   :  { %2941 = vadd.xlane.f32.xlu1 %v2930_v38  ;;  %v2879_v9 = vmul.f32 %v4877_v62, %v2866_v25  ;;  %v2899_v53 = vmax.f32 %v2891_v63, 0.0 }
 0xe77   :  { %v3816_v51 = vpop.eup %3815  ;;  %2935 = vadd.xlane.f32.xlu0 %v2927_v32  ;;  %v2880_v29 = vmul.f32 %v4877_v62, %v2867_v19 }
 0xe78   :  { %v2868_v43 = vmul.f32 %v3816_v51, %v2844_v8  ;;  %v2892_v16 = vadd.f32 %v4879_v2, %v2879_v9  ;;  %v4945_v1 = vadd.f32 %v2899_v53, %v4549_v61 }
 0xe79   :  { %v2893_v30 = vadd.f32 %v4879_v2, %v2880_v29 }
 0xe7a   :  { %v2881_v48 = vmul.f32 %v4877_v62, %v2868_v43  ;;  %2937 = vadd.xlane.f32.xlu1 %v2928_v5  ;;  %v2900_v40 = vmax.f32 %v2892_v16, 0.0 }
 0xe7b   :  { %v2901_v39 = vmax.f32 %v2893_v30, 0.0 }
 0xe7c   :  { %v2894_v31 = vadd.f32 %v4879_v2, %v2881_v48  ;;  %v4950_v62 = vadd.f32 %v2900_v40, %v4551_v3 }
 0xe7d   :  { %v4938_v50 = vadd.f32 %v2901_v39, %v4555_v49  ;;  %v2931_v49 = vmul.f32 %v4945_v1, %v4945_v1 }
 0xe7e   :  { %v2902_v12 = vmax.f32 %v2894_v31, 0.0 }
 0xe7f   :  { %2923 = vadd.xlane.f32.xlu0 %v4938_v50  ;;  %v2933_v61 = vmul.f32 %v4938_v50, %v4938_v50 }
 0xe80   :  { %v4942_v60 = vadd.f32 %v2902_v12, %v4557_v52  ;;  %v2932_v52 = vmul.f32 %v4950_v62, %v4950_v62 }
 0xe82   :  { %2925 = vadd.xlane.f32.xlu1 %v4942_v60  ;;  %v2934_v2 = vmul.f32 %v4942_v60, %v4942_v60 }
 0xe83   :  { %2919 = vadd.xlane.f32.xlu0 %v4945_v1 }
 0xe86   :  { %2921 = vadd.xlane.f32.xlu1 %v4950_v62 }
 0xe87   :  { %2943 = vadd.xlane.f32.xlu0 %v2931_v49 }
 0xe8a   :  { %2945 = vadd.xlane.f32.xlu1 %v2932_v52 }
 0xe8b   :  { %2947 = vadd.xlane.f32.xlu0 %v2933_v61 }
 0xe8e   :  { %2949 = vadd.xlane.f32.xlu1 %v2934_v2 }
 0xef3   :  { %v2916_v3 = vpop.xlane.xlu0 %2915 }
 0xef4   :  { %v4961_v7 = vmul.f32 0.0078125, %v2916_v3 }
 0xef6   :  { %v2969_v44 = vmul.f32 %v4961_v7, %v4961_v7  ;;  %v2985_v40 = vsub.f32 %v4894_v21, %v4961_v7 }
 0xef7   :  { %v2918_v14 = vpop.xlane.xlu1 %2917 }
 0xef8   :  { %v2912_v26 = vpop.xlane.xlu0 %2911  ;;  %v2954_v18 = vmul.f32 0.0078125, %v2918_v14 }
 0xef9   :  { %v2951_v36 = vmul.f32 0.0078125, %v2912_v26 }
 0xefa   :  { %v2970_v11 = vmul.f32 %v2954_v18, %v2954_v18  ;;  %v2986_v39 = vsub.f32 %v4902_v24, %v2954_v18 }
 0xefb   :  { %v2914_v4 = vpop.xlane.xlu1 %2913  ;;  %v2967_v17 = vmul.f32 %v2951_v36, %v2951_v36  ;;  %v2983_v49 = vsub.f32 %v4905_v10, %v2951_v36 }
 0xefc   :  { %v2940_v42 = vpop.xlane.xlu0 %2939  ;;  %v2952_v35 = vmul.f32 0.0078125, %v2914_v4 }
 0xefd   :  { %v2961_v47 = vmul.f32 0.0078125, %v2940_v42 }
 0xefe   :  { %v2968_v56 = vmul.f32 %v2952_v35, %v2952_v35  ;;  %v2984_v61 = vsub.f32 %v4912_v46, %v2952_v35 }
 0xeff   :  { %v2977_v23 = vsub.f32 %v2961_v47, %v2969_v44  ;;  %v2942_v37 = vpop.xlane.xlu1 %2941 }
 0xf00   :  { %v2936_v6 = vpop.xlane.xlu0 %2935  ;;  %v2962_v59 = vmul.f32 0.0078125, %v2942_v37 }
 0xf01   :  { %v2959_v57 = vmul.f32 0.0078125, %v2936_v6  ;;  %v2993_v13 = vadd.f32 1e-05, %v2977_v23  ;;  %v3210_v23 = vld [vmem:[#allocation8 + $0x1d] ss:$0 sm:$0xff] }
 0xf02   :  { %v2978_v55 = vsub.f32 %v2962_v59, %v2970_v11  ;;  %v3211_v6 = vld [vmem:[#allocation8 + $0x1e] ss:$0 sm:$0xff] }
 0xf03   :  { %v2975_v58 = vsub.f32 %v2959_v57, %v2967_v17  ;;  %v2938_v22 = vpop.xlane.xlu1 %2937 }
 0xf04   :  { %v2994_v0 = vadd.f32 1e-05, %v2978_v55  ;;  %v2960_v33 = vmul.f32 0.0078125, %v2938_v22 }
 0xf05   :  { %v2991_v20 = vadd.f32 1e-05, %v2975_v58 }
 0xf06   :  { %3817 = vrsqrt.f32 %v2994_v0  ;;  %v2976_v45 = vsub.f32 %v2960_v33, %v2968_v56 }
 0xf07   :  { %3819 = vrsqrt.f32 %v2991_v20 }
 0xf08   :  { %v2924_v34 = vpop.xlane.xlu0 %2923  ;;  %3821 = vrsqrt.f32 %v2993_v13  ;;  %v2992_v28 = vadd.f32 1e-05, %v2976_v45 }
 0xf09   :  { %v2957_v19 = vmul.f32 0.0078125, %v2924_v34 }
 0xf0a   :  { %3823 = vrsqrt.f32 %v2992_v28 }
 0xf0b   :  { %v2926_v15 = vpop.xlane.xlu1 %2925  ;;  %v2973_v31 = vmul.f32 %v2957_v19, %v2957_v19  ;;  %v2989_v45 = vsub.f32 %v4938_v50, %v2957_v19 }
 0xf0c   :  { %v2920_v27 = vpop.xlane.xlu0 %2919  ;;  %v2958_v9 = vmul.f32 0.0078125, %v2926_v15 }
 0xf0d   :  { %v2955_v54 = vmul.f32 0.0078125, %v2920_v27 }
 0xf0e   :  { %v2974_v42 = vmul.f32 %v2958_v9, %v2958_v9 }
 0xf0f   :  { %v2922_v25 = vpop.xlane.xlu1 %2921  ;;  %v2971_v41 = vmul.f32 %v2955_v54, %v2955_v54  ;;  %v2987_v58 = vsub.f32 %v4945_v1, %v2955_v54 }
 0xf10   :  { %v2956_v38 = vmul.f32 0.0078125, %v2922_v25  ;;  %v2944_v32 = vpop.xlane.xlu0 %2943 }
 0xf11   :  { %v2963_v8 = vmul.f32 0.0078125, %v2944_v32  ;;  %v2990_v32 = vsub.f32 %v4942_v60, %v2958_v9 }
 0xf12   :  { %v2972_v5 = vmul.f32 %v2956_v38, %v2956_v38  ;;  %v2988_v0 = vsub.f32 %v4950_v62, %v2956_v38 }
 0xf13   :  { %v2979_v51 = vsub.f32 %v2963_v8, %v2971_v41  ;;  %v2946_v29 = vpop.xlane.xlu1 %2945  ;;  %v3818_v43 = vpop.eup %3817 }
 0xf14   :  { %v2964_v30 = vmul.f32 0.0078125, %v2946_v29  ;;  %v2948_v63 = vpop.xlane.xlu0 %2947  ;;  %v3820_v48 = vpop.eup %3819  ;;  %v3010_v2 = vmul.f32 %v3818_v43, %v2986_v39 }
 0xf15   :  { %v2995_v16 = vadd.f32 1e-05, %v2979_v51  ;;  %v2965_v53 = vmul.f32 0.0078125, %v2948_v63  ;;  %v3822_v12 = vpop.eup %3821  ;;  %v3007_v4 = vmul.f32 %v3820_v48, %v2983_v49 }
 0xf16   :  { %v2980_v52 = vsub.f32 %v2964_v30, %v2972_v5  ;;  %v3009_v47 = vmul.f32 %v3822_v12, %v2985_v40  ;;  %v3023_v7 = vmul.f32 %v3210_v23, %v3010_v2 }
 0xf17   :  { %3825 = vrsqrt.f32 %v2995_v16  ;;  %v2981_v3 = vsub.f32 %v2965_v53, %v2973_v31  ;;  %v2950_v14 = vpop.xlane.xlu1 %2949  ;;  %v3824_v26 = vpop.eup %3823  ;;  %v3020_v36 = vmul.f32 %v3210_v23, %v3007_v4 }
 0xf18   :  { %v2996_v24 = vadd.f32 1e-05, %v2980_v52  ;;  %v2966_v18 = vmul.f32 0.0078125, %v2950_v14  ;;  %v3008_v44 = vmul.f32 %v3824_v26, %v2984_v61  ;;  %v3022_v37 = vmul.f32 %v3210_v23, %v3009_v47 }
 0xf19   :  { %v2997_v11 = vadd.f32 1e-05, %v2981_v3  ;;  %v3036_v35 = vadd.f32 %v3211_v6, %v3023_v7  ;;  %v3033_v59 = vadd.f32 %v3211_v6, %v3020_v36 }
 0xf1a   :  { %3827 = vrsqrt.f32 %v2996_v24  ;;  %v2982_v21 = vsub.f32 %v2966_v18, %v2974_v42  ;;  %v3021_v10 = vmul.f32 %v3210_v23, %v3008_v44  ;;  %v3035_v57 = vadd.f32 %v3211_v6, %v3022_v37 }
 0xf1b   :  { %3829 = vrsqrt.f32 %v2997_v11 }
 0xf1c   :  { %v2998_v46 = vadd.f32 1e-05, %v2982_v21  ;;  %v3034_v17 = vadd.f32 %v3211_v6, %v3021_v10  ;;  %v3048_v13 = vmax.f32 %v3035_v57, %v3036_v35 }
 0xf1e   :  { %3831 = vrsqrt.f32 %v2998_v46  ;;  %v3041_v55 = vmax.f32 %v3033_v59, %v3034_v17  ;;  %v3049_v34 = vrot.slane %v3048_v13, 4 }
 0xf20   :  { %v3042_v20 = vrot.slane %v3041_v55, 4  ;;  %v3050_v1 = vmax.f32 %v3048_v13, %v3049_v34 }
 0xf22   :  { %v3043_v8 = vmax.f32 %v3041_v55, %v3042_v20  ;;  %v3051_v19 = vrot.slane %v3050_v1, 2 }
 0xf24   :  { %v3826_v22 = vpop.eup %3825  ;;  %v3044_v38 = vrot.slane %v3043_v8, 2  ;;  %v3052_v53 = vmax.f32 %v3050_v1, %v3051_v19 }
 0xf25   :  { %v3011_v56 = vmul.f32 %v3826_v22, %v2987_v58 }
 0xf26   :  { %v3045_v39 = vmax.f32 %v3043_v8, %v3044_v38  ;;  %v3053_v52 = vrot.slane %v3052_v53, 1 }
 0xf27   :  { %v3828_v33 = vpop.eup %3827  ;;  %v3024_v27 = vmul.f32 %v3210_v23, %v3011_v56 }
 0xf28   :  { %v3830_v28 = vpop.eup %3829  ;;  %v3012_v15 = vmul.f32 %v3828_v33, %v2988_v0  ;;  %v3046_v12 = vrot.slane %v3045_v39, 1  ;;  %v3054_v4 = vmax.f32 %v3052_v53, %v3053_v52 }
 0xf29   :  { %v3013_v25 = vmul.f32 %v3830_v28, %v2989_v45  ;;  %v3037_v43 = vadd.f32 %v3211_v6, %v3024_v27 }
 0xf2a   :  { %v3025_v41 = vmul.f32 %v3210_v23, %v3012_v15  ;;  %v3047_v3 = vmax.f32 %v3045_v39, %v3046_v12 }
 0xf2b   :  { %v3832_v51 = vpop.eup %3831  ;;  %v3026_v29 = vmul.f32 %v3210_v23, %v3013_v25 }
 0xf2c   :  { %v3014_v54 = vmul.f32 %v3832_v51, %v2990_v32  ;;  %v3038_v5 = vadd.f32 %v3211_v6, %v3025_v41  ;;  %v3070_v18 = vsel %vm3069_vm0, %v3047_v3, %v3054_v4 }
 0xf2d   :  { %v3039_v63 = vadd.f32 %v3211_v6, %v3026_v29 }
 0xf2e   :  { %v3027_v62 = vmul.f32 %v3210_v23, %v3014_v54  ;;  %v3055_v30 = vmax.f32 %v3037_v43, %v3038_v5 }
 0xf30   :  { %v3040_v50 = vadd.f32 %v3211_v6, %v3027_v62  ;;  %v3056_v48 = vrot.slane %v3055_v30, 4 }
 0xf32   :  { %v3057_v31 = vmax.f32 %v3055_v30, %v3056_v48  ;;  %v3062_v16 = vmax.f32 %v3039_v63, %v3040_v50 }
 0xf34   :  { %v3058_v60 = vrot.slane %v3057_v31, 2  ;;  %v3063_v9 = vrot.slane %v3062_v16, 4 }
 0xf36   :  { %v3059_v40 = vmax.f32 %v3057_v31, %v3058_v60  ;;  %v3064_v49 = vmax.f32 %v3062_v16, %v3063_v9 }
 0xf38   :  { %v3060_v61 = vrot.slane %v3059_v40, 1  ;;  %v3065_v2 = vrot.slane %v3064_v49, 2 }
 0xf3a   :  { %v3066_v14 = vmax.f32 %v3064_v49, %v3065_v2  ;;  %v3061_v26 = vmax.f32 %v3059_v40, %v3060_v61 }
 0xf3c   :  { %v3067_v42 = vrot.slane %v3066_v14, 1  ;;  %v3072_v47 = vsel %vm3071_vm1, %v3070_v18, %v3061_v26 }
 0xf3e   :  { %v3068_v24 = vmax.f32 %v3066_v14, %v3067_v42 }
 0xf40   :  { %v3074_v44 = vsel %vm3073_vm2, %v3072_v47, %v3068_v24 }
 0xf41   :  { %3075 = vst [vmem:[#allocation10] sm:$0xf] %v3074_v44 }
 0xf42   :  { %3924 = shalt.err (!%p3921_p10)
}
 0xf43   :  { %3085 = dma.vmem_to_hbm [thread:$0]  %s3083_s3, 64, %s4981_s4, [#allocation4]  }
 0xf44   :  { %3939 = dma.done.wait [#allocation4], 64  }
 0xf45   :  { %3940 = vsyncadd [#allocation4], 4294967232 }
 0xf46   :  { %3089 = vsyncpa [#allocation3], 1 }
 0xf47   :  { %3090 = vsyncpa [#allocation6], 1 }
 0xf48   :  { %3091 = vsyncpa [#allocation9], 1 }
 0xf49   :  { %3092 = vsyncpa [#allocation4], 1 }

</bundles_post_ra>
